<compile_context>
chip_gen: v6e
topology: v6e:2x2x1
jax: 0.10.0
libtpu: 0.0.40
codegen_flags: <defaults>
</compile_context>

<pallas_src>
import numpy as np
import jax
import jax.numpy as jnp
from jax.experimental import pallas as pl
from jax.experimental.pallas import tpu as pltpu


# ----------------------------------------------------------------------------
# Host-side (numpy) constant construction -- done once at "module init".
# ----------------------------------------------------------------------------
def _bilinear_matrix_np(out_size: int, in_size: int) -> np.ndarray:
    """(out_size, in_size) operator reproducing
    torch.nn.functional.interpolate(mode='bilinear', align_corners=False)."""
    scale = in_size / out_size
    i = np.arange(out_size, dtype=np.float64)
    src = np.maximum((i + 0.5) * scale - 0.5, 0.0)          # PyTorch clamps to >= 0
    i0 = np.minimum(np.floor(src).astype(np.int64), in_size - 1)
    i1 = np.minimum(i0 + 1, in_size - 1)
    w1 = src - i0
    w0 = 1.0 - w1
    A = np.zeros((out_size, in_size), dtype=np.float64)
    A[np.arange(out_size), i0] += w0
    A[np.arange(out_size), i1] += w1                        # i0 == i1 -> weight 1.0
    return A.astype(np.float32)


def init_params(key, in_channels_list, out_channels):
    """Deterministic synthetic parameters matching the module's shapes."""
    params = []
    for idx, cin in enumerate(in_channels_list):
        k = jax.random.fold_in(key, idx)
        kw, kb, kg, kbe, km, kv = jax.random.split(k, 6)
        params.append(dict(
            w=jax.random.normal(kw, (out_channels, cin, 3, 3), jnp.float32) * 0.1,
            b=jax.random.normal(kb, (out_channels,), jnp.float32) * 0.05,
            gamma=1.0 + 0.1 * jax.random.normal(kg, (out_channels,), jnp.float32),
            beta=0.05 * jax.random.normal(kbe, (out_channels,), jnp.float32),
            mean=0.05 * jax.random.normal(km, (out_channels,), jnp.float32),
            var=jax.random.uniform(kv, (out_channels,), jnp.float32,
                                   minval=0.5, maxval=1.5),
        ))
    return params


def init_module(params, in_shapes, target_size):
    """Pre-fold everything that does not depend on activations.

    params:      list of dicts (w, b, gamma, beta, mean, var) per branch
    in_shapes:   list of (Ci, Hi, Wi) per branch
    target_size: (Ht, Wt)
    """
    Ht, Wt = target_size
    HW = Ht * Wt
    eps = 1e-5
    Cout = int(params[0]["w"].shape[0])

    mstacks, wtaps, scales, biases, cfg = [], [], [], [], []
    for (Ci, Hi, Wi), p in zip(in_shapes, params):
        A_h = _bilinear_matrix_np(Ht, Hi)                    # (Ht, Hi)
        A_w = _bilinear_matrix_np(Wt, Wi)                    # (Wt, Wi)
        Ah_pad = np.pad(A_h, ((1, 1), (0, 0)))               # (Ht+2, Hi)  zero rows = pad
        Aw_pad = np.pad(A_w, ((1, 1), (0, 0)))               # (Wt+2, Wi)
        taps = []
        for ki in range(3):
            for kj in range(3):
                # (Ht*Wt, Hi*Wi): resize + shift for conv tap (ki, kj).
                M_t = np.kron(Ah_pad[ki:ki + Ht], Aw_pad[kj:kj + Wt])
                taps.append(np.ascontiguousarray(M_t.T, dtype=np.float32))
        # Stack taps along N -> single wide MXU matmul per branch in the kernel.
        mstacks.append(jnp.asarray(np.concatenate(taps, axis=1)))   # (Hi*Wi, 9*HW)

        w = np.asarray(p["w"], np.float32)                   # (Cout, Ci, 3, 3)
        wtaps.append(jnp.asarray(                            # (9, Cout, Ci), t = ki*3+kj
            np.ascontiguousarray(np.transpose(w, (2, 3, 0, 1)).reshape(9, Cout, Ci))))

        gamma = np.asarray(p["gamma"], np.float32)
        var = np.asarray(p["var"], np.float32)
        mean = np.asarray(p["mean"], np.float32)
        beta = np.asarray(p["beta"], np.float32)
        b = np.asarray(p["b"], np.float32)
        s = gamma / np.sqrt(var + eps)                       # fold BN(eval) + conv bias
        scales.append(s)
        biases.append((b - mean) * s + beta)
        cfg.append((Ci, Hi * Wi))

    n = len(cfg)
    scale_nb = jnp.asarray(np.stack(scales, 0).reshape(n, Cout, 1).astype(np.float32))
    bias_nb = jnp.asarray(np.stack(biases, 0).reshape(n, Cout, 1).astype(np.float32))
    return dict(mstacks=mstacks, wtaps=wtaps, scale=scale_nb, bias=bias_nb,
                cfg=tuple(cfg), Cout=Cout, HW=HW, Ht=Ht, Wt=Wt)


# ----------------------------------------------------------------------------
# Fused Pallas kernel: 3x (resize + conv3x3 + folded-BN + ReLU) + channel concat
# ----------------------------------------------------------------------------
def _make_kernel(cfg, HW, Cout):
    """cfg: tuple of (Ci, Hi*Wi) per branch."""
    n = len(cfg)

    def kernel(*refs):
        # refs: x_1..x_n, m_1..m_n, w_1..w_n, scale, bias, out
        x_refs = refs[0:n]
        m_refs = refs[n:2 * n]
        w_refs = refs[2 * n:3 * n]
        s_ref = refs[3 * n]
        b_ref = refs[3 * n + 1]
        o_ref = refs[3 * n + 2]

        for i, (Ci, HWi) in enumerate(cfg):
            x = x_refs[i][0]                                  # (Ci, HWi) channels on sublanes
            # Resize + all 9 conv-tap shifts in one wide MXU matmul (lane-dense N).
            xs = jnp.dot(x, m_refs[i][...],
                         preferred_element_type=jnp.float32)  # (Ci, 9*HW)
            acc = jnp.zeros((Cout, HW), jnp.float32)          # (Cout, 256) -> 2 vregs
            for t in range(9):                                # t = ki*3 + kj
                # Lane-aligned (multiple-of-256) slice; no relayout.
                acc = acc + jnp.dot(w_refs[i][t],
                                    xs[:, t * HW:(t + 1) * HW],
                                    preferred_element_type=jnp.float32)
            # Folded BatchNorm (inference) + conv bias, then ReLU.
            y = jnp.maximum(acc * s_ref[i] + b_ref[i], 0.0)   # (Cout, 256)
            o_ref[0, i, :, :] = y.astype(o_ref.dtype)         # unmasked 256-wide store

    return kernel


def multi_branch_feature_align(mod, inputs_nchw):
    """inputs_nchw: list of NCHW tensors (one per branch).
    Returns (B, n_branches*Cout, Ht, Wt) in NCHW."""
    cfg, Cout, HW = mod["cfg"], mod["Cout"], mod["HW"]
    n = len(cfg)
    B = inputs_nchw[0].shape[0]

    # (B, Ci, Hi, Wi) -> (B, Ci, Hi*Wi): trailing-dim merge, free in HBM.
    xs_flat = [jnp.reshape(x.astype(jnp.float32), (B, c, hw))
               for x, (c, hw) in zip(inputs_nchw, cfg)]

    kernel = _make_kernel(cfg, HW, Cout)

    in_specs = []
    for (Ci, HWi) in cfg:                                     # per-batch NCHW slab
        in_specs.append(pl.BlockSpec((1, Ci, HWi), lambda b: (b, 0, 0)))
    for (Ci, HWi) in cfg:                                     # stacked tap matrices
        in_specs.append(pl.BlockSpec((HWi, 9 * HW), lambda b: (0, 0)))
    for (Ci, HWi) in cfg:                                     # conv taps (9, Cout, Ci)
        in_specs.append(pl.BlockSpec((9, Cout, Ci), lambda b: (0, 0, 0)))
    in_specs.append(pl.BlockSpec((n, Cout, 1), lambda b: (0, 0, 0)))   # scale
    in_specs.append(pl.BlockSpec((n, Cout, 1), lambda b: (0, 0, 0)))   # bias

    out = pl.pallas_call(
        kernel,
        out_shape=jax.ShapeDtypeStruct((B, n, Cout, HW), jnp.float32),
        grid_spec=pltpu.PrefetchScalarGridSpec(
            num_scalar_prefetch=0,
            grid=(B,),
            in_specs=in_specs,
            out_specs=pl.BlockSpec((1, n, Cout, HW), lambda b: (b, 0, 0, 0)),
        ),
        compiler_params=pltpu.CompilerParams(
            dimension_semantics=("parallel",),
            vmem_limit_bytes=32 * 1024 * 1024),
    )(*xs_flat, *mod["mstacks"], *mod["wtaps"], mod["scale"], mod["bias"])

    # (B, n, Cout, HW) -> (B, n*Cout, Ht, Wt): trailing-dim merge/split, free.
    return out.reshape(B, n * Cout, mod["Ht"], mod["Wt"])


# ----------------------------------------------------------------------------
# Pure-numpy (float64) reference for a correctness check.
# ----------------------------------------------------------------------------
def _reference_forward(inputs_nchw, params, target_size):
    Ht, Wt = target_size
    eps = 1e-5
    outs = []
    for x, p in zip(inputs_nchw, params):
        x = np.asarray(x, np.float64)
        B, Ci, Hi, Wi = x.shape
        Ah = _bilinear_matrix_np(Ht, Hi).astype(np.float64)
        Aw = _bilinear_matrix_np(Wt, Wi).astype(np.float64)
        xr = np.einsum('bchw,Hh,Ww->bcHW', x, Ah, Aw)         # bilinear resize
        xp = np.pad(xr, ((0, 0), (0, 0), (1, 1), (1, 1)))     # conv padding=1
        w = np.asarray(p["w"], np.float64)
        Cout = w.shape[0]
        y = np.zeros((B, Cout, Ht, Wt), np.float64)
        for ki in range(3):
            for kj in range(3):
                y += np.einsum('oc,bchw->bohw', w[:, :, ki, kj],
                               xp[:, :, ki:ki + Ht, kj:kj + Wt])
        y += np.asarray(p["b"], np.float64)[None, :, None, None]
        s = np.asarray(p["gamma"], np.float64) / np.sqrt(np.asarray(p["var"], np.float64) + eps)
        y = (y - np.asarray(p["mean"], np.float64)[None, :, None, None]) \
            * s[None, :, None, None] + np.asarray(p["beta"], np.float64)[None, :, None, None]
        outs.append(np.maximum(y, 0.0))
    return np.concatenate(outs, axis=1)


# ----------------------------------------------------------------------------
if __name__ == "__main__":
    key = jax.random.PRNGKey(0)
    in_channels_list = [4, 6, 8]
    out_channels = 8
    target_size = (16, 16)
    B = 2

    k1, k2, k3, kp = jax.random.split(key, 4)
    input1 = jax.random.normal(k1, (B, 4, 16, 16), jnp.float32)
    input2 = jax.random.normal(k2, (B, 6, 8, 8), jnp.float32)
    input3 = jax.random.normal(k3, (B, 8, 24, 12), jnp.float32)

    params = init_params(kp, in_channels_list, out_channels)
    mod = init_module(params,
                      in_shapes=[(4, 16, 16), (6, 8, 8), (8, 24, 12)],
                      target_size=target_size)

    fused = multi_branch_feature_align(mod, [input1, input2, input3])
    fused = jax.block_until_ready(fused)

    assert fused.shape == (B, 3 * out_channels, target_size[0], target_size[1]), fused.shape
    assert bool(jnp.all(jnp.isfinite(fused)))
    assert bool(jnp.all(fused >= 0.0))          # ReLU output

    ref = _reference_forward([input1, input2, input3], params, target_size)
    np.testing.assert_allclose(np.asarray(fused), ref, rtol=2e-2, atol=2e-2)

    print("KERNEL_OK")
</pallas_src>

<mosaic_0001>
module attributes {stable_mosaic.version = 11 : i64} {
  func.func @kernel(%arg0: i32, %arg1: memref<1x4x256xf32, #tpu.memory_space<vmem>>, %arg2: memref<1x6x64xf32, #tpu.memory_space<vmem>>, %arg3: memref<1x8x288xf32, #tpu.memory_space<vmem>>, %arg4: memref<256x2304xf32, #tpu.memory_space<vmem>>, %arg5: memref<64x2304xf32, #tpu.memory_space<vmem>>, %arg6: memref<288x2304xf32, #tpu.memory_space<vmem>>, %arg7: memref<9x8x4xf32, #tpu.memory_space<vmem>>, %arg8: memref<9x8x6xf32, #tpu.memory_space<vmem>>, %arg9: memref<9x8x8xf32, #tpu.memory_space<vmem>>, %arg10: memref<3x8x1xf32, #tpu.memory_space<vmem>>, %arg11: memref<3x8x1xf32, #tpu.memory_space<vmem>>, %arg12: memref<1x3x8x256xf32, #tpu.memory_space<vmem>>) attributes {dimension_semantics = [#tpu.dimension_semantics<parallel>], iteration_bounds = array<i64: 2>, scalar_prefetch = 0 : i64, scratch_operands = 0 : i64, tpu.core_type = #tpu.core_type<tc>, window_params = [{transform_indices = @transform_0, window_bounds = array<i64: 1, 4, 256>}, {transform_indices = @transform_1, window_bounds = array<i64: 1, 6, 64>}, {transform_indices = @transform_2, window_bounds = array<i64: 1, 8, 288>}, {pipeline_mode = #tpu.pipeline_mode<synchronous>, transform_indices = @transform_3, window_bounds = array<i64: 256, 2304>}, {pipeline_mode = #tpu.pipeline_mode<synchronous>, transform_indices = @transform_4, window_bounds = array<i64: 64, 2304>}, {pipeline_mode = #tpu.pipeline_mode<synchronous>, transform_indices = @transform_5, window_bounds = array<i64: 288, 2304>}, {pipeline_mode = #tpu.pipeline_mode<synchronous>, transform_indices = @transform_6, window_bounds = array<i64: 9, 8, 4>}, {pipeline_mode = #tpu.pipeline_mode<synchronous>, transform_indices = @transform_7, window_bounds = array<i64: 9, 8, 6>}, {pipeline_mode = #tpu.pipeline_mode<synchronous>, transform_indices = @transform_8, window_bounds = array<i64: 9, 8, 8>}, {pipeline_mode = #tpu.pipeline_mode<synchronous>, transform_indices = @transform_9, window_bounds = array<i64: 3, 8, 1>}, {pipeline_mode = #tpu.pipeline_mode<synchronous>, transform_indices = @transform_10, window_bounds = array<i64: 3, 8, 1>}, {transform_indices = @transform_11, window_bounds = array<i64: 1, 3, 8, 256>}]} {
    %c0 = arith.constant 0 : index
    %c0_0 = arith.constant 0 : index
    %c0_1 = arith.constant 0 : index
    %0 = vector.load %arg1[%c0, %c0_0, %c0_1] : memref<1x4x256xf32, #tpu.memory_space<vmem>>, vector<1x4x256xf32>
    %1 = vector.shape_cast %0 : vector<1x4x256xf32> to vector<4x256xf32>
    %c0_2 = arith.constant 0 : index
    %c0_3 = arith.constant 0 : index
    %2 = vector.load %arg4[%c0_2, %c0_3] : memref<256x2304xf32, #tpu.memory_space<vmem>>, vector<256x2304xf32>
    %cst = arith.constant dense<0.000000e+00> : vector<4x2304xf32>
    %3 = tpu.matmul %1, %2, %cst {dimension_numbers = #tpu.dot_dimension_numbers<[1], [0], [0], [1], [0, 0, 1, 1], [], []>} : vector<4x256xf32>, vector<256x2304xf32>, vector<4x2304xf32> -> vector<4x2304xf32>
    %cst_4 = arith.constant 0.000000e+00 : f32
    %4 = vector.broadcast %cst_4 : f32 to vector<8x256xf32>
    %c0_5 = arith.constant 0 : index
    %c0_6 = arith.constant 0 : index
    %c0_7 = arith.constant 0 : index
    %5 = vector.load %arg7[%c0_5, %c0_6, %c0_7] : memref<9x8x4xf32, #tpu.memory_space<vmem>>, vector<1x8x4xf32>
    %6 = vector.shape_cast %5 : vector<1x8x4xf32> to vector<8x4xf32>
    %7 = vector.extract_strided_slice %3 {offsets = [0, 0], sizes = [4, 256], strides = [1, 1]} : vector<4x2304xf32> to vector<4x256xf32>
    %cst_8 = arith.constant dense<0.000000e+00> : vector<8x256xf32>
    %8 = tpu.matmul %6, %7, %cst_8 {dimension_numbers = #tpu.dot_dimension_numbers<[1], [0], [0], [1], [0, 0, 1, 1], [], []>} : vector<8x4xf32>, vector<4x256xf32>, vector<8x256xf32> -> vector<8x256xf32>
    %9 = arith.addf %4, %8 : vector<8x256xf32>
    %c1 = arith.constant 1 : index
    %c0_9 = arith.constant 0 : index
    %c0_10 = arith.constant 0 : index
    %10 = vector.load %arg7[%c1, %c0_9, %c0_10] : memref<9x8x4xf32, #tpu.memory_space<vmem>>, vector<1x8x4xf32>
    %11 = vector.shape_cast %10 : vector<1x8x4xf32> to vector<8x4xf32>
    %12 = vector.extract_strided_slice %3 {offsets = [0, 256], sizes = [4, 256], strides = [1, 1]} : vector<4x2304xf32> to vector<4x256xf32>
    %cst_11 = arith.constant dense<0.000000e+00> : vector<8x256xf32>
    %13 = tpu.matmul %11, %12, %cst_11 {dimension_numbers = #tpu.dot_dimension_numbers<[1], [0], [0], [1], [0, 0, 1, 1], [], []>} : vector<8x4xf32>, vector<4x256xf32>, vector<8x256xf32> -> vector<8x256xf32>
    %14 = arith.addf %9, %13 : vector<8x256xf32>
    %c2 = arith.constant 2 : index
    %c0_12 = arith.constant 0 : index
    %c0_13 = arith.constant 0 : index
    %15 = vector.load %arg7[%c2, %c0_12, %c0_13] : memref<9x8x4xf32, #tpu.memory_space<vmem>>, vector<1x8x4xf32>
    %16 = vector.shape_cast %15 : vector<1x8x4xf32> to vector<8x4xf32>
    %17 = vector.extract_strided_slice %3 {offsets = [0, 512], sizes = [4, 256], strides = [1, 1]} : vector<4x2304xf32> to vector<4x256xf32>
    %cst_14 = arith.constant dense<0.000000e+00> : vector<8x256xf32>
    %18 = tpu.matmul %16, %17, %cst_14 {dimension_numbers = #tpu.dot_dimension_numbers<[1], [0], [0], [1], [0, 0, 1, 1], [], []>} : vector<8x4xf32>, vector<4x256xf32>, vector<8x256xf32> -> vector<8x256xf32>
    %19 = arith.addf %14, %18 : vector<8x256xf32>
    %c3 = arith.constant 3 : index
    %c0_15 = arith.constant 0 : index
    %c0_16 = arith.constant 0 : index
    %20 = vector.load %arg7[%c3, %c0_15, %c0_16] : memref<9x8x4xf32, #tpu.memory_space<vmem>>, vector<1x8x4xf32>
    %21 = vector.shape_cast %20 : vector<1x8x4xf32> to vector<8x4xf32>
    %22 = vector.extract_strided_slice %3 {offsets = [0, 768], sizes = [4, 256], strides = [1, 1]} : vector<4x2304xf32> to vector<4x256xf32>
    %cst_17 = arith.constant dense<0.000000e+00> : vector<8x256xf32>
    %23 = tpu.matmul %21, %22, %cst_17 {dimension_numbers = #tpu.dot_dimension_numbers<[1], [0], [0], [1], [0, 0, 1, 1], [], []>} : vector<8x4xf32>, vector<4x256xf32>, vector<8x256xf32> -> vector<8x256xf32>
    %24 = arith.addf %19, %23 : vector<8x256xf32>
    %c4 = arith.constant 4 : index
    %c0_18 = arith.constant 0 : index
    %c0_19 = arith.constant 0 : index
    %25 = vector.load %arg7[%c4, %c0_18, %c0_19] : memref<9x8x4xf32, #tpu.memory_space<vmem>>, vector<1x8x4xf32>
    %26 = vector.shape_cast %25 : vector<1x8x4xf32> to vector<8x4xf32>
    %27 = vector.extract_strided_slice %3 {offsets = [0, 1024], sizes = [4, 256], strides = [1, 1]} : vector<4x2304xf32> to vector<4x256xf32>
    %cst_20 = arith.constant dense<0.000000e+00> : vector<8x256xf32>
    %28 = tpu.matmul %26, %27, %cst_20 {dimension_numbers = #tpu.dot_dimension_numbers<[1], [0], [0], [1], [0, 0, 1, 1], [], []>} : vector<8x4xf32>, vector<4x256xf32>, vector<8x256xf32> -> vector<8x256xf32>
    %29 = arith.addf %24, %28 : vector<8x256xf32>
    %c5 = arith.constant 5 : index
    %c0_21 = arith.constant 0 : index
    %c0_22 = arith.constant 0 : index
    %30 = vector.load %arg7[%c5, %c0_21, %c0_22] : memref<9x8x4xf32, #tpu.memory_space<vmem>>, vector<1x8x4xf32>
    %31 = vector.shape_cast %30 : vector<1x8x4xf32> to vector<8x4xf32>
    %32 = vector.extract_strided_slice %3 {offsets = [0, 1280], sizes = [4, 256], strides = [1, 1]} : vector<4x2304xf32> to vector<4x256xf32>
    %cst_23 = arith.constant dense<0.000000e+00> : vector<8x256xf32>
    %33 = tpu.matmul %31, %32, %cst_23 {dimension_numbers = #tpu.dot_dimension_numbers<[1], [0], [0], [1], [0, 0, 1, 1], [], []>} : vector<8x4xf32>, vector<4x256xf32>, vector<8x256xf32> -> vector<8x256xf32>
    %34 = arith.addf %29, %33 : vector<8x256xf32>
    %c6 = arith.constant 6 : index
    %c0_24 = arith.constant 0 : index
    %c0_25 = arith.constant 0 : index
    %35 = vector.load %arg7[%c6, %c0_24, %c0_25] : memref<9x8x4xf32, #tpu.memory_space<vmem>>, vector<1x8x4xf32>
    %36 = vector.shape_cast %35 : vector<1x8x4xf32> to vector<8x4xf32>
    %37 = vector.extract_strided_slice %3 {offsets = [0, 1536], sizes = [4, 256], strides = [1, 1]} : vector<4x2304xf32> to vector<4x256xf32>
    %cst_26 = arith.constant dense<0.000000e+00> : vector<8x256xf32>
    %38 = tpu.matmul %36, %37, %cst_26 {dimension_numbers = #tpu.dot_dimension_numbers<[1], [0], [0], [1], [0, 0, 1, 1], [], []>} : vector<8x4xf32>, vector<4x256xf32>, vector<8x256xf32> -> vector<8x256xf32>
    %39 = arith.addf %34, %38 : vector<8x256xf32>
    %c7 = arith.constant 7 : index
    %c0_27 = arith.constant 0 : index
    %c0_28 = arith.constant 0 : index
    %40 = vector.load %arg7[%c7, %c0_27, %c0_28] : memref<9x8x4xf32, #tpu.memory_space<vmem>>, vector<1x8x4xf32>
    %41 = vector.shape_cast %40 : vector<1x8x4xf32> to vector<8x4xf32>
    %42 = vector.extract_strided_slice %3 {offsets = [0, 1792], sizes = [4, 256], strides = [1, 1]} : vector<4x2304xf32> to vector<4x256xf32>
    %cst_29 = arith.constant dense<0.000000e+00> : vector<8x256xf32>
    %43 = tpu.matmul %41, %42, %cst_29 {dimension_numbers = #tpu.dot_dimension_numbers<[1], [0], [0], [1], [0, 0, 1, 1], [], []>} : vector<8x4xf32>, vector<4x256xf32>, vector<8x256xf32> -> vector<8x256xf32>
    %44 = arith.addf %39, %43 : vector<8x256xf32>
    %c8 = arith.constant 8 : index
    %c0_30 = arith.constant 0 : index
    %c0_31 = arith.constant 0 : index
    %45 = vector.load %arg7[%c8, %c0_30, %c0_31] : memref<9x8x4xf32, #tpu.memory_space<vmem>>, vector<1x8x4xf32>
    %46 = vector.shape_cast %45 : vector<1x8x4xf32> to vector<8x4xf32>
    %47 = vector.extract_strided_slice %3 {offsets = [0, 2048], sizes = [4, 256], strides = [1, 1]} : vector<4x2304xf32> to vector<4x256xf32>
    %cst_32 = arith.constant dense<0.000000e+00> : vector<8x256xf32>
    %48 = tpu.matmul %46, %47, %cst_32 {dimension_numbers = #tpu.dot_dimension_numbers<[1], [0], [0], [1], [0, 0, 1, 1], [], []>} : vector<8x4xf32>, vector<4x256xf32>, vector<8x256xf32> -> vector<8x256xf32>
    %49 = arith.addf %44, %48 : vector<8x256xf32>
    %c0_33 = arith.constant 0 : index
    %c0_34 = arith.constant 0 : index
    %c0_35 = arith.constant 0 : index
    %50 = vector.load %arg10[%c0_33, %c0_34, %c0_35] : memref<3x8x1xf32, #tpu.memory_space<vmem>>, vector<1x8x1xf32>
    %51 = vector.shape_cast %50 : vector<1x8x1xf32> to vector<8x1xf32>
    %52 = vector.broadcast %51 : vector<8x1xf32> to vector<8x256xf32>
    %53 = arith.mulf %49, %52 : vector<8x256xf32>
    %c0_36 = arith.constant 0 : index
    %c0_37 = arith.constant 0 : index
    %c0_38 = arith.constant 0 : index
    %54 = vector.load %arg11[%c0_36, %c0_37, %c0_38] : memref<3x8x1xf32, #tpu.memory_space<vmem>>, vector<1x8x1xf32>
    %55 = vector.shape_cast %54 : vector<1x8x1xf32> to vector<8x1xf32>
    %56 = vector.broadcast %55 : vector<8x1xf32> to vector<8x256xf32>
    %57 = arith.addf %53, %56 : vector<8x256xf32>
    %cst_39 = arith.constant 0.000000e+00 : f32
    %58 = vector.broadcast %cst_39 : f32 to vector<8x256xf32>
    %59 = arith.maximumf %57, %58 : vector<8x256xf32>
    %c0_40 = arith.constant 0 : index
    %c0_41 = arith.constant 0 : index
    %c0_42 = arith.constant 0 : index
    %c0_43 = arith.constant 0 : index
    %60 = vector.load %arg12[%c0_40, %c0_41, %c0_42, %c0_43] : memref<1x3x8x256xf32, #tpu.memory_space<vmem>>, vector<1x1x8x256xf32>
    %61 = vector.shape_cast %60 : vector<1x1x8x256xf32> to vector<8x256xf32>
    %62 = vector.shape_cast %59 : vector<8x256xf32> to vector<1x1x8x256xf32>
    tpu.vector_store %arg12[%c0_40, %c0_41, %c0_42, %c0_43], %62 {strides = array<i32>} : memref<1x3x8x256xf32, #tpu.memory_space<vmem>>, vector<1x1x8x256xf32>,
    %c0_44 = arith.constant 0 : index
    %c0_45 = arith.constant 0 : index
    %c0_46 = arith.constant 0 : index
    %63 = vector.load %arg2[%c0_44, %c0_45, %c0_46] : memref<1x6x64xf32, #tpu.memory_space<vmem>>, vector<1x6x64xf32>
    %64 = vector.shape_cast %63 : vector<1x6x64xf32> to vector<6x64xf32>
    %c0_47 = arith.constant 0 : index
    %c0_48 = arith.constant 0 : index
    %65 = vector.load %arg5[%c0_47, %c0_48] : memref<64x2304xf32, #tpu.memory_space<vmem>>, vector<64x2304xf32>
    %cst_49 = arith.constant dense<0.000000e+00> : vector<6x2304xf32>
    %66 = tpu.matmul %64, %65, %cst_49 {dimension_numbers = #tpu.dot_dimension_numbers<[1], [0], [0], [1], [0, 0, 1, 1], [], []>} : vector<6x64xf32>, vector<64x2304xf32>, vector<6x2304xf32> -> vector<6x2304xf32>
    %cst_50 = arith.constant 0.000000e+00 : f32
    %67 = vector.broadcast %cst_50 : f32 to vector<8x256xf32>
    %c0_51 = arith.constant 0 : index
    %c0_52 = arith.constant 0 : index
    %c0_53 = arith.constant 0 : index
    %68 = vector.load %arg8[%c0_51, %c0_52, %c0_53] : memref<9x8x6xf32, #tpu.memory_space<vmem>>, vector<1x8x6xf32>
    %69 = vector.shape_cast %68 : vector<1x8x6xf32> to vector<8x6xf32>
    %70 = vector.extract_strided_slice %66 {offsets = [0, 0], sizes = [6, 256], strides = [1, 1]} : vector<6x2304xf32> to vector<6x256xf32>
    %cst_54 = arith.constant dense<0.000000e+00> : vector<8x256xf32>
    %71 = tpu.matmul %69, %70, %cst_54 {dimension_numbers = #tpu.dot_dimension_numbers<[1], [0], [0], [1], [0, 0, 1, 1], [], []>} : vector<8x6xf32>, vector<6x256xf32>, vector<8x256xf32> -> vector<8x256xf32>
    %72 = arith.addf %67, %71 : vector<8x256xf32>
    %c1_55 = arith.constant 1 : index
    %c0_56 = arith.constant 0 : index
    %c0_57 = arith.constant 0 : index
    %73 = vector.load %arg8[%c1_55, %c0_56, %c0_57] : memref<9x8x6xf32, #tpu.memory_space<vmem>>, vector<1x8x6xf32>
    %74 = vector.shape_cast %73 : vector<1x8x6xf32> to vector<8x6xf32>
    %75 = vector.extract_strided_slice %66 {offsets = [0, 256], sizes = [6, 256], strides = [1, 1]} : vector<6x2304xf32> to vector<6x256xf32>
    %cst_58 = arith.constant dense<0.000000e+00> : vector<8x256xf32>
    %76 = tpu.matmul %74, %75, %cst_58 {dimension_numbers = #tpu.dot_dimension_numbers<[1], [0], [0], [1], [0, 0, 1, 1], [], []>} : vector<8x6xf32>, vector<6x256xf32>, vector<8x256xf32> -> vector<8x256xf32>
    %77 = arith.addf %72, %76 : vector<8x256xf32>
    %c2_59 = arith.constant 2 : index
    %c0_60 = arith.constant 0 : index
    %c0_61 = arith.constant 0 : index
    %78 = vector.load %arg8[%c2_59, %c0_60, %c0_61] : memref<9x8x6xf32, #tpu.memory_space<vmem>>, vector<1x8x6xf32>
    %79 = vector.shape_cast %78 : vector<1x8x6xf32> to vector<8x6xf32>
    %80 = vector.extract_strided_slice %66 {offsets = [0, 512], sizes = [6, 256], strides = [1, 1]} : vector<6x2304xf32> to vector<6x256xf32>
    %cst_62 = arith.constant dense<0.000000e+00> : vector<8x256xf32>
    %81 = tpu.matmul %79, %80, %cst_62 {dimension_numbers = #tpu.dot_dimension_numbers<[1], [0], [0], [1], [0, 0, 1, 1], [], []>} : vector<8x6xf32>, vector<6x256xf32>, vector<8x256xf32> -> vector<8x256xf32>
    %82 = arith.addf %77, %81 : vector<8x256xf32>
    %c3_63 = arith.constant 3 : index
    %c0_64 = arith.constant 0 : index
    %c0_65 = arith.constant 0 : index
    %83 = vector.load %arg8[%c3_63, %c0_64, %c0_65] : memref<9x8x6xf32, #tpu.memory_space<vmem>>, vector<1x8x6xf32>
    %84 = vector.shape_cast %83 : vector<1x8x6xf32> to vector<8x6xf32>
    %85 = vector.extract_strided_slice %66 {offsets = [0, 768], sizes = [6, 256], strides = [1, 1]} : vector<6x2304xf32> to vector<6x256xf32>
    %cst_66 = arith.constant dense<0.000000e+00> : vector<8x256xf32>
    %86 = tpu.matmul %84, %85, %cst_66 {dimension_numbers = #tpu.dot_dimension_numbers<[1], [0], [0], [1], [0, 0, 1, 1], [], []>} : vector<8x6xf32>, vector<6x256xf32>, vector<8x256xf32> -> vector<8x256xf32>
    %87 = arith.addf %82, %86 : vector<8x256xf32>
    %c4_67 = arith.constant 4 : index
    %c0_68 = arith.constant 0 : index
    %c0_69 = arith.constant 0 : index
    %88 = vector.load %arg8[%c4_67, %c0_68, %c0_69] : memref<9x8x6xf32, #tpu.memory_space<vmem>>, vector<1x8x6xf32>
    %89 = vector.shape_cast %88 : vector<1x8x6xf32> to vector<8x6xf32>
    %90 = vector.extract_strided_slice %66 {offsets = [0, 1024], sizes = [6, 256], strides = [1, 1]} : vector<6x2304xf32> to vector<6x256xf32>
    %cst_70 = arith.constant dense<0.000000e+00> : vector<8x256xf32>
    %91 = tpu.matmul %89, %90, %cst_70 {dimension_numbers = #tpu.dot_dimension_numbers<[1], [0], [0], [1], [0, 0, 1, 1], [], []>} : vector<8x6xf32>, vector<6x256xf32>, vector<8x256xf32> -> vector<8x256xf32>
    %92 = arith.addf %87, %91 : vector<8x256xf32>
    %c5_71 = arith.constant 5 : index
    %c0_72 = arith.constant 0 : index
    %c0_73 = arith.constant 0 : index
    %93 = vector.load %arg8[%c5_71, %c0_72, %c0_73] : memref<9x8x6xf32, #tpu.memory_space<vmem>>, vector<1x8x6xf32>
    %94 = vector.shape_cast %93 : vector<1x8x6xf32> to vector<8x6xf32>
    %95 = vector.extract_strided_slice %66 {offsets = [0, 1280], sizes = [6, 256], strides = [1, 1]} : vector<6x2304xf32> to vector<6x256xf32>
    %cst_74 = arith.constant dense<0.000000e+00> : vector<8x256xf32>
    %96 = tpu.matmul %94, %95, %cst_74 {dimension_numbers = #tpu.dot_dimension_numbers<[1], [0], [0], [1], [0, 0, 1, 1], [], []>} : vector<8x6xf32>, vector<6x256xf32>, vector<8x256xf32> -> vector<8x256xf32>
    %97 = arith.addf %92, %96 : vector<8x256xf32>
    %c6_75 = arith.constant 6 : index
    %c0_76 = arith.constant 0 : index
    %c0_77 = arith.constant 0 : index
    %98 = vector.load %arg8[%c6_75, %c0_76, %c0_77] : memref<9x8x6xf32, #tpu.memory_space<vmem>>, vector<1x8x6xf32>
    %99 = vector.shape_cast %98 : vector<1x8x6xf32> to vector<8x6xf32>
    %100 = vector.extract_strided_slice %66 {offsets = [0, 1536], sizes = [6, 256], strides = [1, 1]} : vector<6x2304xf32> to vector<6x256xf32>
    %cst_78 = arith.constant dense<0.000000e+00> : vector<8x256xf32>
    %101 = tpu.matmul %99, %100, %cst_78 {dimension_numbers = #tpu.dot_dimension_numbers<[1], [0], [0], [1], [0, 0, 1, 1], [], []>} : vector<8x6xf32>, vector<6x256xf32>, vector<8x256xf32> -> vector<8x256xf32>
    %102 = arith.addf %97, %101 : vector<8x256xf32>
    %c7_79 = arith.constant 7 : index
    %c0_80 = arith.constant 0 : index
    %c0_81 = arith.constant 0 : index
    %103 = vector.load %arg8[%c7_79, %c0_80, %c0_81] : memref<9x8x6xf32, #tpu.memory_space<vmem>>, vector<1x8x6xf32>
    %104 = vector.shape_cast %103 : vector<1x8x6xf32> to vector<8x6xf32>
    %105 = vector.extract_strided_slice %66 {offsets = [0, 1792], sizes = [6, 256], strides = [1, 1]} : vector<6x2304xf32> to vector<6x256xf32>
    %cst_82 = arith.constant dense<0.000000e+00> : vector<8x256xf32>
    %106 = tpu.matmul %104, %105, %cst_82 {dimension_numbers = #tpu.dot_dimension_numbers<[1], [0], [0], [1], [0, 0, 1, 1], [], []>} : vector<8x6xf32>, vector<6x256xf32>, vector<8x256xf32> -> vector<8x256xf32>
    %107 = arith.addf %102, %106 : vector<8x256xf32>
    %c8_83 = arith.constant 8 : index
    %c0_84 = arith.constant 0 : index
    %c0_85 = arith.constant 0 : index
    %108 = vector.load %arg8[%c8_83, %c0_84, %c0_85] : memref<9x8x6xf32, #tpu.memory_space<vmem>>, vector<1x8x6xf32>
    %109 = vector.shape_cast %108 : vector<1x8x6xf32> to vector<8x6xf32>
    %110 = vector.extract_strided_slice %66 {offsets = [0, 2048], sizes = [6, 256], strides = [1, 1]} : vector<6x2304xf32> to vector<6x256xf32>
    %cst_86 = arith.constant dense<0.000000e+00> : vector<8x256xf32>
    %111 = tpu.matmul %109, %110, %cst_86 {dimension_numbers = #tpu.dot_dimension_numbers<[1], [0], [0], [1], [0, 0, 1, 1], [], []>} : vector<8x6xf32>, vector<6x256xf32>, vector<8x256xf32> -> vector<8x256xf32>
    %112 = arith.addf %107, %111 : vector<8x256xf32>
    %c1_87 = arith.constant 1 : index
    %c0_88 = arith.constant 0 : index
    %c0_89 = arith.constant 0 : index
    %113 = vector.load %arg10[%c1_87, %c0_88, %c0_89] : memref<3x8x1xf32, #tpu.memory_space<vmem>>, vector<1x8x1xf32>
    %114 = vector.shape_cast %113 : vector<1x8x1xf32> to vector<8x1xf32>
    %115 = vector.broadcast %114 : vector<8x1xf32> to vector<8x256xf32>
    %116 = arith.mulf %112, %115 : vector<8x256xf32>
    %c1_90 = arith.constant 1 : index
    %c0_91 = arith.constant 0 : index
    %c0_92 = arith.constant 0 : index
    %117 = vector.load %arg11[%c1_90, %c0_91, %c0_92] : memref<3x8x1xf32, #tpu.memory_space<vmem>>, vector<1x8x1xf32>
    %118 = vector.shape_cast %117 : vector<1x8x1xf32> to vector<8x1xf32>
    %119 = vector.broadcast %118 : vector<8x1xf32> to vector<8x256xf32>
    %120 = arith.addf %116, %119 : vector<8x256xf32>
    %cst_93 = arith.constant 0.000000e+00 : f32
    %121 = vector.broadcast %cst_93 : f32 to vector<8x256xf32>
    %122 = arith.maximumf %120, %121 : vector<8x256xf32>
    %c0_94 = arith.constant 0 : index
    %c1_95 = arith.constant 1 : index
    %c0_96 = arith.constant 0 : index
    %c0_97 = arith.constant 0 : index
    %123 = vector.load %arg12[%c0_94, %c1_95, %c0_96, %c0_97] : memref<1x3x8x256xf32, #tpu.memory_space<vmem>>, vector<1x1x8x256xf32>
    %124 = vector.shape_cast %123 : vector<1x1x8x256xf32> to vector<8x256xf32>
    %125 = vector.shape_cast %122 : vector<8x256xf32> to vector<1x1x8x256xf32>
    tpu.vector_store %arg12[%c0_94, %c1_95, %c0_96, %c0_97], %125 {strides = array<i32>} : memref<1x3x8x256xf32, #tpu.memory_space<vmem>>, vector<1x1x8x256xf32>,
    %c0_98 = arith.constant 0 : index
    %c0_99 = arith.constant 0 : index
    %c0_100 = arith.constant 0 : index
    %126 = vector.load %arg3[%c0_98, %c0_99, %c0_100] : memref<1x8x288xf32, #tpu.memory_space<vmem>>, vector<1x8x288xf32>
    %127 = vector.shape_cast %126 : vector<1x8x288xf32> to vector<8x288xf32>
    %c0_101 = arith.constant 0 : index
    %c0_102 = arith.constant 0 : index
    %128 = vector.load %arg6[%c0_101, %c0_102] : memref<288x2304xf32, #tpu.memory_space<vmem>>, vector<288x2304xf32>
    %cst_103 = arith.constant dense<0.000000e+00> : vector<8x2304xf32>
    %129 = tpu.matmul %127, %128, %cst_103 {dimension_numbers = #tpu.dot_dimension_numbers<[1], [0], [0], [1], [0, 0, 1, 1], [], []>} : vector<8x288xf32>, vector<288x2304xf32>, vector<8x2304xf32> -> vector<8x2304xf32>
    %cst_104 = arith.constant 0.000000e+00 : f32
    %130 = vector.broadcast %cst_104 : f32 to vector<8x256xf32>
    %c0_105 = arith.constant 0 : index
    %c0_106 = arith.constant 0 : index
    %c0_107 = arith.constant 0 : index
    %131 = vector.load %arg9[%c0_105, %c0_106, %c0_107] : memref<9x8x8xf32, #tpu.memory_space<vmem>>, vector<1x8x8xf32>
    %132 = vector.shape_cast %131 : vector<1x8x8xf32> to vector<8x8xf32>
    %133 = vector.extract_strided_slice %129 {offsets = [0, 0], sizes = [8, 256], strides = [1, 1]} : vector<8x2304xf32> to vector<8x256xf32>
    %cst_108 = arith.constant dense<0.000000e+00> : vector<8x256xf32>
    %134 = tpu.matmul %132, %133, %cst_108 {dimension_numbers = #tpu.dot_dimension_numbers<[1], [0], [0], [1], [0, 0, 1, 1], [], []>} : vector<8x8xf32>, vector<8x256xf32>, vector<8x256xf32> -> vector<8x256xf32>
    %135 = arith.addf %130, %134 : vector<8x256xf32>
    %c1_109 = arith.constant 1 : index
    %c0_110 = arith.constant 0 : index
    %c0_111 = arith.constant 0 : index
    %136 = vector.load %arg9[%c1_109, %c0_110, %c0_111] : memref<9x8x8xf32, #tpu.memory_space<vmem>>, vector<1x8x8xf32>
    %137 = vector.shape_cast %136 : vector<1x8x8xf32> to vector<8x8xf32>
    %138 = vector.extract_strided_slice %129 {offsets = [0, 256], sizes = [8, 256], strides = [1, 1]} : vector<8x2304xf32> to vector<8x256xf32>
    %cst_112 = arith.constant dense<0.000000e+00> : vector<8x256xf32>
    %139 = tpu.matmul %137, %138, %cst_112 {dimension_numbers = #tpu.dot_dimension_numbers<[1], [0], [0], [1], [0, 0, 1, 1], [], []>} : vector<8x8xf32>, vector<8x256xf32>, vector<8x256xf32> -> vector<8x256xf32>
    %140 = arith.addf %135, %139 : vector<8x256xf32>
    %c2_113 = arith.constant 2 : index
    %c0_114 = arith.constant 0 : index
    %c0_115 = arith.constant 0 : index
    %141 = vector.load %arg9[%c2_113, %c0_114, %c0_115] : memref<9x8x8xf32, #tpu.memory_space<vmem>>, vector<1x8x8xf32>
    %142 = vector.shape_cast %141 : vector<1x8x8xf32> to vector<8x8xf32>
    %143 = vector.extract_strided_slice %129 {offsets = [0, 512], sizes = [8, 256], strides = [1, 1]} : vector<8x2304xf32> to vector<8x256xf32>
    %cst_116 = arith.constant dense<0.000000e+00> : vector<8x256xf32>
    %144 = tpu.matmul %142, %143, %cst_116 {dimension_numbers = #tpu.dot_dimension_numbers<[1], [0], [0], [1], [0, 0, 1, 1], [], []>} : vector<8x8xf32>, vector<8x256xf32>, vector<8x256xf32> -> vector<8x256xf32>
    %145 = arith.addf %140, %144 : vector<8x256xf32>
    %c3_117 = arith.constant 3 : index
    %c0_118 = arith.constant 0 : index
    %c0_119 = arith.constant 0 : index
    %146 = vector.load %arg9[%c3_117, %c0_118, %c0_119] : memref<9x8x8xf32, #tpu.memory_space<vmem>>, vector<1x8x8xf32>
    %147 = vector.shape_cast %146 : vector<1x8x8xf32> to vector<8x8xf32>
    %148 = vector.extract_strided_slice %129 {offsets = [0, 768], sizes = [8, 256], strides = [1, 1]} : vector<8x2304xf32> to vector<8x256xf32>
    %cst_120 = arith.constant dense<0.000000e+00> : vector<8x256xf32>
    %149 = tpu.matmul %147, %148, %cst_120 {dimension_numbers = #tpu.dot_dimension_numbers<[1], [0], [0], [1], [0, 0, 1, 1], [], []>} : vector<8x8xf32>, vector<8x256xf32>, vector<8x256xf32> -> vector<8x256xf32>
    %150 = arith.addf %145, %149 : vector<8x256xf32>
    %c4_121 = arith.constant 4 : index
    %c0_122 = arith.constant 0 : index
    %c0_123 = arith.constant 0 : index
    %151 = vector.load %arg9[%c4_121, %c0_122, %c0_123] : memref<9x8x8xf32, #tpu.memory_space<vmem>>, vector<1x8x8xf32>
    %152 = vector.shape_cast %151 : vector<1x8x8xf32> to vector<8x8xf32>
    %153 = vector.extract_strided_slice %129 {offsets = [0, 1024], sizes = [8, 256], strides = [1, 1]} : vector<8x2304xf32> to vector<8x256xf32>
    %cst_124 = arith.constant dense<0.000000e+00> : vector<8x256xf32>
    %154 = tpu.matmul %152, %153, %cst_124 {dimension_numbers = #tpu.dot_dimension_numbers<[1], [0], [0], [1], [0, 0, 1, 1], [], []>} : vector<8x8xf32>, vector<8x256xf32>, vector<8x256xf32> -> vector<8x256xf32>
    %155 = arith.addf %150, %154 : vector<8x256xf32>
    %c5_125 = arith.constant 5 : index
    %c0_126 = arith.constant 0 : index
    %c0_127 = arith.constant 0 : index
    %156 = vector.load %arg9[%c5_125, %c0_126, %c0_127] : memref<9x8x8xf32, #tpu.memory_space<vmem>>, vector<1x8x8xf32>
    %157 = vector.shape_cast %156 : vector<1x8x8xf32> to vector<8x8xf32>
    %158 = vector.extract_strided_slice %129 {offsets = [0, 1280], sizes = [8, 256], strides = [1, 1]} : vector<8x2304xf32> to vector<8x256xf32>
    %cst_128 = arith.constant dense<0.000000e+00> : vector<8x256xf32>
    %159 = tpu.matmul %157, %158, %cst_128 {dimension_numbers = #tpu.dot_dimension_numbers<[1], [0], [0], [1], [0, 0, 1, 1], [], []>} : vector<8x8xf32>, vector<8x256xf32>, vector<8x256xf32> -> vector<8x256xf32>
    %160 = arith.addf %155, %159 : vector<8x256xf32>
    %c6_129 = arith.constant 6 : index
    %c0_130 = arith.constant 0 : index
    %c0_131 = arith.constant 0 : index
    %161 = vector.load %arg9[%c6_129, %c0_130, %c0_131] : memref<9x8x8xf32, #tpu.memory_space<vmem>>, vector<1x8x8xf32>
    %162 = vector.shape_cast %161 : vector<1x8x8xf32> to vector<8x8xf32>
    %163 = vector.extract_strided_slice %129 {offsets = [0, 1536], sizes = [8, 256], strides = [1, 1]} : vector<8x2304xf32> to vector<8x256xf32>
    %cst_132 = arith.constant dense<0.000000e+00> : vector<8x256xf32>
    %164 = tpu.matmul %162, %163, %cst_132 {dimension_numbers = #tpu.dot_dimension_numbers<[1], [0], [0], [1], [0, 0, 1, 1], [], []>} : vector<8x8xf32>, vector<8x256xf32>, vector<8x256xf32> -> vector<8x256xf32>
    %165 = arith.addf %160, %164 : vector<8x256xf32>
    %c7_133 = arith.constant 7 : index
    %c0_134 = arith.constant 0 : index
    %c0_135 = arith.constant 0 : index
    %166 = vector.load %arg9[%c7_133, %c0_134, %c0_135] : memref<9x8x8xf32, #tpu.memory_space<vmem>>, vector<1x8x8xf32>
    %167 = vector.shape_cast %166 : vector<1x8x8xf32> to vector<8x8xf32>
    %168 = vector.extract_strided_slice %129 {offsets = [0, 1792], sizes = [8, 256], strides = [1, 1]} : vector<8x2304xf32> to vector<8x256xf32>
    %cst_136 = arith.constant dense<0.000000e+00> : vector<8x256xf32>
    %169 = tpu.matmul %167, %168, %cst_136 {dimension_numbers = #tpu.dot_dimension_numbers<[1], [0], [0], [1], [0, 0, 1, 1], [], []>} : vector<8x8xf32>, vector<8x256xf32>, vector<8x256xf32> -> vector<8x256xf32>
    %170 = arith.addf %165, %169 : vector<8x256xf32>
    %c8_137 = arith.constant 8 : index
    %c0_138 = arith.constant 0 : index
    %c0_139 = arith.constant 0 : index
    %171 = vector.load %arg9[%c8_137, %c0_138, %c0_139] : memref<9x8x8xf32, #tpu.memory_space<vmem>>, vector<1x8x8xf32>
    %172 = vector.shape_cast %171 : vector<1x8x8xf32> to vector<8x8xf32>
    %173 = vector.extract_strided_slice %129 {offsets = [0, 2048], sizes = [8, 256], strides = [1, 1]} : vector<8x2304xf32> to vector<8x256xf32>
    %cst_140 = arith.constant dense<0.000000e+00> : vector<8x256xf32>
    %174 = tpu.matmul %172, %173, %cst_140 {dimension_numbers = #tpu.dot_dimension_numbers<[1], [0], [0], [1], [0, 0, 1, 1], [], []>} : vector<8x8xf32>, vector<8x256xf32>, vector<8x256xf32> -> vector<8x256xf32>
    %175 = arith.addf %170, %174 : vector<8x256xf32>
    %c2_141 = arith.constant 2 : index
    %c0_142 = arith.constant 0 : index
    %c0_143 = arith.constant 0 : index
    %176 = vector.load %arg10[%c2_141, %c0_142, %c0_143] : memref<3x8x1xf32, #tpu.memory_space<vmem>>, vector<1x8x1xf32>
    %177 = vector.shape_cast %176 : vector<1x8x1xf32> to vector<8x1xf32>
    %178 = vector.broadcast %177 : vector<8x1xf32> to vector<8x256xf32>
    %179 = arith.mulf %175, %178 : vector<8x256xf32>
    %c2_144 = arith.constant 2 : index
    %c0_145 = arith.constant 0 : index
    %c0_146 = arith.constant 0 : index
    %180 = vector.load %arg11[%c2_144, %c0_145, %c0_146] : memref<3x8x1xf32, #tpu.memory_space<vmem>>, vector<1x8x1xf32>
    %181 = vector.shape_cast %180 : vector<1x8x1xf32> to vector<8x1xf32>
    %182 = vector.broadcast %181 : vector<8x1xf32> to vector<8x256xf32>
    %183 = arith.addf %179, %182 : vector<8x256xf32>
    %cst_147 = arith.constant 0.000000e+00 : f32
    %184 = vector.broadcast %cst_147 : f32 to vector<8x256xf32>
    %185 = arith.maximumf %183, %184 : vector<8x256xf32>
    %c0_148 = arith.constant 0 : index
    %c2_149 = arith.constant 2 : index
    %c0_150 = arith.constant 0 : index
    %c0_151 = arith.constant 0 : index
    %186 = vector.load %arg12[%c0_148, %c2_149, %c0_150, %c0_151] : memref<1x3x8x256xf32, #tpu.memory_space<vmem>>, vector<1x1x8x256xf32>
    %187 = vector.shape_cast %186 : vector<1x1x8x256xf32> to vector<8x256xf32>
    %188 = vector.shape_cast %185 : vector<8x256xf32> to vector<1x1x8x256xf32>
    tpu.vector_store %arg12[%c0_148, %c2_149, %c0_150, %c0_151], %188 {strides = array<i32>} : memref<1x3x8x256xf32, #tpu.memory_space<vmem>>, vector<1x1x8x256xf32>,
    return
  }
  func.func @transform_0(%arg0: i32) -> (i32, i32, i32) {
    %c0_i32 = arith.constant 0 : i32
    %c0_i32_0 = arith.constant 0 : i32
    %c0_i32_1 = arith.constant 0 : i32
    return %arg0, %c0_i32, %c0_i32_0 : i32, i32, i32
  }
  func.func @transform_1(%arg0: i32) -> (i32, i32, i32) {
    %c0_i32 = arith.constant 0 : i32
    %c0_i32_0 = arith.constant 0 : i32
    %c0_i32_1 = arith.constant 0 : i32
    return %arg0, %c0_i32, %c0_i32_0 : i32, i32, i32
  }
  func.func @transform_2(%arg0: i32) -> (i32, i32, i32) {
    %c0_i32 = arith.constant 0 : i32
    %c0_i32_0 = arith.constant 0 : i32
    %c0_i32_1 = arith.constant 0 : i32
    return %arg0, %c0_i32, %c0_i32_0 : i32, i32, i32
  }
  func.func @transform_3(%arg0: i32) -> (i32, i32) {
    %c0_i32 = arith.constant 0 : i32
    %c0_i32_0 = arith.constant 0 : i32
    %c0_i32_1 = arith.constant 0 : i32
    return %c0_i32, %c0_i32_0 : i32, i32
  }
  func.func @transform_4(%arg0: i32) -> (i32, i32) {
    %c0_i32 = arith.constant 0 : i32
    %c0_i32_0 = arith.constant 0 : i32
    %c0_i32_1 = arith.constant 0 : i32
    return %c0_i32, %c0_i32_0 : i32, i32
  }
  func.func @transform_5(%arg0: i32) -> (i32, i32) {
    %c0_i32 = arith.constant 0 : i32
    %c0_i32_0 = arith.constant 0 : i32
    %c0_i32_1 = arith.constant 0 : i32
    return %c0_i32, %c0_i32_0 : i32, i32
  }
  func.func @transform_6(%arg0: i32) -> (i32, i32, i32) {
    %c0_i32 = arith.constant 0 : i32
    %c0_i32_0 = arith.constant 0 : i32
    %c0_i32_1 = arith.constant 0 : i32
    %c0_i32_2 = arith.constant 0 : i32
    return %c0_i32, %c0_i32_0, %c0_i32_1 : i32, i32, i32
  }
  func.func @transform_7(%arg0: i32) -> (i32, i32, i32) {
    %c0_i32 = arith.constant 0 : i32
    %c0_i32_0 = arith.constant 0 : i32
    %c0_i32_1 = arith.constant 0 : i32
    %c0_i32_2 = arith.constant 0 : i32
    return %c0_i32, %c0_i32_0, %c0_i32_1 : i32, i32, i32
  }
  func.func @transform_8(%arg0: i32) -> (i32, i32, i32) {
    %c0_i32 = arith.constant 0 : i32
    %c0_i32_0 = arith.constant 0 : i32
    %c0_i32_1 = arith.constant 0 : i32
    %c0_i32_2 = arith.constant 0 : i32
    return %c0_i32, %c0_i32_0, %c0_i32_1 : i32, i32, i32
  }
  func.func @transform_9(%arg0: i32) -> (i32, i32, i32) {
    %c0_i32 = arith.constant 0 : i32
    %c0_i32_0 = arith.constant 0 : i32
    %c0_i32_1 = arith.constant 0 : i32
    %c0_i32_2 = arith.constant 0 : i32
    return %c0_i32, %c0_i32_0, %c0_i32_1 : i32, i32, i32
  }
  func.func @transform_10(%arg0: i32) -> (i32, i32, i32) {
    %c0_i32 = arith.constant 0 : i32
    %c0_i32_0 = arith.constant 0 : i32
    %c0_i32_1 = arith.constant 0 : i32
    %c0_i32_2 = arith.constant 0 : i32
    return %c0_i32, %c0_i32_0, %c0_i32_1 : i32, i32, i32
  }
  func.func @transform_11(%arg0: i32) -> (i32, i32, i32, i32) {
    %c0_i32 = arith.constant 0 : i32
    %c0_i32_0 = arith.constant 0 : i32
    %c0_i32_1 = arith.constant 0 : i32
    %c0_i32_2 = arith.constant 0 : i32
    return %arg0, %c0_i32, %c0_i32_0, %c0_i32_1 : i32, i32, i32, i32
  }
}

</mosaic_0001>

<bundles_post_ra>
// kernel: tpu_custom_call.1
= control target key start
LH: loop header
LB: loop body
LE: loop exit
PB: predicated region body
PF: predicated region fallthrough
CT: control target
= control target key end

     0   :  { %s7961_s0 = inlined_call_operand.hbm [shape: f32[2,4,256], index: 0, kind: input, shape index: {}]   ;;  %s7962_s1 = inlined_call_operand.vmem [shape: f32[2,6,64], index: 1, kind: input, shape index: {}]   ;;  %s7963_s2 = inlined_call_operand.hbm [shape: f32[2,8,288], index: 2, kind: input, shape index: {}]   ;;  %s7964_s3 = inlined_call_operand.hbm [shape: f32[256,2304], index: 3, kind: input, shape index: {}]   ;;  %s7965_s4 = inlined_call_operand.hbm [shape: f32[64,2304], index: 4, kind: input, shape index: {}]   ;;  %s7966_s5 = inlined_call_operand.hbm [shape: f32[288,2304], index: 5, kind: input, shape index: {}]   ;;  %s7967_s6 = inlined_call_operand.vmem [shape: f32[9,8,4], index: 6, kind: input, shape index: {}]   ;;  %s7968_s7 = inlined_call_operand.vmem [shape: f32[9,8,6], index: 7, kind: input, shape index: {}]   ;;  %s7969_s8 = inlined_call_operand.vmem [shape: f32[9,8,8], index: 8, kind: input, shape index: {}]   ;;  %s7970_s9 = inlined_call_operand.vmem [shape: f32[3,8,1], index: 9, kind: input, shape index: {}]   ;;  %s7971_s10 = inlined_call_operand.vmem [shape: f32[3,8,1], index: 10, kind: input, shape index: {}]   ;;  %s7972_s11 = inlined_call_operand.hbm [shape: f32[2,3,8,256], index: 11, kind: output, shape index: {}]  }
   0x1   :  { %7980 = sst [smem:[#allocation20_spill]] %s7961_s0 }
   0x2   :  { %7981 = sst [smem:[#allocation21_spill]] %s7964_s3 }
   0x3   :  { %7982 = sst [smem:[#allocation22_spill]] %s7965_s4 }
   0x4   :  { %7983 = sst [smem:[#allocation23_spill]] %s7966_s5 }
   0x5   :  { %16 = vsyncpa [#allocation3], 0 }
   0x6   :  { %18 = vsyncpa [#allocation3 + $0x1], 0 }
   0x7   :  { %19 = vsyncpa [#allocation6], 0 }
   0x8   :  { %21 = vsyncpa [#allocation6 + $0x1], 0 }
   0x9   :  { %22 = vsyncpa [#allocation9], 0 }
   0xa   :  { %23 = vsyncpa [#allocation4], 0 }
   0xb   :  { %25 = vsyncpa [#allocation4 + $0x1], 0  ;;  %s7380_s17 = smov 0   ;;  %s7382_s18 = smov 0  }
   0xc   :  { %s7384_s19 = smov 0   ;;  %s7386_s20 = smov 0  }
   0xd LB: > { %7984 = sst [smem:[#allocation17_spill]] %s7302_s19  ;;  %s7401_s21 = sadd.s32 4294967295, %s7306_s20   ;;  %s7306_s20 = sphi %s7386_s20, %s8008_s20   ;;  %s7302_s19 = sphi %s7384_s19, %s8010_s19   ;;  %s7298_s18 = sphi %s7382_s18, %s8012_s18   ;;  %s7294_s17 = sphi %s7380_s17, %s8011_s17  }
   0xe   : > { %s6861_s22 = sadd.s32 4294967294, %s7306_s20   ;;  %p51_p0 = scmp.ne.s32.totalorder %s7298_s18, %s7294_s17 }
   0xf   : > { %p7973_p1 = scmp.eq.s32.totalorder %s7401_s21, 0  ;;  %p301_p3 = scmp.eq.s32.totalorder %s6861_s22, 1 }
  0x10   : > { %p6862_p5 = scmp.ge.s32.totalorder %s7306_s20, 1  ;;  %p308_p7 = scmp.lt.s32.totalorder %s7306_s20, 3 }
  0x11   : > { %p7410_p4 = por %p7973_p1, %p51_p0  ;;  %p7415_p6 = por %p301_p3, %p51_p0 }
  0x12   : > { %p7420_p8 = pnand %p6862_p5, %p308_p7  ;;  %s7308_s26 = smov [#allocation7]  }
  0x13   : > { %s7985_s23 = scalar_select %p7410_p4, 1, 0 }
  0x14   : > { %s7986_s24 = scalar_select %p7415_p6, 1, 0 }
  0x15   : > { %s7987_s25 = scalar_select %p7420_p8, 1, 0 }
  0x16   : > { %s320_s27 = sshll.u32 %s7308_s26, 4  ;;  %p7017_p9 = pneg %p7420_p8  ;;  %s321_s27 = int_to_ptr.vmem [resolvable:$true] %s320_s27 }
  0x17   : > { %s7309_s29 = smov [#allocation8]   ;;  %s7310_s12 = smov [#allocation10]  }
  0x18   : > { %p7429_p11 = pnand %p7017_p9, %p7973_p1  ;;  %s333_s30 = sshll.u32 %s7309_s29, 4  ;;  %s334_s30 = int_to_ptr.vmem [resolvable:$true] %s333_s30 }
  0x19   : > { %s346_s13 = sshll.u32 %s7310_s12, 4  ;;  %s7107_s14 = scalar_lea.vmem %s321_s27, 73728  ;;  %s347_s13 = int_to_ptr.vmem [resolvable:$true] %s346_s13 }
  0x1a   : > { %p7098_p12 = pneg %p7429_p11  ;;  %p7108_p13 = scmp.ne.s32.totalorder %s321_s27, %s7107_s14 }
  0x1b   : > { %p7115_p5 = scmp.lt.s32.totalorder %s321_s27, %s321_s27  ;;  %p7116_p7 = scmp.lt.s32.totalorder %s7107_s14, %s7107_s14 }
  0x1c   : > { %p7110_p0 = pnand %p7108_p13, %p7098_p12 }
  0x1d   : > { %p7117_p9 = por %p7116_p7, %p7115_p5 }
  0x1e   : > { %p7111_p3 = pneg %p7110_p0 }
  0x20   : > { %p7118_p10 = pnand %p7117_p9, %p7111_p3 }
  0x22   : > { %7121 = shalt.err (!%p7118_p10)
}
  0x23   : > { %s7311_s15 = smov 2304   ;;  %s7312_s16 = smov 144  }
  0x24   : > { %s7989_s3 = sld [smem:[#allocation21_spill]]  ;;  %s7133_s29 = scalar_lea.vmem %s334_s30, 18432 }
  0x25   : > { %p7134_p1 = scmp.ne.s32.totalorder %s334_s30, %s7133_s29  ;;  %p7141_p2 = scmp.lt.s32.totalorder %s334_s30, %s334_s30 }
  0x26   : > { %p7142_p6 = scmp.lt.s32.totalorder %s7133_s29, %s7133_s29 }
  0x27   : > { %p7136_p13 = pnand %p7134_p1, %p7098_p12 }
  0x28   : > { %p7143_p5 = por %p7142_p6, %p7141_p2 }
  0x29   : > { %p7137_p0 = pneg %p7136_p13 }
  0x2a   : > { %7020 = dma.hbm_to_vmem [thread:$0]  (!%p7429_p11), %s7989_s3, 73728, %s321_s27, [#allocation6], %s7311_s15, %s7311_s15, %s7312_s16  }
  0x2b   : > { %p7144_p3 = pnand %p7143_p5, %p7137_p0 }
  0x2d   : > { %7147 = shalt.err (!%p7144_p3)
}
  0x2e   : > { %s7990_s4 = sld [smem:[#allocation22_spill]]  ;;  %s7159_s27 = scalar_lea.vmem %s347_s13, 82944 }
  0x2f   : > { %p7160_p10 = scmp.ne.s32.totalorder %s347_s13, %s7159_s27  ;;  %p7167_p9 = scmp.lt.s32.totalorder %s347_s13, %s347_s13 }
  0x30   : > { %p7168_p13 = scmp.lt.s32.totalorder %s7159_s27, %s7159_s27 }
  0x31   : > { %p7162_p7 = pnand %p7160_p10, %p7098_p12 }
  0x32   : > { %p7169_p4 = por %p7168_p13, %p7167_p9 }
  0x33   : > { %p7163_p1 = pneg %p7162_p7 }
  0x34   : > { %7023 = dma.hbm_to_vmem [thread:$0]  (!%p7429_p11), %s7990_s4, 18432, %s334_s30, [#allocation9], %s7311_s15, %s7311_s15, %s7312_s16  }
  0x35   : > { %p7170_p2 = pnand %p7169_p4, %p7163_p1 }
  0x37   : > { %7173 = shalt.err (!%p7170_p2)
}
  0x38   : > { %s7991_s5 = sld [smem:[#allocation23_spill]]  ;;  %s7460_s30 = sadd.s32 1, %s7306_s20  }
  0x39   : > { %7992 = sst [smem:[#allocation18_spill]] %s7460_s30  ;;  %s35_s29 = ssub.s32 %s7306_s20, %s7460_s30 }
  0x3a   : > { %s38_s28 = sadd.s32 1, %s7302_s19  ;;  %p36_p4 = scmp.eq.s32.totalorder %s35_s29, 0 }
  0x3b   : > { %p45_p6 = scmp.ne.s32.totalorder %s7302_s19, %s7298_s18  ;;  %p46_p12 = scmp.eq.s32.totalorder %s7306_s20, 0 }
  0x3c   : > { %p7041_p0 = scmp.lt.s32.totalorder %s7306_s20, 2  ;;  %p7994_p3 = scmp.eq.s32.totalorder %s7401_s21, 1 }
  0x3d   : > { %s7470_s12 = scalar_select %p36_p4, %s7302_s19, %s38_s28  }
  0x3e   : > { %7026 = dma.hbm_to_vmem [thread:$0]  (!%p7429_p11), %s7991_s5, 82944, %s347_s13, [#allocation9], %s7311_s15, %s7311_s15, %s7312_s16  }
  0x3f   : > { %7993 = sst [smem:[#allocation19_spill]] %s7470_s12  ;;  %p47_p5 = por %p46_p12, %p45_p6 }
  0x40   : > { %p7474_p10 = por %p7994_p3, %p45_p6  ;;  %s7479_s27 = sand.u32 1, %s7302_s19  }
  0x41   : > { %s6993_s13 = sshll.u32 %s7306_s20, 7  ;;  %s6867_s15 = sshll.u32 %s7479_s27, 3 }
  0x42   : > { %s7995_s14 = scalar_select %p7474_p10, 1, 0 }
  0x43   : > { %s7996_s0 = sld [smem:[#allocation20_spill]]  ;;  %s379_s29 = scalar_lea.vmem [#allocation2], %s6867_s15 }
  0x44   : > { %s387_s28 = sshll.u32 %s379_s29, 4  ;;  %p7488_p11 = pnand %p7041_p0, %p47_p5  ;;  %s388_s28 = int_to_ptr.vmem [resolvable:$true] %s387_s28 }
  0x45   : > { %s376_s5 = scalar_lea.sflag [#allocation3], %s7479_s27 }
  0x46   : > { %p7176_p1 = pneg %p7488_p11 }
  0x49   : > { %s7486_s26 = scalar_lea.hbm %s7996_s0, %s6993_s13  ;;  %s7179_s16 = scalar_lea.hbm %s7996_s0, 256 }
  0x4a   : > { %s7174_s12 = scalar_lea.hbm %s7486_s26, 128  ;;  %p7180_p2 = scmp.lt.s32.totalorder %s7486_s26, %s7996_s0 }
  0x4b   : > { %p7175_p7 = scmp.ne.s32.totalorder %s7486_s26, %s7174_s12  ;;  %p7181_p4 = scmp.lt.s32.totalorder %s7179_s16, %s7174_s12 }
  0x4d   : > { %p7177_p9 = pnand %p7176_p1, %p7175_p7  ;;  %p7182_p6 = por %p7181_p4, %p7180_p2 }
  0x4f   : > { %p7178_p13 = pneg %p7177_p9 }
  0x51   : > { %p7183_p12 = pnand %p7182_p6, %p7178_p13 }
  0x53   : > { %7186 = shalt.err (!%p7183_p12)
}
  0x54   : > { %s7187_s4 = scalar_lea.vmem %s388_s28, 128  ;;  %s7313_s19 = smov [#allocation2]  }
  0x55   : > { %p7188_p0 = scmp.ne.s32.totalorder %s388_s28, %s7187_s4  ;;  %s7192_s30 = sshll.u32 %s7313_s19, 4  ;;  %s7193_s30 = int_to_ptr.vmem [resolvable:$false] %s7192_s30 }
  0x56   : > { %s7194_s13 = scalar_lea.vmem %s7193_s30, 256  ;;  %p7195_p7 = scmp.lt.s32.totalorder %s388_s28, %s7193_s30 }
  0x57   : > { %p7190_p5 = pnand %p7188_p0, %p7176_p1  ;;  %p7196_p9 = scmp.lt.s32.totalorder %s7194_s13, %s7187_s4 }
  0x59   : > { %p7191_p3 = pneg %p7190_p5  ;;  %p7197_p10 = por %p7196_p9, %p7195_p7 }
  0x5b   : > { %p7198_p8 = pnand %p7197_p10, %p7191_p3 }
  0x5d   : > { %7201 = shalt.err (!%p7198_p8)
}
  0x5e   : > { %7030 = dma.hbm_to_vmem [thread:$0]  (!%p7488_p11), %s7486_s26, 128, %s388_s28, %s376_s5  }
  0x5f   : > { %s6994_s12 = smul.u32 24, %s7479_s27  ;;  %s7998_s29 = sand.u32 1, %s7306_s20  }
  0x60   : > { %s6995_s15 = smul.u32 384, %s7306_s20  ;;  %s402_s13 = scalar_lea.sflag [#allocation6], %s7998_s29 }
  0x61   : > { %s405_s4 = scalar_lea.vmem [#allocation5], %s6994_s12  ;;  %s7207_s26 = scalar_lea.hbm %s7963_s2, 768 }
  0x62   : > { %s7519_s19 = scalar_lea.hbm %s7963_s2, %s6995_s15  ;;  %s413_s30 = sshll.u32 %s405_s4, 4  ;;  %s414_s30 = int_to_ptr.vmem [resolvable:$true] %s413_s30 }
  0x63   : > { %s7202_s0 = scalar_lea.hbm %s7519_s19, 384  ;;  %p7208_p2 = scmp.lt.s32.totalorder %s7519_s19, %s7963_s2 }
  0x64   : > { %p7203_p8 = scmp.ne.s32.totalorder %s7519_s19, %s7202_s0  ;;  %p7209_p4 = scmp.lt.s32.totalorder %s7207_s26, %s7202_s0 }
  0x66   : > { %p7205_p10 = pnand %p7203_p8, %p7176_p1  ;;  %p7210_p6 = por %p7209_p4, %p7208_p2 }
  0x68   : > { %p7206_p13 = pneg %p7205_p10 }
  0x6a   : > { %p7211_p12 = pnand %p7210_p6, %p7206_p13 }
  0x6c   : > { %7214 = shalt.err (!%p7211_p12)
}
  0x6d   : > { %s7215_s12 = scalar_lea.vmem %s414_s30, 384  ;;  %s7314_s16 = smov [#allocation5]  }
  0x6e   : > { %p7216_p0 = scmp.ne.s32.totalorder %s414_s30, %s7215_s12  ;;  %s7220_s22 = sshll.u32 %s7314_s16, 4  ;;  %s7221_s22 = int_to_ptr.vmem [resolvable:$false] %s7220_s22 }
  0x6f   : > { %s7222_s4 = scalar_lea.vmem %s7221_s22, 768  ;;  %p7223_p7 = scmp.lt.s32.totalorder %s414_s30, %s7221_s22 }
  0x70   : > { %p7218_p5 = pnand %p7216_p0, %p7176_p1  ;;  %p7224_p9 = scmp.lt.s32.totalorder %s7222_s4, %s7215_s12 }
  0x72   : > { %p7219_p3 = pneg %p7218_p5  ;;  %p7225_p8 = por %p7224_p9, %p7223_p7 }
  0x74   : > { %p7226_p10 = pnand %p7225_p8, %p7219_p3 }
  0x76   : > { %7229 = shalt.err (!%p7226_p10)
}
  0x77   : > { %7033 = dma.hbm_to_vmem [thread:$0]  (!%p7488_p11), %s7519_s19, 384, %s414_s30, %s402_s13  }
  0x78   : > { %p7999_p13 = scmp.ne.s32.totalorder %s7987_s25, 0 }
  0x79   : > { %s7544_s0 = sand.u32 (!%p7999_p13), 1, %s7298_s18   ;;  %p8000_p1 = scmp.ne.s32.totalorder (!%p7999_p13), %s7985_s23, 0 }
  0x7a   : > { %422 = sbr.rel (%p7999_p13) target bundleno = 1718 (0x6b6), region = 64  ;;  %s6872_s29 = sshll.u32 (!%p7999_p13), %s7544_s0, 3 }
  0x7b   : > { %s425_s5 = scalar_lea.sflag (!%p7999_p13), [#allocation3], %s7544_s0  ;;  %s7548_s27 = scalar_lea.vmem (!%p7999_p13), [#allocation2], %s6872_s29 }
  0x7f   : > { %7273 = dma.done.wait (%p8000_p1), %s425_s5, 128  }
  0x80   : > { %7275 = vsyncadd (%p8000_p1), %s425_s5, 4294967168  ;;  %s433_s3 = sand.u32 1, %s7401_s21   ;;  %s6996_s25 = smul.u32 24, %s7544_s0 }
  0x81   : > { %s434_s19 = scalar_lea.sflag [#allocation6], %s433_s3 }
  0x82   : > { %s7556_s30 = scalar_lea.vmem [#allocation5], %s6996_s25 }
  0x83   : > { %7277 = dma.done.wait (%p8000_p1), %s434_s19, 384  }
  0x84   : > { %7279 = vsyncadd (%p8000_p1), %s434_s19, 4294966912  ;;  %p8001_p11 = scmp.eq.s32.totalorder %s7401_s21, 0 }
  0x86   : > { %7281 = dma.done.wait (%p8001_p11), [#allocation6], 73728   ;;  %p8002_p2 = pmov %p8001_p11 }
  0x88   : > { %7283 = vsyncadd (%p8002_p2), [#allocation6], 4294893568  ;;  %p8003_p4 = pmov %p8002_p2 }
  0x89   : > { %p8004_p6 = pmov %p8002_p2 }
  0x8a   : > { %7285 = dma.done.wait (%p8003_p4), [#allocation9], 101376  }
  0x8b   : > { %7287 = vsyncadd (%p8004_p6), [#allocation9], 4294865920  ;;  %v773_v0 = vld [vmem:[#allocation7 + $0x878] sm:$0xff]  ;;  %v775_v1 = vld [vmem:[#allocation7 + $0x888] sm:$0xff]  ;;  %vm1727_vm0 = vcmask 1043456   ;;  %vm1723_vm1 = vcmask 31744  }
  0x8c   : > { %v772_v2 = vld [vmem:[#allocation7 + $0x870] sm:$0xff]  ;;  %1081 = vmatprep.subr.mxu0 %v773_v0  ;;  %1152 = vmatprep.subr.mxu1 %v775_v1  ;;  %v774_v3 = vld [vmem:[#allocation7 + $0x880] sm:$0xff]  ;;  %v755_v4 = vld [vmem:[#allocation7 + $0x7e8] sm:$0xff]  ;;  %p497_p12 = scmp.lt.s32.totalorder %s7401_s21, 1  ;;  %vm2638_vm2 = vcmask 523264   ;;  %s6997_s19 = smul.u32 48, %s7544_s0 }
  0x8d   : > { %v757_v5 = vld [vmem:[#allocation7 + $0x7f8] sm:$0xff]  ;;  %1082 = vmatpush1.msra.mxu0 %v772_v2  ;;  %1153 = vmatpush1.msra.mxu1 %v774_v3  ;;  %v754_v6 = vld [vmem:[#allocation7 + $0x7e0] sm:$0xff]  ;;  %v756_v7 = vld [vmem:[#allocation7 + $0x7f0] sm:$0xff]  ;;  %vm3288_vm3 = vcmask 1045504   ;;  %vm3284_vm4 = vcmask 48128   ;;  %vm4708_vm5 = vcmask 261120  }
  0x8e   : > { %v737_v8 = vld [vmem:[#allocation7 + $0x758] sm:$0xff]  ;;  %1083 = vmatprep.subr.mxu0 %v755_v4  ;;  %1154 = vmatprep.subr.mxu1 %v757_v5  ;;  %v739_v9 = vld [vmem:[#allocation7 + $0x768] sm:$0xff]  ;;  %v736_v10 = vld [vmem:[#allocation7 + $0x750] sm:$0xff]  ;;  %s498_s3 = scalar_select %p497_p12, %s7401_s21, 1  ;;  %vm5993_vm6 = vcmask 64512  }
  0x8f   : > { %v738_v11 = vld [vmem:[#allocation7 + $0x760] sm:$0xff]  ;;  %1084 = vmatpush1.msra.mxu0 %v754_v6  ;;  %1155 = vmatpush1.msra.mxu1 %v756_v7  ;;  %v719_v12 = vld [vmem:[#allocation7 + $0x6c8] sm:$0xff]  ;;  %v721_v13 = vld [vmem:[#allocation7 + $0x6d8] sm:$0xff]  ;;  %s7709_s23 = scalar_lea.vmem [#allocation11], %s6997_s19  ;;  %s6998_s19 = smul.u32 768, %s7401_s21 }
  0x90   : > { %1085 = vmatprep.subr.mxu0 %v737_v8  ;;  %1156 = vmatprep.subr.mxu1 %v739_v9  ;;  %v718_v14 = vld [vmem:[#allocation7 + $0x6c0] sm:$0xff]  ;;  %v720_v15 = vld [vmem:[#allocation7 + $0x6d0] sm:$0xff]  ;;  %v701_v16 = vld [vmem:[#allocation7 + $0x638] sm:$0xff]  ;;  %s6876_s25 = sshll.u32 %s498_s3, 3  ;;  %s6712_s15 = scalar_lea.sflag [#allocation4], %s7544_s0 }
  0x91   : > { %1086 = vmatpush1.msra.mxu0 %v736_v10  ;;  %1157 = vmatpush1.msra.mxu1 %v738_v11  ;;  %v703_v17 = vld [vmem:[#allocation7 + $0x648] sm:$0xff]  ;;  %v700_v18 = vld [vmem:[#allocation7 + $0x630] sm:$0xff]  ;;  %v702_v19 = vld [vmem:[#allocation7 + $0x640] sm:$0xff]  ;;  %s500_s13 = scalar_lea.vmem %s7962_s1, %s6876_s25  ;;  %s6725_s25 = sshll.u32 %s7709_s23, 4  ;;  %s7911_s25 = int_to_ptr.vmem [resolvable:$true] %s6725_s25 }
  0x92   : > { %1087 = vmatprep.subr.mxu0 %v719_v12  ;;  %1158 = vmatprep.subr.mxu1 %v721_v13  ;;  %v683_v20 = vld [vmem:[#allocation7 + $0x5a8] sm:$0xff]  ;;  %v685_v21 = vld [vmem:[#allocation7 + $0x5b8] sm:$0xff]  ;;  %v682_v22 = vld [vmem:[#allocation7 + $0x5a0] sm:$0xff]  ;;  %s7916_s28 = scalar_lea.hbm %s7972_s11, %s6998_s19  ;;  %s7230_s21 = scalar_lea.vmem %s7911_s25, 768 }
  0x93   : > { %1088 = vmatpush1.msra.mxu0 %v718_v14  ;;  %1159 = vmatpush1.msra.mxu1 %v720_v15  ;;  %v684_v23 = vld [vmem:[#allocation7 + $0x5b0] sm:$0xff]  ;;  %v665_v24 = vld [vmem:[#allocation7 + $0x518] sm:$0xff]  ;;  %v667_v25 = vld [vmem:[#allocation7 + $0x528] sm:$0xff]  ;;  %p7231_p0 = scmp.ne.s32.totalorder %s7911_s25, %s7230_s21  ;;  %p8005_p5 = scmp.ne.s32.totalorder %s7995_s14, 0 }
  0x94   : > { %1089 = vmatprep.subr.mxu0 %v701_v16  ;;  %1160 = vmatprep.subr.mxu1 %v703_v17  ;;  %v664_v26 = vld [vmem:[#allocation7 + $0x510] sm:$0xff]  ;;  %v666_v27 = vld [vmem:[#allocation7 + $0x520] sm:$0xff]  ;;  %v647_v28 = vld [vmem:[#allocation7 + $0x488] sm:$0xff]  ;;  %s7317_s12 = smov [#allocation11]  }
  0x95   : > { %1090 = vmatpush1.msra.mxu0 %v700_v18  ;;  %1161 = vmatpush1.msra.mxu1 %v702_v19  ;;  %v649_v29 = vld [vmem:[#allocation7 + $0x498] sm:$0xff]  ;;  %v646_v30 = vld [vmem:[#allocation7 + $0x480] sm:$0xff]  ;;  %v648_v31 = vld [vmem:[#allocation7 + $0x490] sm:$0xff]  ;;  %p7232_p3 = pnand %p7231_p0, %p8005_p5  ;;  %s7234_s16 = sshll.u32 %s7317_s12, 4  ;;  %s7235_s16 = int_to_ptr.vmem [resolvable:$false] %s7234_s16 }
  0x96   : > { %1091 = vmatprep.subr.mxu0 %v683_v20  ;;  %1162 = vmatprep.subr.mxu1 %v685_v21  ;;  %v629_v32 = vld [vmem:[#allocation7 + $0x3f8] sm:$0xff]  ;;  %v631_v33 = vld [vmem:[#allocation7 + $0x408] sm:$0xff]  ;;  %v628_v34 = vld [vmem:[#allocation7 + $0x3f0] sm:$0xff]  ;;  %s7236_s22 = scalar_lea.vmem %s7235_s16, 1536  ;;  %p7237_p9 = scmp.lt.s32.totalorder %s7911_s25, %s7235_s16 }
  0x97   : > { %1092 = vmatpush1.msra.mxu0 %v682_v22  ;;  %1163 = vmatpush1.msra.mxu1 %v684_v23  ;;  %v630_v35 = vld [vmem:[#allocation7 + $0x400] sm:$0xff]  ;;  %v611_v36 = vld [vmem:[#allocation7 + $0x368] sm:$0xff]  ;;  %v613_v37 = vld [vmem:[#allocation7 + $0x378] sm:$0xff]  ;;  %p7233_p7 = pneg %p7232_p3  ;;  %p7238_p8 = scmp.lt.s32.totalorder %s7236_s22, %s7230_s21 }
  0x98   : > { %1093 = vmatprep.subr.mxu0 %v665_v24  ;;  %1164 = vmatprep.subr.mxu1 %v667_v25  ;;  %v610_v38 = vld [vmem:[#allocation7 + $0x360] sm:$0xff]  ;;  %v612_v39 = vld [vmem:[#allocation7 + $0x370] sm:$0xff]  ;;  %v593_v40 = vld [vmem:[#allocation7 + $0x2d8] sm:$0xff] }
  0x99   : > { %1094 = vmatpush1.msra.mxu0 %v664_v26  ;;  %1165 = vmatpush1.msra.mxu1 %v666_v27  ;;  %v595_v41 = vld [vmem:[#allocation7 + $0x2e8] sm:$0xff]  ;;  %v592_v42 = vld [vmem:[#allocation7 + $0x2d0] sm:$0xff]  ;;  %v594_v43 = vld [vmem:[#allocation7 + $0x2e0] sm:$0xff]  ;;  %p7239_p10 = por %p7238_p8, %p7237_p9 }
  0x9a   : > { %1095 = vmatprep.subr.mxu0 %v647_v28  ;;  %1166 = vmatprep.subr.mxu1 %v649_v29  ;;  %v575_v44 = vld [vmem:[#allocation7 + $0x248] sm:$0xff]  ;;  %v577_v45 = vld [vmem:[#allocation7 + $0x258] sm:$0xff]  ;;  %v574_v46 = vld [vmem:[#allocation7 + $0x240] sm:$0xff] }
  0x9b   : > { %1096 = vmatpush1.msra.mxu0 %v646_v30  ;;  %1167 = vmatpush1.msra.mxu1 %v648_v31  ;;  %v576_v47 = vld [vmem:[#allocation7 + $0x250] sm:$0xff]  ;;  %v557_v48 = vld [vmem:[#allocation7 + $0x1b8] sm:$0xff]  ;;  %v559_v49 = vld [vmem:[#allocation7 + $0x1c8] sm:$0xff]  ;;  %p7240_p13 = pnand %p7239_p10, %p7233_p7 }
  0x9c   : > { %1097 = vmatprep.subr.mxu0 %v629_v32  ;;  %1168 = vmatprep.subr.mxu1 %v631_v33  ;;  %v556_v50 = vld [vmem:[#allocation7 + $0x1b0] sm:$0xff]  ;;  %v558_v51 = vld [vmem:[#allocation7 + $0x1c0] sm:$0xff]  ;;  %v539_v52 = vld [vmem:[#allocation7 + $0x128] sm:$0xff] }
  0x9d   : > { %1098 = vmatpush1.msra.mxu0 %v628_v34  ;;  %1169 = vmatpush1.msra.mxu1 %v630_v35  ;;  %v541_v53 = vld [vmem:[#allocation7 + $0x138] sm:$0xff]  ;;  %v538_v54 = vld [vmem:[#allocation7 + $0x120] sm:$0xff]  ;;  %v540_v55 = vld [vmem:[#allocation7 + $0x130] sm:$0xff] }
  0x9e   : > { %1099 = vmatprep.subr.mxu0 %v611_v36  ;;  %1170 = vmatprep.subr.mxu1 %v613_v37  ;;  %v521_v56 = vld [vmem:[#allocation7 + $0x98] sm:$0xff]  ;;  %v523_v57 = vld [vmem:[#allocation7 + $0xa8] sm:$0xff]  ;;  %v520_v58 = vld [vmem:[#allocation7 + $0x90] sm:$0xff] }
  0x9f   : > { %1100 = vmatpush1.msra.mxu0 %v610_v38  ;;  %1171 = vmatpush1.msra.mxu1 %v612_v39  ;;  %v522_v59 = vld [vmem:[#allocation7 + $0xa0] sm:$0xff]  ;;  %v503_v60 = vld [vmem:[#allocation7 + $0x8] sm:$0xff]  ;;  %v505_v61 = vld [vmem:[#allocation7 + $0x18] sm:$0xff] }
  0xa0   : > { %1101 = vmatprep.subr.mxu0 %v593_v40  ;;  %1172 = vmatprep.subr.mxu1 %v595_v41  ;;  %v502_v62 = vld [vmem:[#allocation7] sm:$0xff]  ;;  %v504_v63 = vld [vmem:[#allocation7 + $0x10] sm:$0xff]  ;;  %v1061_v0 = vld [vmem:[#allocation7 + $0x1178] sm:$0xff] }
  0xa1   : > { %1102 = vmatpush1.msra.mxu0 %v592_v42  ;;  %1173 = vmatpush1.msra.mxu1 %v594_v43  ;;  %v1063_v1 = vld [vmem:[#allocation7 + $0x1188] sm:$0xff]  ;;  %v1060_v2 = vld [vmem:[#allocation7 + $0x1170] sm:$0xff]  ;;  %v1062_v3 = vld [vmem:[#allocation7 + $0x1180] sm:$0xff] }
  0xa2   : > { %1103 = vmatprep.subr.mxu0 %v575_v44  ;;  %1174 = vmatprep.subr.mxu1 %v577_v45  ;;  %v1043_v4 = vld [vmem:[#allocation7 + $0x10e8] sm:$0xff]  ;;  %v1045_v5 = vld [vmem:[#allocation7 + $0x10f8] sm:$0xff]  ;;  %v1042_v6 = vld [vmem:[#allocation7 + $0x10e0] sm:$0xff] }
  0xa3   : > { %1104 = vmatpush1.msra.mxu0 %v574_v46  ;;  %1175 = vmatpush1.msra.mxu1 %v576_v47  ;;  %v1044_v7 = vld [vmem:[#allocation7 + $0x10f0] sm:$0xff]  ;;  %v1025_v8 = vld [vmem:[#allocation7 + $0x1058] sm:$0xff]  ;;  %v1027_v9 = vld [vmem:[#allocation7 + $0x1068] sm:$0xff] }
  0xa4   : > { %1105 = vmatprep.subr.mxu0 %v557_v48  ;;  %1176 = vmatprep.subr.mxu1 %v559_v49  ;;  %v1024_v10 = vld [vmem:[#allocation7 + $0x1050] sm:$0xff]  ;;  %v1026_v11 = vld [vmem:[#allocation7 + $0x1060] sm:$0xff]  ;;  %v1007_v12 = vld [vmem:[#allocation7 + $0xfc8] sm:$0xff] }
  0xa5   : > { %1106 = vmatpush1.msra.mxu0 %v556_v50  ;;  %1177 = vmatpush1.msra.mxu1 %v558_v51  ;;  %v1009_v13 = vld [vmem:[#allocation7 + $0xfd8] sm:$0xff]  ;;  %v1006_v14 = vld [vmem:[#allocation7 + $0xfc0] sm:$0xff]  ;;  %v1008_v15 = vld [vmem:[#allocation7 + $0xfd0] sm:$0xff] }
  0xa6   : > { %1107 = vmatprep.subr.mxu0 %v539_v52  ;;  %1178 = vmatprep.subr.mxu1 %v541_v53  ;;  %v989_v16 = vld [vmem:[#allocation7 + $0xf38] sm:$0xff]  ;;  %v991_v17 = vld [vmem:[#allocation7 + $0xf48] sm:$0xff]  ;;  %v988_v18 = vld [vmem:[#allocation7 + $0xf30] sm:$0xff] }
  0xa7   : > { %1108 = vmatpush1.msra.mxu0 %v538_v54  ;;  %1179 = vmatpush1.msra.mxu1 %v540_v55  ;;  %v990_v19 = vld [vmem:[#allocation7 + $0xf40] sm:$0xff]  ;;  %v971_v20 = vld [vmem:[#allocation7 + $0xea8] sm:$0xff]  ;;  %v973_v21 = vld [vmem:[#allocation7 + $0xeb8] sm:$0xff] }
  0xa8   : > { %1109 = vmatprep.subr.mxu0 %v521_v56  ;;  %1180 = vmatprep.subr.mxu1 %v523_v57  ;;  %v970_v22 = vld [vmem:[#allocation7 + $0xea0] sm:$0xff]  ;;  %v972_v23 = vld [vmem:[#allocation7 + $0xeb0] sm:$0xff]  ;;  %v953_v24 = vld [vmem:[#allocation7 + $0xe18] sm:$0xff] }
  0xa9   : > { %1110 = vmatpush1.msra.mxu0 %v520_v58  ;;  %1181 = vmatpush1.msra.mxu1 %v522_v59  ;;  %v955_v25 = vld [vmem:[#allocation7 + $0xe28] sm:$0xff]  ;;  %v952_v26 = vld [vmem:[#allocation7 + $0xe10] sm:$0xff]  ;;  %v954_v27 = vld [vmem:[#allocation7 + $0xe20] sm:$0xff] }
  0xaa   : > { %1111 = vmatprep.subr.mxu0 %v503_v60  ;;  %1182 = vmatprep.subr.mxu1 %v505_v61  ;;  %v935_v28 = vld [vmem:[#allocation7 + $0xd88] sm:$0xff]  ;;  %v937_v29 = vld [vmem:[#allocation7 + $0xd98] sm:$0xff]  ;;  %v934_v30 = vld [vmem:[#allocation7 + $0xd80] sm:$0xff] }
  0xab   : > { %1112 = vmatpush1.msra.mxu0 %v502_v62  ;;  %1183 = vmatpush1.msra.mxu1 %v504_v63  ;;  %v936_v31 = vld [vmem:[#allocation7 + $0xd90] sm:$0xff]  ;;  %v917_v32 = vld [vmem:[#allocation7 + $0xcf8] sm:$0xff]  ;;  %v919_v33 = vld [vmem:[#allocation7 + $0xd08] sm:$0xff] }
  0xac   : > { %1113 = vmatprep.subr.mxu0 %v1061_v0  ;;  %1184 = vmatprep.subr.mxu1 %v1063_v1  ;;  %v916_v34 = vld [vmem:[#allocation7 + $0xcf0] sm:$0xff]  ;;  %v918_v35 = vld [vmem:[#allocation7 + $0xd00] sm:$0xff]  ;;  %v899_v36 = vld [vmem:[#allocation7 + $0xc68] sm:$0xff] }
  0xad   : > { %1114 = vmatpush2.msra.mxu0 %v1060_v2  ;;  %1185 = vmatpush2.msra.mxu1 %v1062_v3  ;;  %v901_v37 = vld [vmem:[#allocation7 + $0xc78] sm:$0xff]  ;;  %v898_v38 = vld [vmem:[#allocation7 + $0xc60] sm:$0xff]  ;;  %v900_v39 = vld [vmem:[#allocation7 + $0xc70] sm:$0xff] }
  0xae   : > { %1115 = vmatprep.subr.mxu0 %v1043_v4  ;;  %1186 = vmatprep.subr.mxu1 %v1045_v5  ;;  %v881_v40 = vld [vmem:[#allocation7 + $0xbd8] sm:$0xff]  ;;  %v883_v41 = vld [vmem:[#allocation7 + $0xbe8] sm:$0xff]  ;;  %v880_v42 = vld [vmem:[#allocation7 + $0xbd0] sm:$0xff] }
  0xaf   : > { %1116 = vmatpush2.msra.mxu0 %v1042_v6  ;;  %1187 = vmatpush2.msra.mxu1 %v1044_v7  ;;  %v882_v43 = vld [vmem:[#allocation7 + $0xbe0] sm:$0xff]  ;;  %v863_v44 = vld [vmem:[#allocation7 + $0xb48] sm:$0xff]  ;;  %v865_v45 = vld [vmem:[#allocation7 + $0xb58] sm:$0xff] }
  0xb0   : > { %1117 = vmatprep.subr.mxu0 %v1025_v8  ;;  %1188 = vmatprep.subr.mxu1 %v1027_v9  ;;  %v862_v46 = vld [vmem:[#allocation7 + $0xb40] sm:$0xff]  ;;  %v864_v47 = vld [vmem:[#allocation7 + $0xb50] sm:$0xff]  ;;  %v845_v48 = vld [vmem:[#allocation7 + $0xab8] sm:$0xff] }
  0xb1   : > { %1118 = vmatpush2.msra.mxu0 %v1024_v10  ;;  %1189 = vmatpush2.msra.mxu1 %v1026_v11  ;;  %v847_v49 = vld [vmem:[#allocation7 + $0xac8] sm:$0xff]  ;;  %v844_v50 = vld [vmem:[#allocation7 + $0xab0] sm:$0xff]  ;;  %v846_v51 = vld [vmem:[#allocation7 + $0xac0] sm:$0xff] }
  0xb2   : > { %1119 = vmatprep.subr.mxu0 %v1007_v12  ;;  %1190 = vmatprep.subr.mxu1 %v1009_v13  ;;  %v827_v52 = vld [vmem:[#allocation7 + $0xa28] sm:$0xff]  ;;  %v829_v53 = vld [vmem:[#allocation7 + $0xa38] sm:$0xff]  ;;  %v826_v54 = vld [vmem:[#allocation7 + $0xa20] sm:$0xff] }
  0xb3   : > { %1120 = vmatpush2.msra.mxu0 %v1006_v14  ;;  %1191 = vmatpush2.msra.mxu1 %v1008_v15  ;;  %v828_v55 = vld [vmem:[#allocation7 + $0xa30] sm:$0xff]  ;;  %v7571_v56 = vld [vmem:[%s7548_s27] sm:$0xff]  ;;  %v809_v57 = vld [vmem:[#allocation7 + $0x998] sm:$0xff] }
  0xb4   : > { %1121 = vmatprep.subr.mxu0 %v989_v16  ;;  %1192 = vmatprep.subr.mxu1 %v991_v17  ;;  %v811_v58 = vld [vmem:[#allocation7 + $0x9a8] sm:$0xff]  ;;  %v808_v59 = vld [vmem:[#allocation7 + $0x990] sm:$0xff]  ;;  %v810_v60 = vld [vmem:[#allocation7 + $0x9a0] sm:$0xff]  ;;  %v7575_v63 = vcombine.high %v7571_v56, %v7571_v56 }
  0xb5   : > { %1122 = vmatpush2.msra.mxu0 %v988_v18  ;;  %1193 = vmatpush2.msra.mxu1 %v990_v19  ;;  %v791_v61 = vld [vmem:[#allocation7 + $0x908] sm:$0xff]  ;;  %v793_v62 = vld [vmem:[#allocation7 + $0x918] sm:$0xff]  ;;  %v790_v0 = vld [vmem:[#allocation7 + $0x900] sm:$0xff] }
  0xb6   : > { %1123 = vmatprep.subr.mxu0 %v971_v20  ;;  %1194 = vmatprep.subr.mxu1 %v973_v21  ;;  %v792_v1 = vld [vmem:[#allocation7 + $0x910] sm:$0xff]  ;;  %v777_v2 = vld [vmem:[#allocation7 + $0x898] sm:$0xff]  ;;  %v779_v3 = vld [vmem:[#allocation7 + $0x8a8] sm:$0xff] }
  0xb7   : > { %1124 = vmatpush2.msra.mxu0 %v970_v22  ;;  %1195 = vmatpush2.msra.mxu1 %v972_v23  ;;  %v776_v4 = vld [vmem:[#allocation7 + $0x890] sm:$0xff]  ;;  %v778_v5 = vld [vmem:[#allocation7 + $0x8a0] sm:$0xff]  ;;  %v759_v6 = vld [vmem:[#allocation7 + $0x808] sm:$0xff] }
  0xb8   : > { %1125 = vmatprep.subr.mxu0 %v953_v24  ;;  %1196 = vmatprep.subr.mxu1 %v955_v25  ;;  %v761_v7 = vld [vmem:[#allocation7 + $0x818] sm:$0xff]  ;;  %v758_v8 = vld [vmem:[#allocation7 + $0x800] sm:$0xff]  ;;  %v760_v9 = vld [vmem:[#allocation7 + $0x810] sm:$0xff] }
  0xb9   : > { %1126 = vmatpush2.msra.mxu0 %v952_v26  ;;  %1197 = vmatpush2.msra.mxu1 %v954_v27  ;;  %v741_v10 = vld [vmem:[#allocation7 + $0x778] sm:$0xff]  ;;  %v743_v11 = vld [vmem:[#allocation7 + $0x788] sm:$0xff]  ;;  %v740_v12 = vld [vmem:[#allocation7 + $0x770] sm:$0xff] }
  0xba   : > { %1127 = vmatprep.subr.mxu0 %v935_v28  ;;  %1198 = vmatprep.subr.mxu1 %v937_v29  ;;  %v742_v13 = vld [vmem:[#allocation7 + $0x780] sm:$0xff]  ;;  %v723_v14 = vld [vmem:[#allocation7 + $0x6e8] sm:$0xff]  ;;  %v725_v15 = vld [vmem:[#allocation7 + $0x6f8] sm:$0xff] }
  0xbb   : > { %1128 = vmatpush2.msra.mxu0 %v934_v30  ;;  %1199 = vmatpush2.msra.mxu1 %v936_v31  ;;  %v722_v16 = vld [vmem:[#allocation7 + $0x6e0] sm:$0xff]  ;;  %v724_v17 = vld [vmem:[#allocation7 + $0x6f0] sm:$0xff]  ;;  %v705_v18 = vld [vmem:[#allocation7 + $0x658] sm:$0xff] }
  0xbc   : > { %1129 = vmatprep.subr.mxu0 %v917_v32  ;;  %1200 = vmatprep.subr.mxu1 %v919_v33  ;;  %v707_v19 = vld [vmem:[#allocation7 + $0x668] sm:$0xff]  ;;  %v704_v20 = vld [vmem:[#allocation7 + $0x650] sm:$0xff]  ;;  %v706_v21 = vld [vmem:[#allocation7 + $0x660] sm:$0xff] }
  0xbd   : > { %1130 = vmatpush2.msra.mxu0 %v916_v34  ;;  %1201 = vmatpush2.msra.mxu1 %v918_v35  ;;  %v687_v22 = vld [vmem:[#allocation7 + $0x5c8] sm:$0xff]  ;;  %v689_v23 = vld [vmem:[#allocation7 + $0x5d8] sm:$0xff]  ;;  %v686_v24 = vld [vmem:[#allocation7 + $0x5c0] sm:$0xff] }
  0xbe   : > { %1131 = vmatprep.subr.mxu0 %v899_v36  ;;  %1202 = vmatprep.subr.mxu1 %v901_v37  ;;  %v688_v25 = vld [vmem:[#allocation7 + $0x5d0] sm:$0xff]  ;;  %v669_v26 = vld [vmem:[#allocation7 + $0x538] sm:$0xff]  ;;  %v671_v27 = vld [vmem:[#allocation7 + $0x548] sm:$0xff] }
  0xbf   : > { %1132 = vmatpush2.msra.mxu0 %v898_v38  ;;  %1203 = vmatpush2.msra.mxu1 %v900_v39  ;;  %v668_v28 = vld [vmem:[#allocation7 + $0x530] sm:$0xff]  ;;  %v670_v29 = vld [vmem:[#allocation7 + $0x540] sm:$0xff]  ;;  %v651_v30 = vld [vmem:[#allocation7 + $0x4a8] sm:$0xff] }
  0xc0   : > { %1133 = vmatprep.subr.mxu0 %v881_v40  ;;  %1204 = vmatprep.subr.mxu1 %v883_v41  ;;  %v653_v31 = vld [vmem:[#allocation7 + $0x4b8] sm:$0xff]  ;;  %v650_v32 = vld [vmem:[#allocation7 + $0x4a0] sm:$0xff]  ;;  %v652_v33 = vld [vmem:[#allocation7 + $0x4b0] sm:$0xff] }
  0xc1   : > { %1134 = vmatpush2.msra.mxu0 %v880_v42  ;;  %1205 = vmatpush2.msra.mxu1 %v882_v43  ;;  %v633_v34 = vld [vmem:[#allocation7 + $0x418] sm:$0xff]  ;;  %v635_v35 = vld [vmem:[#allocation7 + $0x428] sm:$0xff]  ;;  %v632_v36 = vld [vmem:[#allocation7 + $0x410] sm:$0xff] }
  0xc2   : > { %1135 = vmatprep.subr.mxu0 %v863_v44  ;;  %1206 = vmatprep.subr.mxu1 %v865_v45  ;;  %v634_v37 = vld [vmem:[#allocation7 + $0x420] sm:$0xff]  ;;  %v615_v38 = vld [vmem:[#allocation7 + $0x388] sm:$0xff]  ;;  %v617_v39 = vld [vmem:[#allocation7 + $0x398] sm:$0xff] }
  0xc3   : > { %1136 = vmatpush2.msra.mxu0 %v862_v46  ;;  %1207 = vmatpush2.msra.mxu1 %v864_v47  ;;  %v614_v40 = vld [vmem:[#allocation7 + $0x380] sm:$0xff]  ;;  %v616_v41 = vld [vmem:[#allocation7 + $0x390] sm:$0xff]  ;;  %v597_v42 = vld [vmem:[#allocation7 + $0x2f8] sm:$0xff] }
  0xc4   : > { %1137 = vmatprep.subr.mxu0 %v845_v48  ;;  %1208 = vmatprep.subr.mxu1 %v847_v49  ;;  %v599_v43 = vld [vmem:[#allocation7 + $0x308] sm:$0xff]  ;;  %v596_v44 = vld [vmem:[#allocation7 + $0x2f0] sm:$0xff]  ;;  %v598_v45 = vld [vmem:[#allocation7 + $0x300] sm:$0xff] }
  0xc5   : > { %1138 = vmatpush2.msra.mxu0 %v844_v50  ;;  %1209 = vmatpush2.msra.mxu1 %v846_v51  ;;  %v579_v46 = vld [vmem:[#allocation7 + $0x268] sm:$0xff]  ;;  %v581_v47 = vld [vmem:[#allocation7 + $0x278] sm:$0xff]  ;;  %v578_v48 = vld [vmem:[#allocation7 + $0x260] sm:$0xff] }
  0xc6   : > { %1139 = vmatprep.subr.mxu0 %v827_v52  ;;  %1210 = vmatprep.subr.mxu1 %v829_v53  ;;  %v580_v49 = vld [vmem:[#allocation7 + $0x270] sm:$0xff]  ;;  %v561_v50 = vld [vmem:[#allocation7 + $0x1d8] sm:$0xff]  ;;  %v563_v51 = vld [vmem:[#allocation7 + $0x1e8] sm:$0xff] }
  0xc7   : > { %1140 = vmatpush2.msra.mxu0 %v826_v54  ;;  %1211 = vmatpush2.msra.mxu1 %v828_v55  ;;  %v560_v52 = vld [vmem:[#allocation7 + $0x1d0] sm:$0xff]  ;;  %v562_v53 = vld [vmem:[#allocation7 + $0x1e0] sm:$0xff]  ;;  %v543_v54 = vld [vmem:[#allocation7 + $0x148] sm:$0xff] }
  0xc8   : > { %1141 = vmatprep.subr.mxu0 %v809_v57  ;;  %1212 = vmatprep.subr.mxu1 %v811_v58  ;;  %v545_v55 = vld [vmem:[#allocation7 + $0x158] sm:$0xff]  ;;  %v542_v57 = vld [vmem:[#allocation7 + $0x140] sm:$0xff]  ;;  %v544_v58 = vld [vmem:[#allocation7 + $0x150] sm:$0xff] }
  0xc9   : > { %1142 = vmatpush2.msra.mxu0 %v808_v59  ;;  %1213 = vmatpush2.msra.mxu1 %v810_v60  ;;  %v525_v59 = vld [vmem:[#allocation7 + $0xb8] sm:$0xff]  ;;  %v527_v60 = vld [vmem:[#allocation7 + $0xc8] sm:$0xff] }
  0xca   : > { %1143 = vmatprep.subr.mxu0 %v791_v61  ;;  %1214 = vmatprep.subr.mxu1 %v793_v62  ;;  %v524_v61 = vld [vmem:[#allocation7 + $0xb0] sm:$0xff]  ;;  %v526_v62 = vld [vmem:[#allocation7 + $0xc0] sm:$0xff] }
  0xcb   : > { %1144 = vmatpush2.msra.mxu0 %v790_v0  ;;  %1145 = vmatprep.mubr.f32.mxu0 %v7575_v63  ;;  %v507_v0 = vld [vmem:[#allocation7 + $0x28] sm:$0xff] }
  0xcc   : > { %1215 = vmatpush2.msra.mxu1 %v792_v1  ;;  %1216 = vmatprep.mubr.f32.mxu1 %v7575_v63  ;;  %v509_v1 = vld [vmem:[#allocation7 + $0x38] sm:$0xff] }
  0xcd   : > { %1146 = vmatmul.mubr.f32.vlgmr.msra.gmra.mxu0 %v7571_v56  ;;  %1217 = vmatmul.mubr.f32.vlgmr.msra.gmra.mxu1 %v7571_v56 }
  0xce   : > { %1223 = vmatprep.subr.mxu0 %v777_v2  ;;  %1294 = vmatprep.subr.mxu1 %v779_v3  ;;  %v506_v2 = vld [vmem:[#allocation7 + $0x20] sm:$0xff]  ;;  %v508_v3 = vld [vmem:[#allocation7 + $0x30] sm:$0xff] }
  0xcf   : > { %1224 = vmatpush1.msra.mxu0 %v776_v4  ;;  %1295 = vmatpush1.msra.mxu1 %v778_v5  ;;  %v1065_v4 = vld [vmem:[#allocation7 + $0x1198] sm:$0xff]  ;;  %v1067_v5 = vld [vmem:[#allocation7 + $0x11a8] sm:$0xff] }
  0xd0   : > { %1225 = vmatprep.subr.mxu0 %v759_v6  ;;  %1296 = vmatprep.subr.mxu1 %v761_v7  ;;  %v1064_v6 = vld [vmem:[#allocation7 + $0x1190] sm:$0xff]  ;;  %v1066_v7 = vld [vmem:[#allocation7 + $0x11a0] sm:$0xff] }
  0xd1   : > { %1226 = vmatpush1.msra.mxu0 %v758_v8  ;;  %1297 = vmatpush1.msra.mxu1 %v760_v9  ;;  %v1047_v8 = vld [vmem:[#allocation7 + $0x1108] sm:$0xff]  ;;  %v1049_v9 = vld [vmem:[#allocation7 + $0x1118] sm:$0xff] }
  0xd2   : > { %1227 = vmatprep.subr.mxu0 %v741_v10  ;;  %1298 = vmatprep.subr.mxu1 %v743_v11  ;;  %v1046_v10 = vld [vmem:[#allocation7 + $0x1100] sm:$0xff]  ;;  %v1048_v11 = vld [vmem:[#allocation7 + $0x1110] sm:$0xff] }
  0xd3   : > { %1228 = vmatpush1.msra.mxu0 %v740_v12  ;;  %1299 = vmatpush1.msra.mxu1 %v742_v13  ;;  %v1029_v12 = vld [vmem:[#allocation7 + $0x1078] sm:$0xff]  ;;  %v1031_v13 = vld [vmem:[#allocation7 + $0x1088] sm:$0xff] }
  0xd4   : > { %1229 = vmatprep.subr.mxu0 %v723_v14  ;;  %1300 = vmatprep.subr.mxu1 %v725_v15  ;;  %v1028_v14 = vld [vmem:[#allocation7 + $0x1070] sm:$0xff]  ;;  %v1030_v15 = vld [vmem:[#allocation7 + $0x1080] sm:$0xff] }
  0xd5   : > { %1230 = vmatpush1.msra.mxu0 %v722_v16  ;;  %1301 = vmatpush1.msra.mxu1 %v724_v17  ;;  %v1011_v16 = vld [vmem:[#allocation7 + $0xfe8] sm:$0xff]  ;;  %v1013_v17 = vld [vmem:[#allocation7 + $0xff8] sm:$0xff] }
  0xd6   : > { %1231 = vmatprep.subr.mxu0 %v705_v18  ;;  %1302 = vmatprep.subr.mxu1 %v707_v19  ;;  %v1010_v18 = vld [vmem:[#allocation7 + $0xfe0] sm:$0xff]  ;;  %v1012_v19 = vld [vmem:[#allocation7 + $0xff0] sm:$0xff] }
  0xd7   : > { %1232 = vmatpush1.msra.mxu0 %v704_v20  ;;  %1303 = vmatpush1.msra.mxu1 %v706_v21  ;;  %v993_v20 = vld [vmem:[#allocation7 + $0xf58] sm:$0xff]  ;;  %v995_v21 = vld [vmem:[#allocation7 + $0xf68] sm:$0xff] }
  0xd8   : > { %1233 = vmatprep.subr.mxu0 %v687_v22  ;;  %1304 = vmatprep.subr.mxu1 %v689_v23  ;;  %v992_v22 = vld [vmem:[#allocation7 + $0xf50] sm:$0xff]  ;;  %v994_v23 = vld [vmem:[#allocation7 + $0xf60] sm:$0xff] }
  0xd9   : > { %1234 = vmatpush1.msra.mxu0 %v686_v24  ;;  %1305 = vmatpush1.msra.mxu1 %v688_v25  ;;  %v975_v24 = vld [vmem:[#allocation7 + $0xec8] sm:$0xff]  ;;  %v977_v25 = vld [vmem:[#allocation7 + $0xed8] sm:$0xff] }
  0xda   : > { %1235 = vmatprep.subr.mxu0 %v669_v26  ;;  %1306 = vmatprep.subr.mxu1 %v671_v27  ;;  %v974_v26 = vld [vmem:[#allocation7 + $0xec0] sm:$0xff]  ;;  %v976_v27 = vld [vmem:[#allocation7 + $0xed0] sm:$0xff] }
  0xdb   : > { %1236 = vmatpush1.msra.mxu0 %v668_v28  ;;  %1307 = vmatpush1.msra.mxu1 %v670_v29  ;;  %v957_v28 = vld [vmem:[#allocation7 + $0xe38] sm:$0xff]  ;;  %v959_v29 = vld [vmem:[#allocation7 + $0xe48] sm:$0xff] }
  0xdc   : > { %1237 = vmatprep.subr.mxu0 %v651_v30  ;;  %1308 = vmatprep.subr.mxu1 %v653_v31  ;;  %v956_v30 = vld [vmem:[#allocation7 + $0xe30] sm:$0xff]  ;;  %v958_v31 = vld [vmem:[#allocation7 + $0xe40] sm:$0xff] }
  0xdd   : > { %1238 = vmatpush1.msra.mxu0 %v650_v32  ;;  %1309 = vmatpush1.msra.mxu1 %v652_v33  ;;  %v939_v32 = vld [vmem:[#allocation7 + $0xda8] sm:$0xff]  ;;  %v941_v33 = vld [vmem:[#allocation7 + $0xdb8] sm:$0xff] }
  0xde   : > { %1239 = vmatprep.subr.mxu0 %v633_v34  ;;  %1310 = vmatprep.subr.mxu1 %v635_v35  ;;  %v938_v34 = vld [vmem:[#allocation7 + $0xda0] sm:$0xff]  ;;  %v940_v35 = vld [vmem:[#allocation7 + $0xdb0] sm:$0xff] }
  0xdf   : > { %1240 = vmatpush1.msra.mxu0 %v632_v36  ;;  %1311 = vmatpush1.msra.mxu1 %v634_v37  ;;  %v921_v36 = vld [vmem:[#allocation7 + $0xd18] sm:$0xff]  ;;  %v923_v37 = vld [vmem:[#allocation7 + $0xd28] sm:$0xff] }
  0xe0   : > { %1241 = vmatprep.subr.mxu0 %v615_v38  ;;  %1312 = vmatprep.subr.mxu1 %v617_v39  ;;  %v920_v38 = vld [vmem:[#allocation7 + $0xd10] sm:$0xff]  ;;  %v922_v39 = vld [vmem:[#allocation7 + $0xd20] sm:$0xff] }
  0xe1   : > { %1242 = vmatpush1.msra.mxu0 %v614_v40  ;;  %1313 = vmatpush1.msra.mxu1 %v616_v41  ;;  %v903_v40 = vld [vmem:[#allocation7 + $0xc88] sm:$0xff]  ;;  %v905_v41 = vld [vmem:[#allocation7 + $0xc98] sm:$0xff] }
  0xe2   : > { %1243 = vmatprep.subr.mxu0 %v597_v42  ;;  %1314 = vmatprep.subr.mxu1 %v599_v43  ;;  %v902_v42 = vld [vmem:[#allocation7 + $0xc80] sm:$0xff]  ;;  %v904_v43 = vld [vmem:[#allocation7 + $0xc90] sm:$0xff] }
  0xe3   : > { %1244 = vmatpush1.msra.mxu0 %v596_v44  ;;  %1315 = vmatpush1.msra.mxu1 %v598_v45  ;;  %v885_v44 = vld [vmem:[#allocation7 + $0xbf8] sm:$0xff]  ;;  %v887_v45 = vld [vmem:[#allocation7 + $0xc08] sm:$0xff] }
  0xe4   : > { %1245 = vmatprep.subr.mxu0 %v579_v46  ;;  %1316 = vmatprep.subr.mxu1 %v581_v47  ;;  %v884_v46 = vld [vmem:[#allocation7 + $0xbf0] sm:$0xff]  ;;  %v886_v47 = vld [vmem:[#allocation7 + $0xc00] sm:$0xff] }
  0xe5   : > { %1246 = vmatpush1.msra.mxu0 %v578_v48  ;;  %1317 = vmatpush1.msra.mxu1 %v580_v49  ;;  %v867_v48 = vld [vmem:[#allocation7 + $0xb68] sm:$0xff]  ;;  %v869_v49 = vld [vmem:[#allocation7 + $0xb78] sm:$0xff] }
  0xe6   : > { %1247 = vmatprep.subr.mxu0 %v561_v50  ;;  %1318 = vmatprep.subr.mxu1 %v563_v51  ;;  %v866_v50 = vld [vmem:[#allocation7 + $0xb60] sm:$0xff]  ;;  %v868_v51 = vld [vmem:[#allocation7 + $0xb70] sm:$0xff] }
  0xe7   : > { %1248 = vmatpush1.msra.mxu0 %v560_v52  ;;  %1319 = vmatpush1.msra.mxu1 %v562_v53  ;;  %v849_v52 = vld [vmem:[#allocation7 + $0xad8] sm:$0xff]  ;;  %v851_v53 = vld [vmem:[#allocation7 + $0xae8] sm:$0xff] }
  0xe8   : > { %1249 = vmatprep.subr.mxu0 %v543_v54  ;;  %1320 = vmatprep.subr.mxu1 %v545_v55  ;;  %v848_v54 = vld [vmem:[#allocation7 + $0xad0] sm:$0xff]  ;;  %v850_v55 = vld [vmem:[#allocation7 + $0xae0] sm:$0xff] }
  0xe9   : > { %1250 = vmatpush1.msra.mxu0 %v542_v57  ;;  %1321 = vmatpush1.msra.mxu1 %v544_v58  ;;  %v831_v57 = vld [vmem:[#allocation7 + $0xa48] sm:$0xff]  ;;  %v833_v58 = vld [vmem:[#allocation7 + $0xa58] sm:$0xff] }
  0xea   : > { %1251 = vmatprep.subr.mxu0 %v525_v59  ;;  %1322 = vmatprep.subr.mxu1 %v527_v60  ;;  %v830_v59 = vld [vmem:[#allocation7 + $0xa40] sm:$0xff]  ;;  %v832_v60 = vld [vmem:[#allocation7 + $0xa50] sm:$0xff] }
  0xeb   : > { %1252 = vmatpush1.msra.mxu0 %v524_v61  ;;  %1323 = vmatpush1.msra.mxu1 %v526_v62  ;;  %v813_v61 = vld [vmem:[#allocation7 + $0x9b8] sm:$0xff]  ;;  %v815_v62 = vld [vmem:[#allocation7 + $0x9c8] sm:$0xff] }
  0xec   : > { %1253 = vmatprep.subr.mxu0 %v507_v0  ;;  %1324 = vmatprep.subr.mxu1 %v509_v1  ;;  %v812_v0 = vld [vmem:[#allocation7 + $0x9b0] sm:$0xff]  ;;  %v795_v1 = vld [vmem:[#allocation7 + $0x928] sm:$0xff] }
  0xed   : > { %1254 = vmatpush1.msra.mxu0 %v506_v2  ;;  %1325 = vmatpush1.msra.mxu1 %v508_v3  ;;  %v814_v2 = vld [vmem:[#allocation7 + $0x9c0] sm:$0xff] }
  0xee   : > { %1255 = vmatprep.subr.mxu0 %v1065_v4  ;;  %1326 = vmatprep.subr.mxu1 %v1067_v5  ;;  %v794_v3 = vld [vmem:[#allocation7 + $0x920] sm:$0xff]  ;;  %v797_v4 = vld [vmem:[#allocation7 + $0x938] sm:$0xff] }
  0xef   : > { %1256 = vmatpush2.msra.mxu0 %v1064_v6  ;;  %1327 = vmatpush2.msra.mxu1 %v1066_v7  ;;  %v781_v5 = vld [vmem:[#allocation7 + $0x8b8] sm:$0xff]  ;;  %v796_v6 = vld [vmem:[#allocation7 + $0x930] sm:$0xff] }
  0xf0   : > { %1257 = vmatprep.subr.mxu0 %v1047_v8  ;;  %1328 = vmatprep.subr.mxu1 %v1049_v9  ;;  %v780_v7 = vld [vmem:[#allocation7 + $0x8b0] sm:$0xff]  ;;  %v763_v8 = vld [vmem:[#allocation7 + $0x828] sm:$0xff] }
  0xf1   : > { %1258 = vmatpush2.msra.mxu0 %v1046_v10  ;;  %1329 = vmatpush2.msra.mxu1 %v1048_v11  ;;  %v783_v9 = vld [vmem:[#allocation7 + $0x8c8] sm:$0xff]  ;;  %v762_v10 = vld [vmem:[#allocation7 + $0x820] sm:$0xff] }
  0xf2   : > { %1259 = vmatprep.subr.mxu0 %v1029_v12  ;;  %1330 = vmatprep.subr.mxu1 %v1031_v13  ;;  %v782_v11 = vld [vmem:[#allocation7 + $0x8c0] sm:$0xff]  ;;  %v745_v12 = vld [vmem:[#allocation7 + $0x798] sm:$0xff] }
  0xf3   : > { %1260 = vmatpush2.msra.mxu0 %v1028_v14  ;;  %1331 = vmatpush2.msra.mxu1 %v1030_v15  ;;  %v765_v13 = vld [vmem:[#allocation7 + $0x838] sm:$0xff]  ;;  %v744_v14 = vld [vmem:[#allocation7 + $0x790] sm:$0xff] }
  0xf4   : > { %1261 = vmatprep.subr.mxu0 %v1011_v16  ;;  %1332 = vmatprep.subr.mxu1 %v1013_v17  ;;  %v764_v15 = vld [vmem:[#allocation7 + $0x830] sm:$0xff]  ;;  %v727_v16 = vld [vmem:[#allocation7 + $0x708] sm:$0xff] }
  0xf5   : > { %1262 = vmatpush2.msra.mxu0 %v1010_v18  ;;  %1333 = vmatpush2.msra.mxu1 %v1012_v19  ;;  %v747_v17 = vld [vmem:[#allocation7 + $0x7a8] sm:$0xff]  ;;  %v726_v18 = vld [vmem:[#allocation7 + $0x700] sm:$0xff] }
  0xf6   : > { %1263 = vmatprep.subr.mxu0 %v993_v20  ;;  %1334 = vmatprep.subr.mxu1 %v995_v21  ;;  %v746_v19 = vld [vmem:[#allocation7 + $0x7a0] sm:$0xff]  ;;  %v709_v20 = vld [vmem:[#allocation7 + $0x678] sm:$0xff] }
  0xf7   : > { %1264 = vmatpush2.msra.mxu0 %v992_v22  ;;  %1335 = vmatpush2.msra.mxu1 %v994_v23  ;;  %v729_v21 = vld [vmem:[#allocation7 + $0x718] sm:$0xff]  ;;  %v708_v22 = vld [vmem:[#allocation7 + $0x670] sm:$0xff] }
  0xf8   : > { %1265 = vmatprep.subr.mxu0 %v975_v24  ;;  %1336 = vmatprep.subr.mxu1 %v977_v25  ;;  %v728_v23 = vld [vmem:[#allocation7 + $0x710] sm:$0xff]  ;;  %v711_v24 = vld [vmem:[#allocation7 + $0x688] sm:$0xff]  ;;  %v690_v25 = vld [vmem:[#allocation7 + $0x5e0] sm:$0xff] }
  0xf9   : > { %1266 = vmatpush2.msra.mxu0 %v974_v26  ;;  %1337 = vmatpush2.msra.mxu1 %v976_v27  ;;  %v710_v26 = vld [vmem:[#allocation7 + $0x680] sm:$0xff]  ;;  %v673_v27 = vld [vmem:[#allocation7 + $0x558] sm:$0xff] }
  0xfa   : > { %1267 = vmatprep.subr.mxu0 %v957_v28  ;;  %1338 = vmatprep.subr.mxu1 %v959_v29  ;;  %v693_v28 = vld [vmem:[#allocation7 + $0x5f8] sm:$0xff]  ;;  %v672_v29 = vld [vmem:[#allocation7 + $0x550] sm:$0xff] }
  0xfb   : > { %1268 = vmatpush2.msra.mxu0 %v956_v30  ;;  %1339 = vmatpush2.msra.mxu1 %v958_v31  ;;  %v692_v30 = vld [vmem:[#allocation7 + $0x5f0] sm:$0xff]  ;;  %v655_v31 = vld [vmem:[#allocation7 + $0x4c8] sm:$0xff] }
  0xfc   : > { %1269 = vmatprep.subr.mxu0 %v939_v32  ;;  %1340 = vmatprep.subr.mxu1 %v941_v33  ;;  %v675_v32 = vld [vmem:[#allocation7 + $0x568] sm:$0xff]  ;;  %v654_v33 = vld [vmem:[#allocation7 + $0x4c0] sm:$0xff] }
  0xfd   : > { %1270 = vmatpush2.msra.mxu0 %v938_v34  ;;  %1341 = vmatpush2.msra.mxu1 %v940_v35  ;;  %v674_v34 = vld [vmem:[#allocation7 + $0x560] sm:$0xff]  ;;  %v637_v35 = vld [vmem:[#allocation7 + $0x438] sm:$0xff] }
  0xfe   : > { %1271 = vmatprep.subr.mxu0 %v921_v36  ;;  %1342 = vmatprep.subr.mxu1 %v923_v37  ;;  %v657_v36 = vld [vmem:[#allocation7 + $0x4d8] sm:$0xff]  ;;  %v636_v37 = vld [vmem:[#allocation7 + $0x430] sm:$0xff] }
  0xff   : > { %1272 = vmatpush2.msra.mxu0 %v920_v38  ;;  %1343 = vmatpush2.msra.mxu1 %v922_v39  ;;  %v656_v38 = vld [vmem:[#allocation7 + $0x4d0] sm:$0xff]  ;;  %v619_v39 = vld [vmem:[#allocation7 + $0x3a8] sm:$0xff] }
 0x100   : > { %1273 = vmatprep.subr.mxu0 %v903_v40  ;;  %1344 = vmatprep.subr.mxu1 %v905_v41  ;;  %v639_v40 = vld [vmem:[#allocation7 + $0x448] sm:$0xff]  ;;  %v618_v41 = vld [vmem:[#allocation7 + $0x3a0] sm:$0xff] }
 0x101   : > { %1274 = vmatpush2.msra.mxu0 %v902_v42  ;;  %1345 = vmatpush2.msra.mxu1 %v904_v43  ;;  %v638_v42 = vld [vmem:[#allocation7 + $0x440] sm:$0xff]  ;;  %v601_v43 = vld [vmem:[#allocation7 + $0x318] sm:$0xff] }
 0x102   : > { %1275 = vmatprep.subr.mxu0 %v885_v44  ;;  %1346 = vmatprep.subr.mxu1 %v887_v45  ;;  %v621_v44 = vld [vmem:[#allocation7 + $0x3b8] sm:$0xff]  ;;  %v600_v45 = vld [vmem:[#allocation7 + $0x310] sm:$0xff] }
 0x103   : > { %1276 = vmatpush2.msra.mxu0 %v884_v46  ;;  %1347 = vmatpush2.msra.mxu1 %v886_v47  ;;  %v620_v46 = vld [vmem:[#allocation7 + $0x3b0] sm:$0xff]  ;;  %v583_v47 = vld [vmem:[#allocation7 + $0x288] sm:$0xff] }
 0x104   : > { %1277 = vmatprep.subr.mxu0 %v867_v48  ;;  %1348 = vmatprep.subr.mxu1 %v869_v49  ;;  %v603_v48 = vld [vmem:[#allocation7 + $0x328] sm:$0xff]  ;;  %v582_v49 = vld [vmem:[#allocation7 + $0x280] sm:$0xff] }
 0x105   : > { %1278 = vmatpush2.msra.mxu0 %v866_v50  ;;  %1349 = vmatpush2.msra.mxu1 %v868_v51  ;;  %v602_v50 = vld [vmem:[#allocation7 + $0x320] sm:$0xff]  ;;  %v565_v51 = vld [vmem:[#allocation7 + $0x1f8] sm:$0xff] }
 0x106   : > { %1279 = vmatprep.subr.mxu0 %v849_v52  ;;  %1350 = vmatprep.subr.mxu1 %v851_v53  ;;  %v585_v52 = vld [vmem:[#allocation7 + $0x298] sm:$0xff]  ;;  %v564_v53 = vld [vmem:[#allocation7 + $0x1f0] sm:$0xff] }
 0x107   : > { %1280 = vmatpush2.msra.mxu0 %v848_v54  ;;  %1351 = vmatpush2.msra.mxu1 %v850_v55  ;;  %v584_v54 = vld [vmem:[#allocation7 + $0x290] sm:$0xff]  ;;  %v547_v55 = vld [vmem:[#allocation7 + $0x168] sm:$0xff] }
 0x108   : > { %1281 = vmatprep.subr.mxu0 %v831_v57  ;;  %1352 = vmatprep.subr.mxu1 %v833_v58  ;;  %v567_v57 = vld [vmem:[#allocation7 + $0x208] sm:$0xff]  ;;  %v546_v58 = vld [vmem:[#allocation7 + $0x160] sm:$0xff] }
 0x109   : > { %1282 = vmatpush2.msra.mxu0 %v830_v59  ;;  %1353 = vmatpush2.msra.mxu1 %v832_v60  ;;  %v566_v59 = vld [vmem:[#allocation7 + $0x200] sm:$0xff]  ;;  %v529_v60 = vld [vmem:[#allocation7 + $0xd8] sm:$0xff] }
 0x10a   : > { %1283 = vmatprep.subr.mxu0 %v813_v61  ;;  %1354 = vmatprep.subr.mxu1 %v815_v62  ;;  %v549_v61 = vld [vmem:[#allocation7 + $0x178] sm:$0xff]  ;;  %v528_v62 = vld [vmem:[#allocation7 + $0xd0] sm:$0xff] }
 0x10b   : > { %1284 = vmatpush2.msra.mxu0 %v812_v0  ;;  %1287 = vmatprep.mubr.f32.mxu0 %v7575_v63  ;;  %v548_v0 = vld [vmem:[#allocation7 + $0x170] sm:$0xff] }
 0x10c   : > { %1285 = vmatprep.subr.mxu0 %v795_v1  ;;  %1355 = vmatpush2.msra.mxu1 %v814_v2  ;;  %v511_v1 = vld [vmem:[#allocation7 + $0x48] sm:$0xff] }
 0x10d   : > { %1286 = vmatpush2.msra.mxu0 %v794_v3  ;;  %1356 = vmatprep.subr.mxu1 %v797_v4  ;;  %v531_v2 = vld [vmem:[#allocation7 + $0xe8] sm:$0xff]  ;;  %v510_v3 = vld [vmem:[#allocation7 + $0x40] sm:$0xff] }
 0x10e   : > { %1288 = vmatmul.mubr.f32.vlgmr.msra.gmra.mxu0 %v7571_v56  ;;  %1365 = vmatprep.subr.mxu0 %v781_v5  ;;  %v530_v4 = vld [vmem:[#allocation7 + $0xe0] sm:$0xff]  ;;  %v1069_v5 = vld [vmem:[#allocation7 + $0x11b8] sm:$0xff] }
 0x10f   : > { %1357 = vmatpush2.msra.mxu1 %v796_v6  ;;  %1366 = vmatpush1.msra.mxu0 %v780_v7  ;;  %v513_v6 = vld [vmem:[#allocation7 + $0x58] sm:$0xff]  ;;  %v1068_v7 = vld [vmem:[#allocation7 + $0x11b0] sm:$0xff] }
 0x110   : > { %1358 = vmatprep.mubr.f32.mxu1 %v7575_v63  ;;  %1367 = vmatprep.subr.mxu0 %v763_v8  ;;  %v512_v8 = vld [vmem:[#allocation7 + $0x50] sm:$0xff] }
 0x111   : > { %1436 = vmatprep.subr.mxu1 %v783_v9  ;;  %1359 = vmatmul.mubr.f32.vlgmr.msra.gmra.mxu1 %v7571_v56  ;;  %v691_v56 = vld [vmem:[#allocation7 + $0x5e8] sm:$0xff] }
 0x112   : > { %1368 = vmatpush1.msra.mxu0 %v762_v10  ;;  %1437 = vmatpush1.msra.mxu1 %v782_v11  ;;  %v1051_v9 = vld [vmem:[#allocation7 + $0x1128] sm:$0xff]  ;;  %v1050_v11 = vld [vmem:[#allocation7 + $0x1120] sm:$0xff] }
 0x113   : > { %1369 = vmatprep.subr.mxu0 %v745_v12  ;;  %1438 = vmatprep.subr.mxu1 %v765_v13  ;;  %v1071_v10 = vld [vmem:[#allocation7 + $0x11c8] sm:$0xff]  ;;  %v1070_v12 = vld [vmem:[#allocation7 + $0x11c0] sm:$0xff]  ;;  %v1033_v13 = vld [vmem:[#allocation7 + $0x1098] sm:$0xff] }
 0x114   : > { %1370 = vmatpush1.msra.mxu0 %v744_v14  ;;  %1439 = vmatpush1.msra.mxu1 %v764_v15  ;;  %v1053_v14 = vld [vmem:[#allocation7 + $0x1138] sm:$0xff]  ;;  %v1032_v15 = vld [vmem:[#allocation7 + $0x1090] sm:$0xff] }
 0x115   : > { %1371 = vmatprep.subr.mxu0 %v727_v16  ;;  %1440 = vmatprep.subr.mxu1 %v747_v17  ;;  %v1052_v16 = vld [vmem:[#allocation7 + $0x1130] sm:$0xff]  ;;  %v1015_v17 = vld [vmem:[#allocation7 + $0x1008] sm:$0xff] }
 0x116   : > { %1372 = vmatpush1.msra.mxu0 %v726_v18  ;;  %1441 = vmatpush1.msra.mxu1 %v746_v19  ;;  %v1035_v18 = vld [vmem:[#allocation7 + $0x10a8] sm:$0xff]  ;;  %v1014_v19 = vld [vmem:[#allocation7 + $0x1000] sm:$0xff] }
 0x117   : > { %1373 = vmatprep.subr.mxu0 %v709_v20  ;;  %1442 = vmatprep.subr.mxu1 %v729_v21  ;;  %v1034_v20 = vld [vmem:[#allocation7 + $0x10a0] sm:$0xff]  ;;  %v997_v21 = vld [vmem:[#allocation7 + $0xf78] sm:$0xff] }
 0x118   : > { %1374 = vmatpush1.msra.mxu0 %v708_v22  ;;  %1443 = vmatpush1.msra.mxu1 %v728_v23  ;;  %v1017_v22 = vld [vmem:[#allocation7 + $0x1018] sm:$0xff]  ;;  %v996_v23 = vld [vmem:[#allocation7 + $0xf70] sm:$0xff] }
 0x119   : > { %1375 = vmatprep.subr.mxu0 %v691_v56  ;;  %1444 = vmatprep.subr.mxu1 %v711_v24  ;;  %v1016_v56 = vld [vmem:[#allocation7 + $0x1010] sm:$0xff]  ;;  %v979_v24 = vld [vmem:[#allocation7 + $0xee8] sm:$0xff] }
 0x11a   : > { %1376 = vmatpush1.msra.mxu0 %v690_v25  ;;  %1445 = vmatpush1.msra.mxu1 %v710_v26  ;;  %v999_v25 = vld [vmem:[#allocation7 + $0xf88] sm:$0xff]  ;;  %v978_v26 = vld [vmem:[#allocation7 + $0xee0] sm:$0xff] }
 0x11b   : > { %1377 = vmatprep.subr.mxu0 %v673_v27  ;;  %1446 = vmatprep.subr.mxu1 %v693_v28  ;;  %v998_v27 = vld [vmem:[#allocation7 + $0xf80] sm:$0xff]  ;;  %v961_v28 = vld [vmem:[#allocation7 + $0xe58] sm:$0xff] }
 0x11c   : > { %1378 = vmatpush1.msra.mxu0 %v672_v29  ;;  %1447 = vmatpush1.msra.mxu1 %v692_v30  ;;  %v981_v29 = vld [vmem:[#allocation7 + $0xef8] sm:$0xff]  ;;  %v960_v30 = vld [vmem:[#allocation7 + $0xe50] sm:$0xff] }
 0x11d   : > { %1379 = vmatprep.subr.mxu0 %v655_v31  ;;  %1448 = vmatprep.subr.mxu1 %v675_v32  ;;  %v980_v31 = vld [vmem:[#allocation7 + $0xef0] sm:$0xff]  ;;  %v943_v32 = vld [vmem:[#allocation7 + $0xdc8] sm:$0xff] }
 0x11e   : > { %1380 = vmatpush1.msra.mxu0 %v654_v33  ;;  %1449 = vmatpush1.msra.mxu1 %v674_v34  ;;  %v963_v33 = vld [vmem:[#allocation7 + $0xe68] sm:$0xff]  ;;  %v942_v34 = vld [vmem:[#allocation7 + $0xdc0] sm:$0xff] }
 0x11f   : > { %1381 = vmatprep.subr.mxu0 %v637_v35  ;;  %1450 = vmatprep.subr.mxu1 %v657_v36  ;;  %v962_v35 = vld [vmem:[#allocation7 + $0xe60] sm:$0xff]  ;;  %v925_v36 = vld [vmem:[#allocation7 + $0xd38] sm:$0xff] }
 0x120   : > { %1382 = vmatpush1.msra.mxu0 %v636_v37  ;;  %1451 = vmatpush1.msra.mxu1 %v656_v38  ;;  %v945_v37 = vld [vmem:[#allocation7 + $0xdd8] sm:$0xff]  ;;  %v924_v38 = vld [vmem:[#allocation7 + $0xd30] sm:$0xff] }
 0x121   : > { %1383 = vmatprep.subr.mxu0 %v619_v39  ;;  %1452 = vmatprep.subr.mxu1 %v639_v40  ;;  %v944_v39 = vld [vmem:[#allocation7 + $0xdd0] sm:$0xff]  ;;  %v907_v40 = vld [vmem:[#allocation7 + $0xca8] sm:$0xff] }
 0x122   : > { %1384 = vmatpush1.msra.mxu0 %v618_v41  ;;  %1453 = vmatpush1.msra.mxu1 %v638_v42  ;;  %v927_v41 = vld [vmem:[#allocation7 + $0xd48] sm:$0xff]  ;;  %v906_v42 = vld [vmem:[#allocation7 + $0xca0] sm:$0xff] }
 0x123   : > { %1385 = vmatprep.subr.mxu0 %v601_v43  ;;  %1454 = vmatprep.subr.mxu1 %v621_v44  ;;  %v926_v43 = vld [vmem:[#allocation7 + $0xd40] sm:$0xff]  ;;  %v889_v44 = vld [vmem:[#allocation7 + $0xc18] sm:$0xff] }
 0x124   : > { %1386 = vmatpush1.msra.mxu0 %v600_v45  ;;  %1455 = vmatpush1.msra.mxu1 %v620_v46  ;;  %v909_v45 = vld [vmem:[#allocation7 + $0xcb8] sm:$0xff]  ;;  %v888_v46 = vld [vmem:[#allocation7 + $0xc10] sm:$0xff] }
 0x125   : > { %1387 = vmatprep.subr.mxu0 %v583_v47  ;;  %1456 = vmatprep.subr.mxu1 %v603_v48  ;;  %v908_v47 = vld [vmem:[#allocation7 + $0xcb0] sm:$0xff]  ;;  %v871_v48 = vld [vmem:[#allocation7 + $0xb88] sm:$0xff] }
 0x126   : > { %1388 = vmatpush1.msra.mxu0 %v582_v49  ;;  %1457 = vmatpush1.msra.mxu1 %v602_v50  ;;  %v891_v49 = vld [vmem:[#allocation7 + $0xc28] sm:$0xff]  ;;  %v870_v50 = vld [vmem:[#allocation7 + $0xb80] sm:$0xff] }
 0x127   : > { %1389 = vmatprep.subr.mxu0 %v565_v51  ;;  %1458 = vmatprep.subr.mxu1 %v585_v52  ;;  %v890_v51 = vld [vmem:[#allocation7 + $0xc20] sm:$0xff]  ;;  %v853_v52 = vld [vmem:[#allocation7 + $0xaf8] sm:$0xff] }
 0x128   : > { %1390 = vmatpush1.msra.mxu0 %v564_v53  ;;  %1459 = vmatpush1.msra.mxu1 %v584_v54  ;;  %v873_v53 = vld [vmem:[#allocation7 + $0xb98] sm:$0xff]  ;;  %v852_v54 = vld [vmem:[#allocation7 + $0xaf0] sm:$0xff] }
 0x129   : > { %1391 = vmatprep.subr.mxu0 %v547_v55  ;;  %1460 = vmatprep.subr.mxu1 %v567_v57  ;;  %v872_v55 = vld [vmem:[#allocation7 + $0xb90] sm:$0xff]  ;;  %v835_v57 = vld [vmem:[#allocation7 + $0xa68] sm:$0xff] }
 0x12a   : > { %1392 = vmatpush1.msra.mxu0 %v546_v58  ;;  %1461 = vmatpush1.msra.mxu1 %v566_v59  ;;  %v855_v58 = vld [vmem:[#allocation7 + $0xb08] sm:$0xff]  ;;  %v834_v59 = vld [vmem:[#allocation7 + $0xa60] sm:$0xff] }
 0x12b   : > { %1393 = vmatprep.subr.mxu0 %v529_v60  ;;  %1462 = vmatprep.subr.mxu1 %v549_v61  ;;  %v854_v60 = vld [vmem:[#allocation7 + $0xb00] sm:$0xff]  ;;  %v817_v61 = vld [vmem:[#allocation7 + $0x9d8] sm:$0xff] }
 0x12c   : > { %1394 = vmatpush1.msra.mxu0 %v528_v62  ;;  %1463 = vmatpush1.msra.mxu1 %v548_v0  ;;  %v837_v62 = vld [vmem:[#allocation7 + $0xa78] sm:$0xff]  ;;  %v816_v0 = vld [vmem:[#allocation7 + $0x9d0] sm:$0xff] }
 0x12d   : > { %1395 = vmatprep.subr.mxu0 %v511_v1  ;;  %1464 = vmatprep.subr.mxu1 %v531_v2  ;;  %v836_v1 = vld [vmem:[#allocation7 + $0xa70] sm:$0xff]  ;;  %v799_v2 = vld [vmem:[#allocation7 + $0x948] sm:$0xff] }
 0x12e   : > { %1396 = vmatpush1.msra.mxu0 %v510_v3  ;;  %1465 = vmatpush1.msra.mxu1 %v530_v4  ;;  %v819_v3 = vld [vmem:[#allocation7 + $0x9e8] sm:$0xff]  ;;  %v798_v4 = vld [vmem:[#allocation7 + $0x940] sm:$0xff] }
 0x12f   : > { %1397 = vmatprep.subr.mxu0 %v1069_v5  ;;  %1466 = vmatprep.subr.mxu1 %v513_v6  ;;  %v818_v5 = vld [vmem:[#allocation7 + $0x9e0] sm:$0xff]  ;;  %v801_v6 = vld [vmem:[#allocation7 + $0x958] sm:$0xff] }
 0x130   : > { %1398 = vmatpush2.msra.mxu0 %v1068_v7  ;;  %1467 = vmatpush1.msra.mxu1 %v512_v8  ;;  %v785_v7 = vld [vmem:[#allocation7 + $0x8d8] sm:$0xff]  ;;  %v800_v8 = vld [vmem:[#allocation7 + $0x950] sm:$0xff] }
 0x131   : > { %1399 = vmatprep.subr.mxu0 %v1051_v9  ;;  %1468 = vmatprep.subr.mxu1 %v1071_v10  ;;  %v784_v9 = vld [vmem:[#allocation7 + $0x8d0] sm:$0xff]  ;;  %v7587_v10 = vld [vmem:[%s7548_s27] sm:$0xff] }
 0x132   : > { %1400 = vmatpush2.msra.mxu0 %v1050_v11  ;;  %1469 = vmatpush2.msra.mxu1 %v1070_v12  ;;  %v767_v11 = vld [vmem:[#allocation7 + $0x848] sm:$0xff] }
 0x133   : > { %1401 = vmatprep.subr.mxu0 %v1033_v13  ;;  %1470 = vmatprep.subr.mxu1 %v1053_v14  ;;  %v787_v12 = vld [vmem:[#allocation7 + $0x8e8] sm:$0xff]  ;;  %v766_v13 = vld [vmem:[#allocation7 + $0x840] sm:$0xff] }
 0x134   : > { %1402 = vmatpush2.msra.mxu0 %v1032_v15  ;;  %1471 = vmatpush2.msra.mxu1 %v1052_v16  ;;  %v786_v14 = vld [vmem:[#allocation7 + $0x8e0] sm:$0xff]  ;;  %v749_v15 = vld [vmem:[#allocation7 + $0x7b8] sm:$0xff] }
 0x135   : > { %1403 = vmatprep.subr.mxu0 %v1015_v17  ;;  %1472 = vmatprep.subr.mxu1 %v1035_v18  ;;  %v769_v16 = vld [vmem:[#allocation7 + $0x858] sm:$0xff]  ;;  %v748_v17 = vld [vmem:[#allocation7 + $0x7b0] sm:$0xff] }
 0x136   : > { %1404 = vmatpush2.msra.mxu0 %v1014_v19  ;;  %1473 = vmatpush2.msra.mxu1 %v1034_v20  ;;  %v768_v18 = vld [vmem:[#allocation7 + $0x850] sm:$0xff]  ;;  %v731_v19 = vld [vmem:[#allocation7 + $0x728] sm:$0xff] }
 0x137   : > { %1405 = vmatprep.subr.mxu0 %v997_v21  ;;  %1474 = vmatprep.subr.mxu1 %v1017_v22  ;;  %v751_v20 = vld [vmem:[#allocation7 + $0x7c8] sm:$0xff]  ;;  %v730_v21 = vld [vmem:[#allocation7 + $0x720] sm:$0xff] }
 0x138   : > { %1406 = vmatpush2.msra.mxu0 %v996_v23  ;;  %1475 = vmatpush2.msra.mxu1 %v1016_v56  ;;  %v750_v22 = vld [vmem:[#allocation7 + $0x7c0] sm:$0xff]  ;;  %v713_v23 = vld [vmem:[#allocation7 + $0x698] sm:$0xff] }
 0x139   : > { %1407 = vmatprep.subr.mxu0 %v979_v24  ;;  %1476 = vmatprep.subr.mxu1 %v999_v25  ;;  %v733_v56 = vld [vmem:[#allocation7 + $0x738] sm:$0xff]  ;;  %v712_v24 = vld [vmem:[#allocation7 + $0x690] sm:$0xff] }
 0x13a   : > { %1408 = vmatpush2.msra.mxu0 %v978_v26  ;;  %1477 = vmatpush2.msra.mxu1 %v998_v27  ;;  %v732_v25 = vld [vmem:[#allocation7 + $0x730] sm:$0xff]  ;;  %v695_v26 = vld [vmem:[#allocation7 + $0x608] sm:$0xff] }
 0x13b   : > { %1409 = vmatprep.subr.mxu0 %v961_v28  ;;  %1478 = vmatprep.subr.mxu1 %v981_v29  ;;  %v715_v27 = vld [vmem:[#allocation7 + $0x6a8] sm:$0xff]  ;;  %v694_v28 = vld [vmem:[#allocation7 + $0x600] sm:$0xff] }
 0x13c   : > { %1410 = vmatpush2.msra.mxu0 %v960_v30  ;;  %1479 = vmatpush2.msra.mxu1 %v980_v31  ;;  %v714_v29 = vld [vmem:[#allocation7 + $0x6a0] sm:$0xff]  ;;  %v677_v30 = vld [vmem:[#allocation7 + $0x578] sm:$0xff] }
 0x13d   : > { %1411 = vmatprep.subr.mxu0 %v943_v32  ;;  %1480 = vmatprep.subr.mxu1 %v963_v33  ;;  %v697_v31 = vld [vmem:[#allocation7 + $0x618] sm:$0xff]  ;;  %v676_v32 = vld [vmem:[#allocation7 + $0x570] sm:$0xff] }
 0x13e   : > { %1412 = vmatpush2.msra.mxu0 %v942_v34  ;;  %1481 = vmatpush2.msra.mxu1 %v962_v35  ;;  %v696_v33 = vld [vmem:[#allocation7 + $0x610] sm:$0xff]  ;;  %v659_v34 = vld [vmem:[#allocation7 + $0x4e8] sm:$0xff] }
 0x13f   : > { %1413 = vmatprep.subr.mxu0 %v925_v36  ;;  %1482 = vmatprep.subr.mxu1 %v945_v37  ;;  %v679_v35 = vld [vmem:[#allocation7 + $0x588] sm:$0xff]  ;;  %v658_v36 = vld [vmem:[#allocation7 + $0x4e0] sm:$0xff] }
 0x140   : > { %1414 = vmatpush2.msra.mxu0 %v924_v38  ;;  %1483 = vmatpush2.msra.mxu1 %v944_v39  ;;  %v678_v37 = vld [vmem:[#allocation7 + $0x580] sm:$0xff]  ;;  %v641_v38 = vld [vmem:[#allocation7 + $0x458] sm:$0xff] }
 0x141   : > { %1415 = vmatprep.subr.mxu0 %v907_v40  ;;  %1484 = vmatprep.subr.mxu1 %v927_v41  ;;  %v661_v39 = vld [vmem:[#allocation7 + $0x4f8] sm:$0xff]  ;;  %v640_v40 = vld [vmem:[#allocation7 + $0x450] sm:$0xff] }
 0x142   : > { %1416 = vmatpush2.msra.mxu0 %v906_v42  ;;  %1485 = vmatpush2.msra.mxu1 %v926_v43  ;;  %v660_v41 = vld [vmem:[#allocation7 + $0x4f0] sm:$0xff]  ;;  %v623_v42 = vld [vmem:[#allocation7 + $0x3c8] sm:$0xff] }
 0x143   : > { %1417 = vmatprep.subr.mxu0 %v889_v44  ;;  %1486 = vmatprep.subr.mxu1 %v909_v45  ;;  %v643_v43 = vld [vmem:[#allocation7 + $0x468] sm:$0xff]  ;;  %v622_v44 = vld [vmem:[#allocation7 + $0x3c0] sm:$0xff] }
 0x144   : > { %1418 = vmatpush2.msra.mxu0 %v888_v46  ;;  %1487 = vmatpush2.msra.mxu1 %v908_v47  ;;  %v642_v45 = vld [vmem:[#allocation7 + $0x460] sm:$0xff]  ;;  %v605_v46 = vld [vmem:[#allocation7 + $0x338] sm:$0xff] }
 0x145   : > { %1419 = vmatprep.subr.mxu0 %v871_v48  ;;  %1488 = vmatprep.subr.mxu1 %v891_v49  ;;  %v625_v47 = vld [vmem:[#allocation7 + $0x3d8] sm:$0xff]  ;;  %v604_v48 = vld [vmem:[#allocation7 + $0x330] sm:$0xff] }
 0x146   : > { %1420 = vmatpush2.msra.mxu0 %v870_v50  ;;  %1489 = vmatpush2.msra.mxu1 %v890_v51  ;;  %v624_v49 = vld [vmem:[#allocation7 + $0x3d0] sm:$0xff]  ;;  %v587_v50 = vld [vmem:[#allocation7 + $0x2a8] sm:$0xff] }
 0x147   : > { %1421 = vmatprep.subr.mxu0 %v853_v52  ;;  %1490 = vmatprep.subr.mxu1 %v873_v53  ;;  %v607_v51 = vld [vmem:[#allocation7 + $0x348] sm:$0xff]  ;;  %v586_v52 = vld [vmem:[#allocation7 + $0x2a0] sm:$0xff] }
 0x148   : > { %1422 = vmatpush2.msra.mxu0 %v852_v54  ;;  %1491 = vmatpush2.msra.mxu1 %v872_v55  ;;  %v606_v53 = vld [vmem:[#allocation7 + $0x340] sm:$0xff]  ;;  %v569_v54 = vld [vmem:[#allocation7 + $0x218] sm:$0xff] }
 0x149   : > { %1423 = vmatprep.subr.mxu0 %v835_v57  ;;  %1492 = vmatprep.subr.mxu1 %v855_v58  ;;  %v589_v55 = vld [vmem:[#allocation7 + $0x2b8] sm:$0xff]  ;;  %v568_v57 = vld [vmem:[#allocation7 + $0x210] sm:$0xff] }
 0x14a   : > { %1424 = vmatpush2.msra.mxu0 %v834_v59  ;;  %1493 = vmatpush2.msra.mxu1 %v854_v60  ;;  %v588_v58 = vld [vmem:[#allocation7 + $0x2b0] sm:$0xff]  ;;  %v551_v59 = vld [vmem:[#allocation7 + $0x188] sm:$0xff] }
 0x14b   : > { %1425 = vmatprep.subr.mxu0 %v817_v61  ;;  %1494 = vmatprep.subr.mxu1 %v837_v62  ;;  %v571_v60 = vld [vmem:[#allocation7 + $0x228] sm:$0xff]  ;;  %v550_v61 = vld [vmem:[#allocation7 + $0x180] sm:$0xff] }
 0x14c   : > { %1426 = vmatpush2.msra.mxu0 %v816_v0  ;;  %1495 = vmatpush2.msra.mxu1 %v836_v1  ;;  %v570_v62 = vld [vmem:[#allocation7 + $0x220] sm:$0xff]  ;;  %v533_v0 = vld [vmem:[#allocation7 + $0xf8] sm:$0xff] }
 0x14d   : > { %1427 = vmatprep.subr.mxu0 %v799_v2  ;;  %1496 = vmatprep.subr.mxu1 %v819_v3  ;;  %v553_v1 = vld [vmem:[#allocation7 + $0x198] sm:$0xff]  ;;  %v532_v2 = vld [vmem:[#allocation7 + $0xf0] sm:$0xff] }
 0x14e   : > { %1428 = vmatpush2.msra.mxu0 %v798_v4  ;;  %1429 = vmatprep.mubr.f32.mxu0 %v7575_v63  ;;  %v552_v3 = vld [vmem:[#allocation7 + $0x190] sm:$0xff]  ;;  %v515_v4 = vld [vmem:[#allocation7 + $0x68] sm:$0xff] }
 0x14f   : > { %1497 = vmatpush2.msra.mxu1 %v818_v5  ;;  %1430 = vmatmul.mubr.f32.vlgmr.msra.gmra.mxu0 %v7587_v10  ;;  %v535_v5 = vld [vmem:[#allocation7 + $0x108] sm:$0xff] }
 0x150   : > { %1498 = vmatprep.subr.mxu1 %v801_v6  ;;  %1507 = vmatprep.subr.mxu0 %v785_v7  ;;  %v514_v6 = vld [vmem:[#allocation7 + $0x60] sm:$0xff] }
 0x151   : > { %1499 = vmatpush2.msra.mxu1 %v800_v8  ;;  %1508 = vmatpush1.msra.mxu0 %v784_v9  ;;  %v534_v7 = vld [vmem:[#allocation7 + $0x100] sm:$0xff]  ;;  %v1073_v8 = vld [vmem:[#allocation7 + $0x11d8] sm:$0xff] }
 0x152   : > { %1500 = vmatprep.mubr.f32.mxu1 %v7575_v63  ;;  %1509 = vmatprep.subr.mxu0 %v767_v11  ;;  %v517_v9 = vld [vmem:[#allocation7 + $0x78] sm:$0xff]  ;;  %v1072_v11 = vld [vmem:[#allocation7 + $0x11d0] sm:$0xff] }
 0x153   : > { %1578 = vmatprep.subr.mxu1 %v787_v12  ;;  %1501 = vmatmul.mubr.f32.vlgmr.msra.gmra.mxu1 %v7587_v10  ;;  %v516_v12 = vld [vmem:[#allocation7 + $0x70] sm:$0xff] }
 0x154   : > { %1510 = vmatpush1.msra.mxu0 %v766_v13  ;;  %1579 = vmatpush1.msra.mxu1 %v786_v14  ;;  %v1055_v13 = vld [vmem:[#allocation7 + $0x1148] sm:$0xff] }
 0x155   : > { %1511 = vmatprep.subr.mxu0 %v749_v15  ;;  %1580 = vmatprep.subr.mxu1 %v769_v16  ;;  %v1075_v14 = vld [vmem:[#allocation7 + $0x11e8] sm:$0xff]  ;;  %v1054_v15 = vld [vmem:[#allocation7 + $0x1140] sm:$0xff] }
 0x156   : > { %1512 = vmatpush1.msra.mxu0 %v748_v17  ;;  %1581 = vmatpush1.msra.mxu1 %v768_v18  ;;  %v1074_v16 = vld [vmem:[#allocation7 + $0x11e0] sm:$0xff]  ;;  %v1037_v17 = vld [vmem:[#allocation7 + $0x10b8] sm:$0xff] }
 0x157   : > { %1513 = vmatprep.subr.mxu0 %v731_v19  ;;  %1582 = vmatprep.subr.mxu1 %v751_v20  ;;  %v1057_v18 = vld [vmem:[#allocation7 + $0x1158] sm:$0xff]  ;;  %v1036_v19 = vld [vmem:[#allocation7 + $0x10b0] sm:$0xff] }
 0x158   : > { %1514 = vmatpush1.msra.mxu0 %v730_v21  ;;  %1583 = vmatpush1.msra.mxu1 %v750_v22  ;;  %v1056_v20 = vld [vmem:[#allocation7 + $0x1150] sm:$0xff]  ;;  %v1019_v21 = vld [vmem:[#allocation7 + $0x1028] sm:$0xff] }
 0x159   : > { %1515 = vmatprep.subr.mxu0 %v713_v23  ;;  %1584 = vmatprep.subr.mxu1 %v733_v56  ;;  %v1039_v22 = vld [vmem:[#allocation7 + $0x10c8] sm:$0xff]  ;;  %v1018_v23 = vld [vmem:[#allocation7 + $0x1020] sm:$0xff] }
 0x15a   : > { %1516 = vmatpush1.msra.mxu0 %v712_v24  ;;  %1585 = vmatpush1.msra.mxu1 %v732_v25  ;;  %v1038_v56 = vld [vmem:[#allocation7 + $0x10c0] sm:$0xff]  ;;  %v1001_v24 = vld [vmem:[#allocation7 + $0xf98] sm:$0xff] }
 0x15b   : > { %1517 = vmatprep.subr.mxu0 %v695_v26  ;;  %1586 = vmatprep.subr.mxu1 %v715_v27  ;;  %v1021_v25 = vld [vmem:[#allocation7 + $0x1038] sm:$0xff]  ;;  %v1000_v26 = vld [vmem:[#allocation7 + $0xf90] sm:$0xff] }
 0x15c   : > { %1518 = vmatpush1.msra.mxu0 %v694_v28  ;;  %1587 = vmatpush1.msra.mxu1 %v714_v29  ;;  %v1020_v27 = vld [vmem:[#allocation7 + $0x1030] sm:$0xff]  ;;  %v983_v28 = vld [vmem:[#allocation7 + $0xf08] sm:$0xff] }
 0x15d   : > { %1519 = vmatprep.subr.mxu0 %v677_v30  ;;  %1588 = vmatprep.subr.mxu1 %v697_v31  ;;  %v1003_v29 = vld [vmem:[#allocation7 + $0xfa8] sm:$0xff]  ;;  %v982_v30 = vld [vmem:[#allocation7 + $0xf00] sm:$0xff] }
 0x15e   : > { %1520 = vmatpush1.msra.mxu0 %v676_v32  ;;  %1589 = vmatpush1.msra.mxu1 %v696_v33  ;;  %v1002_v31 = vld [vmem:[#allocation7 + $0xfa0] sm:$0xff]  ;;  %v965_v32 = vld [vmem:[#allocation7 + $0xe78] sm:$0xff] }
 0x15f   : > { %1521 = vmatprep.subr.mxu0 %v659_v34  ;;  %1590 = vmatprep.subr.mxu1 %v679_v35  ;;  %v985_v33 = vld [vmem:[#allocation7 + $0xf18] sm:$0xff]  ;;  %v964_v34 = vld [vmem:[#allocation7 + $0xe70] sm:$0xff] }
 0x160   : > { %1522 = vmatpush1.msra.mxu0 %v658_v36  ;;  %1591 = vmatpush1.msra.mxu1 %v678_v37  ;;  %v984_v35 = vld [vmem:[#allocation7 + $0xf10] sm:$0xff]  ;;  %v947_v36 = vld [vmem:[#allocation7 + $0xde8] sm:$0xff] }
 0x161   : > { %1523 = vmatprep.subr.mxu0 %v641_v38  ;;  %1592 = vmatprep.subr.mxu1 %v661_v39  ;;  %v967_v37 = vld [vmem:[#allocation7 + $0xe88] sm:$0xff]  ;;  %v946_v38 = vld [vmem:[#allocation7 + $0xde0] sm:$0xff] }
 0x162   : > { %1524 = vmatpush1.msra.mxu0 %v640_v40  ;;  %1593 = vmatpush1.msra.mxu1 %v660_v41  ;;  %v966_v39 = vld [vmem:[#allocation7 + $0xe80] sm:$0xff]  ;;  %v929_v40 = vld [vmem:[#allocation7 + $0xd58] sm:$0xff] }
 0x163   : > { %1525 = vmatprep.subr.mxu0 %v623_v42  ;;  %1594 = vmatprep.subr.mxu1 %v643_v43  ;;  %v949_v41 = vld [vmem:[#allocation7 + $0xdf8] sm:$0xff]  ;;  %v928_v42 = vld [vmem:[#allocation7 + $0xd50] sm:$0xff] }
 0x164   : > { %1526 = vmatpush1.msra.mxu0 %v622_v44  ;;  %1595 = vmatpush1.msra.mxu1 %v642_v45  ;;  %v948_v43 = vld [vmem:[#allocation7 + $0xdf0] sm:$0xff]  ;;  %v911_v44 = vld [vmem:[#allocation7 + $0xcc8] sm:$0xff] }
 0x165   : > { %1527 = vmatprep.subr.mxu0 %v605_v46  ;;  %1596 = vmatprep.subr.mxu1 %v625_v47  ;;  %v931_v45 = vld [vmem:[#allocation7 + $0xd68] sm:$0xff]  ;;  %v910_v46 = vld [vmem:[#allocation7 + $0xcc0] sm:$0xff] }
 0x166   : > { %1528 = vmatpush1.msra.mxu0 %v604_v48  ;;  %1597 = vmatpush1.msra.mxu1 %v624_v49  ;;  %v930_v47 = vld [vmem:[#allocation7 + $0xd60] sm:$0xff]  ;;  %v893_v48 = vld [vmem:[#allocation7 + $0xc38] sm:$0xff] }
 0x167   : > { %1529 = vmatprep.subr.mxu0 %v587_v50  ;;  %1598 = vmatprep.subr.mxu1 %v607_v51  ;;  %v913_v49 = vld [vmem:[#allocation7 + $0xcd8] sm:$0xff]  ;;  %v892_v50 = vld [vmem:[#allocation7 + $0xc30] sm:$0xff] }
 0x168   : > { %1530 = vmatpush1.msra.mxu0 %v586_v52  ;;  %1599 = vmatpush1.msra.mxu1 %v606_v53  ;;  %v912_v51 = vld [vmem:[#allocation7 + $0xcd0] sm:$0xff]  ;;  %v875_v52 = vld [vmem:[#allocation7 + $0xba8] sm:$0xff] }
 0x169   : > { %1531 = vmatprep.subr.mxu0 %v569_v54  ;;  %1600 = vmatprep.subr.mxu1 %v589_v55  ;;  %v895_v53 = vld [vmem:[#allocation7 + $0xc48] sm:$0xff]  ;;  %v874_v54 = vld [vmem:[#allocation7 + $0xba0] sm:$0xff] }
 0x16a   : > { %1532 = vmatpush1.msra.mxu0 %v568_v57  ;;  %1601 = vmatpush1.msra.mxu1 %v588_v58  ;;  %v894_v55 = vld [vmem:[#allocation7 + $0xc40] sm:$0xff]  ;;  %v857_v57 = vld [vmem:[#allocation7 + $0xb18] sm:$0xff] }
 0x16b   : > { %1533 = vmatprep.subr.mxu0 %v551_v59  ;;  %1602 = vmatprep.subr.mxu1 %v571_v60  ;;  %v877_v58 = vld [vmem:[#allocation7 + $0xbb8] sm:$0xff]  ;;  %v856_v59 = vld [vmem:[#allocation7 + $0xb10] sm:$0xff] }
 0x16c   : > { %1534 = vmatpush1.msra.mxu0 %v550_v61  ;;  %1603 = vmatpush1.msra.mxu1 %v570_v62  ;;  %v876_v60 = vld [vmem:[#allocation7 + $0xbb0] sm:$0xff]  ;;  %v839_v61 = vld [vmem:[#allocation7 + $0xa88] sm:$0xff] }
 0x16d   : > { %1535 = vmatprep.subr.mxu0 %v533_v0  ;;  %1604 = vmatprep.subr.mxu1 %v553_v1  ;;  %v859_v62 = vld [vmem:[#allocation7 + $0xb28] sm:$0xff]  ;;  %v838_v0 = vld [vmem:[#allocation7 + $0xa80] sm:$0xff] }
 0x16e   : > { %1536 = vmatpush1.msra.mxu0 %v532_v2  ;;  %1605 = vmatpush1.msra.mxu1 %v552_v3  ;;  %v858_v1 = vld [vmem:[#allocation7 + $0xb20] sm:$0xff]  ;;  %v821_v2 = vld [vmem:[#allocation7 + $0x9f8] sm:$0xff] }
 0x16f   : > { %1537 = vmatprep.subr.mxu0 %v515_v4  ;;  %1606 = vmatprep.subr.mxu1 %v535_v5  ;;  %v841_v3 = vld [vmem:[#allocation7 + $0xa98] sm:$0xff]  ;;  %v820_v4 = vld [vmem:[#allocation7 + $0x9f0] sm:$0xff] }
 0x170   : > { %1538 = vmatpush1.msra.mxu0 %v514_v6  ;;  %1607 = vmatpush1.msra.mxu1 %v534_v7  ;;  %v840_v5 = vld [vmem:[#allocation7 + $0xa90] sm:$0xff]  ;;  %v803_v6 = vld [vmem:[#allocation7 + $0x968] sm:$0xff] }
 0x171   : > { %1539 = vmatprep.subr.mxu0 %v1073_v8  ;;  %1608 = vmatprep.subr.mxu1 %v517_v9  ;;  %v823_v7 = vld [vmem:[#allocation7 + $0xa08] sm:$0xff]  ;;  %v802_v8 = vld [vmem:[#allocation7 + $0x960] sm:$0xff] }
 0x172   : > { %1540 = vmatpush2.msra.mxu0 %v1072_v11  ;;  %1609 = vmatpush1.msra.mxu1 %v516_v12  ;;  %v822_v9 = vld [vmem:[#allocation7 + $0xa00] sm:$0xff]  ;;  %v805_v12 = vld [vmem:[#allocation7 + $0x978] sm:$0xff] }
 0x173   : > { %1541 = vmatprep.subr.mxu0 %v1055_v13  ;;  %1610 = vmatprep.subr.mxu1 %v1075_v14  ;;  %v789_v13 = vld [vmem:[#allocation7 + $0x8f8] sm:$0xff]  ;;  %v804_v14 = vld [vmem:[#allocation7 + $0x970] sm:$0xff] }
 0x174   : > { %1542 = vmatpush2.msra.mxu0 %v1054_v15  ;;  %1611 = vmatpush2.msra.mxu1 %v1074_v16  ;;  %v788_v15 = vld [vmem:[#allocation7 + $0x8f0] sm:$0xff] }
 0x175   : > { %1543 = vmatprep.subr.mxu0 %v1037_v17  ;;  %1612 = vmatprep.subr.mxu1 %v1057_v18  ;;  %v771_v17 = vld [vmem:[#allocation7 + $0x868] sm:$0xff] }
 0x176   : > { %1544 = vmatpush2.msra.mxu0 %v1036_v19  ;;  %1613 = vmatpush2.msra.mxu1 %v1056_v20  ;;  %v770_v19 = vld [vmem:[#allocation7 + $0x860] sm:$0xff]  ;;  %v753_v20 = vld [vmem:[#allocation7 + $0x7d8] sm:$0xff] }
 0x177   : > { %1545 = vmatprep.subr.mxu0 %v1019_v21  ;;  %1614 = vmatprep.subr.mxu1 %v1039_v22  ;;  %v752_v21 = vld [vmem:[#allocation7 + $0x7d0] sm:$0xff]  ;;  %v735_v22 = vld [vmem:[#allocation7 + $0x748] sm:$0xff] }
 0x178   : > { %1546 = vmatpush2.msra.mxu0 %v1018_v23  ;;  %1615 = vmatpush2.msra.mxu1 %v1038_v56  ;;  %v6877_v23 = vld [vmem:[%s7967_s6 + $0x8] sm:$0xff] }
 0x179   : > { %1547 = vmatprep.subr.mxu0 %v1001_v24  ;;  %1616 = vmatprep.subr.mxu1 %v1021_v25  ;;  %v7315_v24 = vmov 0.0   ;;  %v734_v25 = vld [vmem:[#allocation7 + $0x740] sm:$0xff] }
 0x17a   : > { %1548 = vmatpush2.msra.mxu0 %v1000_v26  ;;  %1617 = vmatpush2.msra.mxu1 %v1020_v27  ;;  %v717_v26 = vld [vmem:[#allocation7 + $0x6b8] sm:$0xff]  ;;  %v716_v27 = vld [vmem:[#allocation7 + $0x6b0] sm:$0xff] }
 0x17b   : > { %1549 = vmatprep.subr.mxu0 %v983_v28  ;;  %1618 = vmatprep.subr.mxu1 %v1003_v29  ;;  %v699_v28 = vld [vmem:[#allocation7 + $0x628] sm:$0xff]  ;;  %v1720_v29 = vld [vmem:[%s7967_s6] sm:$0xff] }
 0x17c   : > { %1550 = vmatpush2.msra.mxu0 %v982_v30  ;;  %1619 = vmatpush2.msra.mxu1 %v1002_v31  ;;  %v698_v30 = vld [vmem:[#allocation7 + $0x620] sm:$0xff]  ;;  %v681_v31 = vld [vmem:[#allocation7 + $0x598] sm:$0xff] }
 0x17d   : > { %1551 = vmatprep.subr.mxu0 %v965_v32  ;;  %1620 = vmatprep.subr.mxu1 %v985_v33  ;;  %v680_v32 = vld [vmem:[#allocation7 + $0x590] sm:$0xff]  ;;  %v663_v33 = vld [vmem:[#allocation7 + $0x508] sm:$0xff] }
 0x17e   : > { %1552 = vmatpush2.msra.mxu0 %v964_v34  ;;  %1621 = vmatpush2.msra.mxu1 %v984_v35  ;;  %v662_v34 = vld [vmem:[#allocation7 + $0x500] sm:$0xff]  ;;  %v645_v35 = vld [vmem:[#allocation7 + $0x478] sm:$0xff] }
 0x17f   : > { %1553 = vmatprep.subr.mxu0 %v947_v36  ;;  %1622 = vmatprep.subr.mxu1 %v967_v37  ;;  %v644_v36 = vld [vmem:[#allocation7 + $0x470] sm:$0xff]  ;;  %v626_v37 = vld [vmem:[#allocation7 + $0x3e0] sm:$0xff] }
 0x180   : > { %1554 = vmatpush2.msra.mxu0 %v946_v38  ;;  %1623 = vmatpush2.msra.mxu1 %v966_v39  ;;  %v609_v38 = vld [vmem:[#allocation7 + $0x358] sm:$0xff]  ;;  %v608_v39 = vld [vmem:[#allocation7 + $0x350] sm:$0xff] }
 0x181   : > { %1555 = vmatprep.subr.mxu0 %v929_v40  ;;  %1624 = vmatprep.subr.mxu1 %v949_v41  ;;  %v591_v40 = vld [vmem:[#allocation7 + $0x2c8] sm:$0xff]  ;;  %v590_v41 = vld [vmem:[#allocation7 + $0x2c0] sm:$0xff] }
 0x182   : > { %1556 = vmatpush2.msra.mxu0 %v928_v42  ;;  %1625 = vmatpush2.msra.mxu1 %v948_v43  ;;  %v573_v42 = vld [vmem:[#allocation7 + $0x238] sm:$0xff]  ;;  %v572_v43 = vld [vmem:[#allocation7 + $0x230] sm:$0xff] }
 0x183   : > { %1557 = vmatprep.subr.mxu0 %v911_v44  ;;  %1626 = vmatprep.subr.mxu1 %v931_v45  ;;  %v555_v44 = vld [vmem:[#allocation7 + $0x1a8] sm:$0xff]  ;;  %v554_v45 = vld [vmem:[#allocation7 + $0x1a0] sm:$0xff] }
 0x184   : > { %1558 = vmatpush2.msra.mxu0 %v910_v46  ;;  %1627 = vmatpush2.msra.mxu1 %v930_v47  ;;  %v537_v46 = vld [vmem:[#allocation7 + $0x118] sm:$0xff]  ;;  %v536_v47 = vld [vmem:[#allocation7 + $0x110] sm:$0xff] }
 0x185   : > { %1559 = vmatprep.subr.mxu0 %v893_v48  ;;  %1628 = vmatprep.subr.mxu1 %v913_v49  ;;  %v519_v48 = vld [vmem:[#allocation7 + $0x88] sm:$0xff]  ;;  %v518_v49 = vld [vmem:[#allocation7 + $0x80] sm:$0xff] }
 0x186   : > { %1560 = vmatpush2.msra.mxu0 %v892_v50  ;;  %1629 = vmatpush2.msra.mxu1 %v912_v51  ;;  %v1077_v50 = vld [vmem:[#allocation7 + $0x11f8] sm:$0xff]  ;;  %v1076_v51 = vld [vmem:[#allocation7 + $0x11f0] sm:$0xff] }
 0x187   : > { %1561 = vmatprep.subr.mxu0 %v875_v52  ;;  %1630 = vmatprep.subr.mxu1 %v895_v53  ;;  %v1059_v52 = vld [vmem:[#allocation7 + $0x1168] sm:$0xff]  ;;  %v1058_v53 = vld [vmem:[#allocation7 + $0x1160] sm:$0xff] }
 0x188   : > { %1562 = vmatpush2.msra.mxu0 %v874_v54  ;;  %1631 = vmatpush2.msra.mxu1 %v894_v55  ;;  %v1041_v54 = vld [vmem:[#allocation7 + $0x10d8] sm:$0xff]  ;;  %v1040_v55 = vld [vmem:[#allocation7 + $0x10d0] sm:$0xff] }
 0x189   : > { %1563 = vmatprep.subr.mxu0 %v857_v57  ;;  %1632 = vmatprep.subr.mxu1 %v877_v58  ;;  %v1023_v57 = vld [vmem:[#allocation7 + $0x1048] sm:$0xff]  ;;  %v1022_v58 = vld [vmem:[#allocation7 + $0x1040] sm:$0xff] }
 0x18a   : > { %1564 = vmatpush2.msra.mxu0 %v856_v59  ;;  %1633 = vmatpush2.msra.mxu1 %v876_v60  ;;  %v1005_v59 = vld [vmem:[#allocation7 + $0xfb8] sm:$0xff]  ;;  %v1004_v60 = vld [vmem:[#allocation7 + $0xfb0] sm:$0xff] }
 0x18b   : > { %1565 = vmatprep.subr.mxu0 %v839_v61  ;;  %1634 = vmatprep.subr.mxu1 %v859_v62  ;;  %v987_v61 = vld [vmem:[#allocation7 + $0xf28] sm:$0xff]  ;;  %v986_v62 = vld [vmem:[#allocation7 + $0xf20] sm:$0xff] }
 0x18c   : > { %1566 = vmatpush2.msra.mxu0 %v838_v0  ;;  %1635 = vmatpush2.msra.mxu1 %v858_v1  ;;  %v969_v0 = vld [vmem:[#allocation7 + $0xe98] sm:$0xff]  ;;  %v968_v1 = vld [vmem:[#allocation7 + $0xe90] sm:$0xff] }
 0x18d   : > { %1567 = vmatprep.subr.mxu0 %v821_v2  ;;  %1636 = vmatprep.subr.mxu1 %v841_v3  ;;  %v1218_v11 = vpop.f32.mrf.mxu1  ;;  %v1147_v18 = vpop.f32.mrf.mxu0  ;;  %v951_v2 = vld [vmem:[#allocation7 + $0xe08] sm:$0xff]  ;;  %v950_v3 = vld [vmem:[#allocation7 + $0xe00] sm:$0xff] }
 0x18e   : > { %1568 = vmatpush2.msra.mxu0 %v820_v4  ;;  %1637 = vmatpush2.msra.mxu1 %v840_v5  ;;  %v933_v4 = vld [vmem:[#allocation7 + $0xd78] sm:$0xff]  ;;  %v932_v5 = vld [vmem:[#allocation7 + $0xd70] sm:$0xff] }
 0x18f   : > { %1569 = vmatprep.subr.mxu0 %v803_v6  ;;  %1638 = vmatprep.subr.mxu1 %v823_v7  ;;  %v1220_v16 = vpop.f32.mrf.mxu1  ;;  %v1149_v56 = vpop.f32.mrf.mxu0  ;;  %v915_v6 = vld [vmem:[#allocation7 + $0xce8] sm:$0xff]  ;;  %v914_v7 = vld [vmem:[#allocation7 + $0xce0] sm:$0xff] }
 0x190   : > { %1570 = vmatpush2.msra.mxu0 %v802_v8  ;;  %1571 = vmatprep.mubr.f32.mxu0 %v7575_v63  ;;  %v897_v8 = vld [vmem:[#allocation7 + $0xc58] sm:$0xff] }
 0x191   : > { %1639 = vmatpush2.msra.mxu1 %v822_v9  ;;  %1572 = vmatmul.mubr.f32.vlgmr.msra.gmra.mxu0 %v7587_v10  ;;  %v896_v9 = vld [vmem:[#allocation7 + $0xc50] sm:$0xff] }
 0x192   : > { %1640 = vmatprep.subr.mxu1 %v805_v12  ;;  %1649 = vmatprep.subr.mxu0 %v789_v13  ;;  %v878_v12 = vld [vmem:[#allocation7 + $0xbc0] sm:$0xff]  ;;  %v861_v13 = vld [vmem:[#allocation7 + $0xb38] sm:$0xff] }
 0x193   : > { %1641 = vmatpush2.msra.mxu1 %v804_v14  ;;  %1642 = vmatprep.mubr.f32.mxu1 %v7575_v63  ;;  %v860_v14 = vld [vmem:[#allocation7 + $0xb30] sm:$0xff] }
 0x194   : > { %1650 = vmatpush1.msra.mxu0 %v788_v15  ;;  %1643 = vmatmul.mubr.f32.vlgmr.msra.gmra.mxu1 %v7587_v10  ;;  %v843_v15 = vld [vmem:[#allocation7 + $0xaa8] sm:$0xff] }
 0x195   : > { %1651 = vmatprep.subr.mxu0 %v771_v17  ;;  %6878 = vmatprep.subr.msk.mxu1 %vm1727_vm0, %v1220_v16  ;;  %v842_v16 = vld [vmem:[#allocation7 + $0xaa0] sm:$0xff]  ;;  %v825_v17 = vld [vmem:[#allocation7 + $0xa18] sm:$0xff] }
 0x196   : > { %1652 = vmatpush1.msra.mxu0 %v770_v19  ;;  %6879 = vmatpush1.msk.msra.mxu1 %vm1727_vm0, %v1218_v11  ;;  %v879_v11 = vld [vmem:[#allocation7 + $0xbc8] sm:$0xff] }
 0x197   : > { %1653 = vmatprep.subr.mxu0 %v753_v20  ;;  %1798 = vmatprep.mubr.f32.mxu1 %v7315_v24  ;;  %v807_v19 = vld [vmem:[#allocation7 + $0x988] sm:$0xff] }
 0x198   : > { %1654 = vmatpush1.msra.mxu0 %v752_v21  ;;  %6881 = vmatprep.subr.msk.mxu1 %vm1727_vm0, %v1149_v56  ;;  %v806_v21 = vld [vmem:[#allocation7 + $0x980] sm:$0xff] }
 0x199   : > { %1655 = vmatprep.subr.mxu0 %v735_v22  ;;  %6880 = vmatmul.mubr.msk.f32.vlgmr.msra.gmra.mxu1 %vm1723_vm1, %v6877_v23  ;;  %v6884_v23 = vld [vmem:[%s7967_s6 + $0x10] sm:$0xff] }
 0x19a   : > { %6882 = vmatpush1.msk.msra.mxu1 %vm1727_vm0, %v1147_v18  ;;  %1656 = vmatpush1.msra.mxu0 %v734_v25  ;;  %v824_v18 = vld [vmem:[#allocation7 + $0xa10] sm:$0xff] }
 0x19b   : > { %1657 = vmatprep.subr.mxu0 %v717_v26  ;;  %1713 = vmatprep.mubr.f32.mxu0 %v7575_v63  ;;  %v627_v63 = vld [vmem:[#allocation7 + $0x3e8] sm:$0xff]  ;;  %v6888_v26 = vld [vmem:[%s7967_s6 + $0x18] sm:$0xff] }
 0x19c   : > { %1658 = vmatpush1.msra.mxu0 %v716_v27  ;;  %1878 = vmatprep.mubr.f32.mxu1 %v7315_v24  ;;  %v2624_v27 = vld [vmem:[#allocation8 + $0x410] sm:$0xff] }
 0x19d   : > { %1659 = vmatprep.subr.mxu0 %v699_v28  ;;  %6883 = vmatmul.mubr.msk.f32.vlgmr.msra.gmra.mxu1 %vm1723_vm1, %v1720_v29  ;;  %v2607_v28 = vld [vmem:[#allocation8 + $0x388] sm:$0xff]  ;;  %v2606_v29 = vld [vmem:[#allocation8 + $0x380] sm:$0xff] }
 0x19e   : > { %1660 = vmatpush1.msra.mxu0 %v698_v30  ;;  %1960 = vmatprep.mubr.f32.mxu1 %v7315_v24  ;;  %v2589_v30 = vld [vmem:[#allocation8 + $0x2f8] sm:$0xff] }
 0x19f   : > { %1661 = vmatprep.subr.mxu0 %v681_v31  ;;  %v2588_v31 = vld [vmem:[#allocation8 + $0x2f0] sm:$0xff] }
 0x1a0   : > { %1662 = vmatpush1.msra.mxu0 %v680_v32  ;;  %v2571_v32 = vld [vmem:[#allocation8 + $0x268] sm:$0xff] }
 0x1a1   : > { %1663 = vmatprep.subr.mxu0 %v663_v33  ;;  %v2570_v33 = vld [vmem:[#allocation8 + $0x260] sm:$0xff] }
 0x1a2   : > { %1664 = vmatpush1.msra.mxu0 %v662_v34 }
 0x1a3   : > { %1665 = vmatprep.subr.mxu0 %v645_v35 }
 0x1a4   : > { %1666 = vmatpush1.msra.mxu0 %v644_v36  ;;  %v6892_v36 = vld [vmem:[%s7967_s6 + $0x20] sm:$0xff] }
 0x1a5   : > { %1667 = vmatprep.subr.mxu0 %v627_v63 }
 0x1a6   : > { %1668 = vmatpush1.msra.mxu0 %v626_v37  ;;  %v2553_v37 = vld [vmem:[#allocation8 + $0x1d8] sm:$0xff] }
 0x1a7   : > { %1669 = vmatprep.subr.mxu0 %v609_v38  ;;  %v2552_v38 = vld [vmem:[#allocation8 + $0x1d0] sm:$0xff] }
 0x1a8   : > { %1670 = vmatpush1.msra.mxu0 %v608_v39 }
 0x1a9   : > { %1671 = vmatprep.subr.mxu0 %v591_v40  ;;  %v6896_v40 = vld [vmem:[%s7967_s6 + $0x28] sm:$0xff] }
 0x1aa   : > { %1672 = vmatpush1.msra.mxu0 %v590_v41  ;;  %v2535_v41 = vld [vmem:[#allocation8 + $0x148] sm:$0xff] }
 0x1ab   : > { %1673 = vmatprep.subr.mxu0 %v573_v42  ;;  %v2534_v42 = vld [vmem:[#allocation8 + $0x140] sm:$0xff] }
 0x1ac   : > { %1674 = vmatpush1.msra.mxu0 %v572_v43  ;;  %v2517_v43 = vld [vmem:[#allocation8 + $0xb8] sm:$0xff] }
 0x1ad   : > { %1675 = vmatprep.subr.mxu0 %v555_v44  ;;  %v2516_v44 = vld [vmem:[#allocation8 + $0xb0] sm:$0xff] }
 0x1ae   : > { %1676 = vmatpush1.msra.mxu0 %v554_v45  ;;  %v2499_v45 = vld [vmem:[#allocation8 + $0x28] sm:$0xff] }
 0x1af   : > { %1677 = vmatprep.subr.mxu0 %v537_v46  ;;  %v2498_v46 = vld [vmem:[#allocation8 + $0x20] sm:$0xff] }
 0x1b0   : > { %1678 = vmatpush1.msra.mxu0 %v536_v47  ;;  %v2629_v47 = vld [vmem:[#allocation8 + $0x438] sm:$0xff] }
 0x1b1   : > { %1679 = vmatprep.subr.mxu0 %v519_v48  ;;  %v7647_v48 = vld [vmem:[%s500_s13] sm:$0x3f] }
 0x1b2   : > { %1680 = vmatpush1.msra.mxu0 %v518_v49  ;;  %v2628_v49 = vld [vmem:[#allocation8 + $0x430] sm:$0xff] }
 0x1b3   : > { %1681 = vmatprep.subr.mxu0 %v1077_v50  ;;  %v2611_v50 = vld [vmem:[#allocation8 + $0x3a8] sm:$0xff] }
 0x1b4   : > { %1682 = vmatpush2.msra.mxu0 %v1076_v51  ;;  %v2610_v51 = vld [vmem:[#allocation8 + $0x3a0] sm:$0xff] }
 0x1b5   : > { %1683 = vmatprep.subr.mxu0 %v1059_v52  ;;  %v2593_v52 = vld [vmem:[#allocation8 + $0x318] sm:$0xff] }
 0x1b6   : > { %1684 = vmatpush2.msra.mxu0 %v1058_v53  ;;  %v2592_v53 = vld [vmem:[#allocation8 + $0x310] sm:$0xff] }
 0x1b7   : > { %1685 = vmatprep.subr.mxu0 %v1041_v54  ;;  %v2575_v54 = vld [vmem:[#allocation8 + $0x288] sm:$0xff] }
 0x1b8   : > { %1686 = vmatpush2.msra.mxu0 %v1040_v55  ;;  %v2574_v55 = vld [vmem:[#allocation8 + $0x280] sm:$0xff] }
 0x1b9   : > { %1687 = vmatprep.subr.mxu0 %v1023_v57  ;;  %v2557_v57 = vld [vmem:[#allocation8 + $0x1f8] sm:$0xff] }
 0x1ba   : > { %1688 = vmatpush2.msra.mxu0 %v1022_v58  ;;  %v2556_v58 = vld [vmem:[#allocation8 + $0x1f0] sm:$0xff] }
 0x1bb   : > { %1689 = vmatprep.subr.mxu0 %v1005_v59  ;;  %v2539_v59 = vld [vmem:[#allocation8 + $0x168] sm:$0xff] }
 0x1bc   : > { %1690 = vmatpush2.msra.mxu0 %v1004_v60  ;;  %v2538_v60 = vld [vmem:[#allocation8 + $0x160] sm:$0xff] }
 0x1bd   : > { %1691 = vmatprep.subr.mxu0 %v987_v61  ;;  %v2521_v61 = vld [vmem:[#allocation8 + $0xd8] sm:$0xff] }
 0x1be   : > { %1692 = vmatpush2.msra.mxu0 %v986_v62  ;;  %v2520_v62 = vld [vmem:[#allocation8 + $0xd0] sm:$0xff] }
 0x1bf   : > { %1693 = vmatprep.subr.mxu0 %v969_v0  ;;  %v2503_v0 = vld [vmem:[#allocation8 + $0x48] sm:$0xff] }
 0x1c0   : > { %1694 = vmatpush2.msra.mxu0 %v968_v1  ;;  %v2502_v1 = vld [vmem:[#allocation8 + $0x40] sm:$0xff] }
 0x1c1   : > { %1695 = vmatprep.subr.mxu0 %v951_v2  ;;  %v2633_v2 = vld [vmem:[#allocation8 + $0x458] sm:$0xff] }
 0x1c2   : > { %1696 = vmatpush2.msra.mxu0 %v950_v3  ;;  %v2632_v3 = vld [vmem:[#allocation8 + $0x450] sm:$0xff] }
 0x1c3   : > { %1697 = vmatprep.subr.mxu0 %v933_v4  ;;  %v2615_v4 = vld [vmem:[#allocation8 + $0x3c8] sm:$0xff] }
 0x1c4   : > { %1698 = vmatpush2.msra.mxu0 %v932_v5  ;;  %v2614_v5 = vld [vmem:[#allocation8 + $0x3c0] sm:$0xff] }
 0x1c5   : > { %1699 = vmatprep.subr.mxu0 %v915_v6  ;;  %v2597_v6 = vld [vmem:[#allocation8 + $0x338] sm:$0xff] }
 0x1c6   : > { %1700 = vmatpush2.msra.mxu0 %v914_v7  ;;  %v2596_v7 = vld [vmem:[#allocation8 + $0x330] sm:$0xff] }
 0x1c7   : > { %1701 = vmatprep.subr.mxu0 %v897_v8  ;;  %v2579_v8 = vld [vmem:[#allocation8 + $0x2a8] sm:$0xff] }
 0x1c8   : > { %1702 = vmatpush2.msra.mxu0 %v896_v9  ;;  %v2578_v9 = vld [vmem:[#allocation8 + $0x2a0] sm:$0xff] }
 0x1c9   : > { %1703 = vmatprep.subr.mxu0 %v879_v11  ;;  %v2561_v11 = vld [vmem:[#allocation8 + $0x218] sm:$0xff] }
 0x1ca   : > { %1704 = vmatpush2.msra.mxu0 %v878_v12  ;;  %v2560_v12 = vld [vmem:[#allocation8 + $0x210] sm:$0xff] }
 0x1cb   : > { %1705 = vmatprep.subr.mxu0 %v861_v13  ;;  %v2543_v13 = vld [vmem:[#allocation8 + $0x188] sm:$0xff] }
 0x1cc   : > { %1706 = vmatpush2.msra.mxu0 %v860_v14  ;;  %v2542_v14 = vld [vmem:[#allocation8 + $0x180] sm:$0xff] }
 0x1cd   : > { %1707 = vmatprep.subr.mxu0 %v843_v15  ;;  %v2525_v15 = vld [vmem:[#allocation8 + $0xf8] sm:$0xff] }
 0x1ce   : > { %1708 = vmatpush2.msra.mxu0 %v842_v16  ;;  %v1289_v20 = vpop.f32.mrf.mxu0  ;;  %v2524_v16 = vld [vmem:[#allocation8 + $0xf0] sm:$0xff] }
 0x1cf   : > { %1709 = vmatprep.subr.mxu0 %v825_v17  ;;  %v2507_v17 = vld [vmem:[#allocation8 + $0x68] sm:$0xff] }
 0x1d0   : > { %1710 = vmatpush2.msra.mxu0 %v824_v18  ;;  %v1291_v22 = vpop.f32.mrf.mxu0  ;;  %v2506_v18 = vld [vmem:[#allocation8 + $0x60] sm:$0xff] }
 0x1d1   : > { %1711 = vmatprep.subr.mxu0 %v807_v19  ;;  %6885 = vmatprep.subr.msk.mxu1 %vm1727_vm0, %v1291_v22  ;;  %v1360_v56 = vpop.f32.mrf.mxu1  ;;  %v2637_v19 = vld [vmem:[#allocation8 + $0x478] sm:$0xff]  ;;  %v2618_v22 = vld [vmem:[#allocation8 + $0x3e0] sm:$0xff] }
 0x1d2   : > { %1712 = vmatpush2.msra.mxu0 %v806_v21  ;;  %6886 = vmatpush1.msk.msra.mxu1 %vm1727_vm0, %v1289_v20  ;;  %v2636_v20 = vld [vmem:[#allocation8 + $0x470] sm:$0xff]  ;;  %v2619_v21 = vld [vmem:[#allocation8 + $0x3e8] sm:$0xff] }
 0x1d3   : > { %1714 = vmatmul.mubr.f32.vlgmr.msra.gmra.mxu0 %v7587_v10  ;;  %v1362_v25 = vpop.f32.mrf.mxu1  ;;  %6887 = vmatmul.mubr.msk.f32.vlgmr.msra.gmra.mxu1 %vm1723_vm1, %v6884_v23  ;;  %v2625_v10 = vld [vmem:[#allocation8 + $0x418] sm:$0xff] }
 0x1d4   : > { %6889 = vmatprep.subr.msk.mxu1 %vm1727_vm0, %v1362_v25  ;;  %2044 = vmatprep.mubr.f32.mxu1 %v7315_v24  ;;  %v2601_v23 = vld [vmem:[#allocation8 + $0x358] sm:$0xff]  ;;  %v2583_v25 = vld [vmem:[#allocation8 + $0x2c8] sm:$0xff] }
 0x1d5   : > { %6890 = vmatpush1.msk.msra.mxu1 %vm1727_vm0, %v1360_v56  ;;  %2848 = vmatprep.mubr.f32.mxu0 %v7315_v24  ;;  %v2600_v56 = vld [vmem:[#allocation8 + $0x350] sm:$0xff] }
 0x1d6   : > { %2800 = vmatprep.subr.mxu0 %v2625_v10  ;;  %v2565_v10 = vld [vmem:[#allocation8 + $0x238] sm:$0xff] }
 0x1d7   : > { %6891 = vmatmul.mubr.msk.f32.vlgmr.msra.gmra.mxu1 %vm1723_vm1, %v6888_v26  ;;  %2801 = vmatpush1.msra.mxu0 %v2624_v27  ;;  %v2582_v26 = vld [vmem:[#allocation8 + $0x2c0] sm:$0xff]  ;;  %v2564_v27 = vld [vmem:[#allocation8 + $0x230] sm:$0xff] }
 0x1d8   : > { %2128 = vmatprep.mubr.f32.mxu1 %v7315_v24  ;;  %2802 = vmatprep.subr.mxu0 %v2607_v28  ;;  %v2547_v28 = vld [vmem:[#allocation8 + $0x1a8] sm:$0xff] }
 0x1d9   : > { %2803 = vmatpush1.msra.mxu0 %v2606_v29  ;;  %v2546_v29 = vld [vmem:[#allocation8 + $0x1a0] sm:$0xff] }
 0x1da   : > { %2804 = vmatprep.subr.mxu0 %v2589_v30  ;;  %v2529_v30 = vld [vmem:[#allocation8 + $0x118] sm:$0xff] }
 0x1db   : > { %2805 = vmatpush1.msra.mxu0 %v2588_v31  ;;  %v2528_v31 = vld [vmem:[#allocation8 + $0x110] sm:$0xff] }
 0x1dc   : > { %2806 = vmatprep.subr.mxu0 %v2571_v32  ;;  %v2511_v32 = vld [vmem:[#allocation8 + $0x88] sm:$0xff] }
 0x1dd   : > { %2807 = vmatpush1.msra.mxu0 %v2570_v33  ;;  %v2510_v33 = vld [vmem:[#allocation8 + $0x80] sm:$0xff] }
 0x1de   : > { %2808 = vmatprep.subr.mxu0 %v2553_v37 }
 0x1df   : > { %2809 = vmatpush1.msra.mxu0 %v2552_v38  ;;  %v6904_v38 = vld [vmem:[%s7967_s6 + $0x38] sm:$0xff] }
 0x1e0   : > { %2810 = vmatprep.subr.mxu0 %v2535_v41  ;;  %v2473_v41 = vld [vmem:[%s7970_s9] sm:$0xff] }
 0x1e1   : > { %2811 = vmatpush1.msra.mxu0 %v2534_v42  ;;  %v2481_v42 = vld [vmem:[%s7971_s10] sm:$0xff] }
 0x1e2   : > { %2812 = vmatprep.subr.mxu0 %v2517_v43 }
 0x1e3   : > { %2813 = vmatpush1.msra.mxu0 %v2516_v44 }
 0x1e4   : > { %2814 = vmatprep.subr.mxu0 %v2499_v45  ;;  %v6908_v45 = vld [vmem:[%s7967_s6 + $0x40] sm:$0xff] }
 0x1e5   : > { %2815 = vmatpush1.msra.mxu0 %v2498_v46  ;;  %v2621_v46 = vld [vmem:[#allocation8 + $0x3f8] sm:$0xff] }
 0x1e6   : > { %2942 = vmatprep.subr.mxu0 %v2629_v47  ;;  %6914 = vmatmul.mubr.msk.f32.vlgmr.msra.gmra.mxu0 %vm2638_vm2, %v7647_v48  ;;  %v2620_v47 = vld [vmem:[#allocation8 + $0x3f0] sm:$0xff] }
 0x1e7   : > { %2943 = vmatpush1.msra.mxu0 %v2628_v49  ;;  %2990 = vmatprep.mubr.f32.mxu0 %v7315_v24  ;;  %v2603_v49 = vld [vmem:[#allocation8 + $0x368] sm:$0xff] }
 0x1e8   : > { %2944 = vmatprep.subr.mxu0 %v2611_v50  ;;  %v2602_v50 = vld [vmem:[#allocation8 + $0x360] sm:$0xff] }
 0x1e9   : > { %2945 = vmatpush1.msra.mxu0 %v2610_v51  ;;  %v2585_v51 = vld [vmem:[#allocation8 + $0x2d8] sm:$0xff] }
 0x1ea   : > { %2946 = vmatprep.subr.mxu0 %v2593_v52  ;;  %v2584_v52 = vld [vmem:[#allocation8 + $0x2d0] sm:$0xff] }
 0x1eb   : > { %2947 = vmatpush1.msra.mxu0 %v2592_v53  ;;  %v2567_v53 = vld [vmem:[#allocation8 + $0x248] sm:$0xff] }
 0x1ec   : > { %2948 = vmatprep.subr.mxu0 %v2575_v54  ;;  %v2566_v54 = vld [vmem:[#allocation8 + $0x240] sm:$0xff] }
 0x1ed   : > { %2949 = vmatpush1.msra.mxu0 %v2574_v55  ;;  %v2549_v55 = vld [vmem:[#allocation8 + $0x1b8] sm:$0xff] }
 0x1ee   : > { %2950 = vmatprep.subr.mxu0 %v2557_v57  ;;  %v2548_v57 = vld [vmem:[#allocation8 + $0x1b0] sm:$0xff] }
 0x1ef   : > { %2951 = vmatpush1.msra.mxu0 %v2556_v58  ;;  %v2531_v58 = vld [vmem:[#allocation8 + $0x128] sm:$0xff] }
 0x1f0   : > { %2952 = vmatprep.subr.mxu0 %v2539_v59  ;;  %v2530_v59 = vld [vmem:[#allocation8 + $0x120] sm:$0xff] }
 0x1f1   : > { %2953 = vmatpush1.msra.mxu0 %v2538_v60  ;;  %v2513_v60 = vld [vmem:[#allocation8 + $0x98] sm:$0xff] }
 0x1f2   : > { %2954 = vmatprep.subr.mxu0 %v2521_v61  ;;  %v2512_v61 = vld [vmem:[#allocation8 + $0x90] sm:$0xff] }
 0x1f3   : > { %2955 = vmatpush1.msra.mxu0 %v2520_v62  ;;  %v2495_v62 = vld [vmem:[#allocation8 + $0x8] sm:$0xff] }
 0x1f4   : > { %2956 = vmatprep.subr.mxu0 %v2503_v0  ;;  %v2494_v0 = vld [vmem:[#allocation8] sm:$0xff] }
 0x1f5   : > { %2957 = vmatpush1.msra.mxu0 %v2502_v1  ;;  %v2623_v1 = vld [vmem:[#allocation8 + $0x408] sm:$0xff] }
 0x1f6   : > { %3084 = vmatprep.subr.mxu0 %v2633_v2  ;;  %6916 = vmatmul.mubr.msk.f32.vlgmr.msra.gmra.mxu0 %vm2638_vm2, %v7647_v48  ;;  %v2622_v2 = vld [vmem:[#allocation8 + $0x400] sm:$0xff] }
 0x1f7   : > { %3085 = vmatpush1.msra.mxu0 %v2632_v3  ;;  %3132 = vmatprep.mubr.f32.mxu0 %v7315_v24  ;;  %v2605_v3 = vld [vmem:[#allocation8 + $0x378] sm:$0xff] }
 0x1f8   : > { %3086 = vmatprep.subr.mxu0 %v2615_v4  ;;  %v2604_v4 = vld [vmem:[#allocation8 + $0x370] sm:$0xff] }
 0x1f9   : > { %3087 = vmatpush1.msra.mxu0 %v2614_v5  ;;  %v2587_v5 = vld [vmem:[#allocation8 + $0x2e8] sm:$0xff] }
 0x1fa   : > { %3088 = vmatprep.subr.mxu0 %v2597_v6  ;;  %v2586_v6 = vld [vmem:[#allocation8 + $0x2e0] sm:$0xff] }
 0x1fb   : > { %3089 = vmatpush1.msra.mxu0 %v2596_v7  ;;  %v2569_v7 = vld [vmem:[#allocation8 + $0x258] sm:$0xff] }
 0x1fc   : > { %3090 = vmatprep.subr.mxu0 %v2579_v8  ;;  %v2568_v8 = vld [vmem:[#allocation8 + $0x250] sm:$0xff] }
 0x1fd   : > { %3091 = vmatpush1.msra.mxu0 %v2578_v9  ;;  %v2551_v9 = vld [vmem:[#allocation8 + $0x1c8] sm:$0xff] }
 0x1fe   : > { %3092 = vmatprep.subr.mxu0 %v2561_v11  ;;  %v2550_v11 = vld [vmem:[#allocation8 + $0x1c0] sm:$0xff] }
 0x1ff   : > { %3093 = vmatpush1.msra.mxu0 %v2560_v12  ;;  %v2533_v12 = vld [vmem:[#allocation8 + $0x138] sm:$0xff] }
 0x200   : > { %3094 = vmatprep.subr.mxu0 %v2543_v13  ;;  %v2532_v13 = vld [vmem:[#allocation8 + $0x130] sm:$0xff] }
 0x201   : > { %3095 = vmatpush1.msra.mxu0 %v2542_v14  ;;  %v2515_v14 = vld [vmem:[#allocation8 + $0xa8] sm:$0xff] }
 0x202   : > { %3096 = vmatprep.subr.mxu0 %v2525_v15  ;;  %v2514_v15 = vld [vmem:[#allocation8 + $0xa0] sm:$0xff] }
 0x203   : > { %3097 = vmatpush1.msra.mxu0 %v2524_v16  ;;  %v2497_v16 = vld [vmem:[#allocation8 + $0x18] sm:$0xff] }
 0x204   : > { %3098 = vmatprep.subr.mxu0 %v2507_v17  ;;  %v2496_v17 = vld [vmem:[#allocation8 + $0x10] sm:$0xff] }
 0x205   : > { %3099 = vmatpush1.msra.mxu0 %v2506_v18  ;;  %v2627_v18 = vld [vmem:[#allocation8 + $0x428] sm:$0xff] }
 0x206   : > { %3226 = vmatprep.subr.mxu0 %v2637_v19  ;;  %6918 = vmatmul.mubr.msk.f32.vlgmr.msra.gmra.mxu0 %vm2638_vm2, %v7647_v48  ;;  %v2626_v19 = vld [vmem:[#allocation8 + $0x420] sm:$0xff] }
 0x207   : > { %3227 = vmatpush1.msra.mxu0 %v2636_v20  ;;  %3274 = vmatprep.mubr.f32.mxu0 %v7315_v24  ;;  %v2609_v20 = vld [vmem:[#allocation8 + $0x398] sm:$0xff] }
 0x208   : > { %3228 = vmatprep.subr.mxu0 %v2619_v21  ;;  %v2608_v21 = vld [vmem:[#allocation8 + $0x390] sm:$0xff] }
 0x209   : > { %3229 = vmatpush1.msra.mxu0 %v2618_v22  ;;  %v2591_v22 = vld [vmem:[#allocation8 + $0x308] sm:$0xff] }
 0x20a   : > { %3230 = vmatprep.subr.mxu0 %v2601_v23  ;;  %v2590_v23 = vld [vmem:[#allocation8 + $0x300] sm:$0xff] }
 0x20b   : > { %3231 = vmatpush1.msra.mxu0 %v2600_v56  ;;  %v2573_v56 = vld [vmem:[#allocation8 + $0x278] sm:$0xff] }
 0x20c   : > { %3232 = vmatprep.subr.mxu0 %v2583_v25  ;;  %v2572_v25 = vld [vmem:[#allocation8 + $0x270] sm:$0xff] }
 0x20d   : > { %3233 = vmatpush1.msra.mxu0 %v2582_v26  ;;  %v2555_v26 = vld [vmem:[#allocation8 + $0x1e8] sm:$0xff] }
 0x20e   : > { %3234 = vmatprep.subr.mxu0 %v2565_v10  ;;  %v2554_v10 = vld [vmem:[#allocation8 + $0x1e0] sm:$0xff] }
 0x20f   : > { %v1431_v34 = vpop.f32.mrf.mxu0  ;;  %3235 = vmatpush1.msra.mxu0 %v2564_v27  ;;  %v2537_v27 = vld [vmem:[#allocation8 + $0x158] sm:$0xff] }
 0x210   : > { %3236 = vmatprep.subr.mxu0 %v2547_v28  ;;  %v2536_v28 = vld [vmem:[#allocation8 + $0x150] sm:$0xff] }
 0x211   : > { %v1433_v35 = vpop.f32.mrf.mxu0  ;;  %3237 = vmatpush1.msra.mxu0 %v2546_v29  ;;  %v2519_v29 = vld [vmem:[#allocation8 + $0xc8] sm:$0xff] }
 0x212   : > { %6893 = vmatprep.subr.msk.mxu1 %vm1727_vm0, %v1433_v35  ;;  %3238 = vmatprep.subr.mxu0 %v2529_v30  ;;  %v2518_v30 = vld [vmem:[#allocation8 + $0xc0] sm:$0xff] }
 0x213   : > { %6894 = vmatpush1.msk.msra.mxu1 %vm1727_vm0, %v1431_v34  ;;  %v1502_v63 = vpop.f32.mrf.mxu1  ;;  %3239 = vmatpush1.msra.mxu0 %v2528_v31  ;;  %v2501_v31 = vld [vmem:[#allocation8 + $0x38] sm:$0xff] }
 0x214   : > { %6895 = vmatmul.mubr.msk.f32.vlgmr.msra.gmra.mxu1 %vm1723_vm1, %v6892_v36  ;;  %3240 = vmatprep.subr.mxu0 %v2511_v32  ;;  %v6900_v36 = vld [vmem:[%s7967_s6 + $0x30] sm:$0xff] }
 0x215   : > { %v1504_v39 = vpop.f32.mrf.mxu1  ;;  %2212 = vmatprep.mubr.f32.mxu1 %v7315_v24  ;;  %3241 = vmatpush1.msra.mxu0 %v2510_v33  ;;  %v2500_v32 = vld [vmem:[#allocation8 + $0x30] sm:$0xff]  ;;  %v2631_v33 = vld [vmem:[#allocation8 + $0x448] sm:$0xff] }
 0x216   : > { %6897 = vmatprep.subr.msk.mxu1 %vm1727_vm0, %v1504_v39  ;;  %6920 = vmatmul.mubr.msk.f32.vlgmr.msra.gmra.mxu0 %vm2638_vm2, %v7647_v48  ;;  %v7316_v39 = vmov 0  }
 0x217   : > { %6898 = vmatpush1.msk.msra.mxu1 %vm1727_vm0, %v1502_v63  ;;  %3605 = vmatprep.mubr.f32.mxu0 %v7315_v24 }
 0x218   : > { %6899 = vmatmul.mubr.msk.f32.vlgmr.msra.gmra.mxu1 %vm1723_vm1, %v6896_v40  ;;  %7088 = vset.pattern.permute.xlu1 %v7316_v39  ;;  %v6986_v40 = vld [vmem:[%s7970_s9 + $0x10] sm:$0xff] }
 0x219   : > { %2296 = vmatprep.mubr.f32.mxu1 %v7315_v24  ;;  %7087 = vset.pattern.permute.xlu0 %v7316_v39  ;;  %v2576_v39 = vld [vmem:[#allocation8 + $0x290] sm:$0xff] }
 0x21a   : > { %6692 = vperm.xlu1 %7088, %v6986_v40   ;;  %2476 = vperm.xlu0 %7087, %v2473_v41   ;;  %v2559_v40 = vld [vmem:[#allocation8 + $0x208] sm:$0xff]  ;;  %v2558_v41 = vld [vmem:[#allocation8 + $0x200] sm:$0xff] }
 0x21e   : > { %2484 = vperm.xlu1 %7088, %v2481_v42   ;;  %v2541_v42 = vld [vmem:[#allocation8 + $0x178] sm:$0xff] }
 0x251   : > { %v1573_v34 = vpop.f32.mrf.mxu0 }
 0x253   : > { %v1575_v35 = vpop.f32.mrf.mxu0 }
 0x254   : > { %6901 = vmatprep.subr.msk.mxu1 %vm1727_vm0, %v1575_v35  ;;  %v1644_v63 = vpop.f32.mrf.mxu1  ;;  %v2613_v35 = vld [vmem:[#allocation8 + $0x3b8] sm:$0xff] }
 0x255   : > { %6902 = vmatpush1.msk.msra.mxu1 %vm1727_vm0, %v1573_v34  ;;  %v2630_v34 = vld [vmem:[#allocation8 + $0x440] sm:$0xff] }
 0x256   : > { %6903 = vmatmul.mubr.msk.f32.vlgmr.msra.gmra.mxu1 %vm1723_vm1, %v6900_v36  ;;  %v1646_v37 = vpop.f32.mrf.mxu1  ;;  %v2612_v36 = vld [vmem:[#allocation8 + $0x3b0] sm:$0xff] }
 0x257   : > { %6905 = vmatprep.subr.msk.mxu1 %vm1727_vm0, %v1646_v37  ;;  %2380 = vmatprep.mubr.f32.mxu1 %v7315_v24  ;;  %v2594_v37 = vld [vmem:[#allocation8 + $0x320] sm:$0xff] }
 0x258   : > { %6906 = vmatpush1.msk.msra.mxu1 %vm1727_vm0, %v1644_v63  ;;  %v2595_v63 = vld [vmem:[#allocation8 + $0x328] sm:$0xff] }
 0x25a   : > { %6907 = vmatmul.mubr.msk.f32.vlgmr.msra.gmra.mxu1 %vm1723_vm1, %v6904_v38  ;;  %v2577_v38 = vld [vmem:[#allocation8 + $0x298] sm:$0xff] }
 0x25b   : > { %2464 = vmatprep.mubr.f32.mxu1 %v7315_v24 }
 0x293   : > { %v1715_v43 = vpop.f32.mrf.mxu0 }
 0x295   : > { %v1717_v44 = vpop.f32.mrf.mxu0 }
 0x296   : > { %6909 = vmatprep.subr.msk.mxu1 %vm1727_vm0, %v1717_v44  ;;  %v2523_v44 = vld [vmem:[#allocation8 + $0xe8] sm:$0xff] }
 0x297   : > { %6910 = vmatpush1.msk.msra.mxu1 %vm1727_vm0, %v1715_v43  ;;  %v2540_v43 = vld [vmem:[#allocation8 + $0x170] sm:$0xff] }
 0x298   : > { %6911 = vmatmul.mubr.msk.f32.vlgmr.msra.gmra.mxu1 %vm1723_vm1, %v6908_v45  ;;  %2658 = vmatprep.subr.mxu1 %v2621_v46  ;;  %v2522_v45 = vld [vmem:[#allocation8 + $0xe0] sm:$0xff]  ;;  %v2505_v46 = vld [vmem:[#allocation8 + $0x58] sm:$0xff] }
 0x299   : > { %2659 = vmatpush1.msra.mxu1 %v2620_v47  ;;  %2706 = vmatprep.mubr.f32.mxu1 %v7315_v24  ;;  %v2504_v47 = vld [vmem:[#allocation8 + $0x50] sm:$0xff] }
 0x29a   : > { %2660 = vmatprep.subr.mxu1 %v2603_v49  ;;  %v2635_v49 = vld [vmem:[#allocation8 + $0x468] sm:$0xff] }
 0x29b   : > { %2661 = vmatpush1.msra.mxu1 %v2602_v50  ;;  %v2634_v50 = vld [vmem:[#allocation8 + $0x460] sm:$0xff] }
 0x29c   : > { %2662 = vmatprep.subr.mxu1 %v2585_v51  ;;  %v2617_v51 = vld [vmem:[#allocation8 + $0x3d8] sm:$0xff] }
 0x29d   : > { %2663 = vmatpush1.msra.mxu1 %v2584_v52  ;;  %v2616_v52 = vld [vmem:[#allocation8 + $0x3d0] sm:$0xff] }
 0x29e   : > { %2664 = vmatprep.subr.mxu1 %v2567_v53  ;;  %v2599_v53 = vld [vmem:[#allocation8 + $0x348] sm:$0xff] }
 0x29f   : > { %2665 = vmatpush1.msra.mxu1 %v2566_v54  ;;  %v2598_v54 = vld [vmem:[#allocation8 + $0x340] sm:$0xff] }
 0x2a0   : > { %2666 = vmatprep.subr.mxu1 %v2549_v55  ;;  %v2581_v55 = vld [vmem:[#allocation8 + $0x2b8] sm:$0xff] }
 0x2a1   : > { %2667 = vmatpush1.msra.mxu1 %v2548_v57  ;;  %v2580_v57 = vld [vmem:[#allocation8 + $0x2b0] sm:$0xff] }
 0x2a2   : > { %2668 = vmatprep.subr.mxu1 %v2531_v58  ;;  %v2563_v58 = vld [vmem:[#allocation8 + $0x228] sm:$0xff] }
 0x2a3   : > { %2669 = vmatpush1.msra.mxu1 %v2530_v59  ;;  %v2562_v59 = vld [vmem:[#allocation8 + $0x220] sm:$0xff] }
 0x2a4   : > { %2670 = vmatprep.subr.mxu1 %v2513_v60  ;;  %v2545_v60 = vld [vmem:[#allocation8 + $0x198] sm:$0xff] }
 0x2a5   : > { %2671 = vmatpush1.msra.mxu1 %v2512_v61  ;;  %v2544_v61 = vld [vmem:[#allocation8 + $0x190] sm:$0xff] }
 0x2a6   : > { %2672 = vmatprep.subr.mxu1 %v2495_v62  ;;  %v2527_v62 = vld [vmem:[#allocation8 + $0x108] sm:$0xff] }
 0x2a7   : > { %2673 = vmatpush1.msra.mxu1 %v2494_v0  ;;  %v2526_v0 = vld [vmem:[#allocation8 + $0x100] sm:$0xff] }
 0x2a8   : > { %6912 = vmatmul.mubr.msk.f32.vlgmr.msra.gmra.mxu1 %vm2638_vm2, %v7647_v48  ;;  %2729 = vmatprep.subr.mxu1 %v2623_v1  ;;  %v2509_v1 = vld [vmem:[#allocation8 + $0x78] sm:$0xff] }
 0x2a9   : > { %2730 = vmatpush1.msra.mxu1 %v2622_v2  ;;  %2777 = vmatprep.mubr.f32.mxu1 %v7315_v24  ;;  %v2508_v2 = vld [vmem:[#allocation8 + $0x70] sm:$0xff] }
 0x2aa   : > { %2731 = vmatprep.subr.mxu1 %v2605_v3  ;;  %v1800_v3 = vpop.f32.mrf.mxu1 }
 0x2ab   : > { %2732 = vmatpush1.msra.mxu1 %v2604_v4 }
 0x2ac   : > { %2733 = vmatprep.subr.mxu1 %v2587_v5  ;;  %v1802_v4 = vpop.f32.mrf.mxu1 }
 0x2ad   : > { %2734 = vmatpush1.msra.mxu1 %v2586_v6 }
 0x2ae   : > { %2735 = vmatprep.subr.mxu1 %v2569_v7  ;;  %v1880_v5 = vpop.f32.mrf.mxu1 }
 0x2af   : > { %2736 = vmatpush1.msra.mxu1 %v2568_v8 }
 0x2b0   : > { %2737 = vmatprep.subr.mxu1 %v2551_v9  ;;  %v1882_v6 = vpop.f32.mrf.mxu1 }
 0x2b1   : > { %2738 = vmatpush1.msra.mxu1 %v2550_v11 }
 0x2b2   : > { %2739 = vmatprep.subr.mxu1 %v2533_v12  ;;  %v1962_v7 = vpop.f32.mrf.mxu1 }
 0x2b3   : > { %2740 = vmatpush1.msra.mxu1 %v2532_v13 }
 0x2b4   : > { %2741 = vmatprep.subr.mxu1 %v2515_v14  ;;  %v1964_v8 = vpop.f32.mrf.mxu1  ;;  %v1881_v14 = vadd.f32 %v1880_v5, %v1800_v3  ;;  %v6944_v3 = vld [vmem:[%s7968_s7 + $0x30] sm:$0xff]  ;;  %v4691_v5 = vld [vmem:[#allocation10 + $0x13b8] sm:$0xff] }
 0x2b5   : > { %2742 = vmatpush1.msra.mxu1 %v2514_v15  ;;  %v1883_v15 = vadd.f32 %v1882_v6, %v1802_v4  ;;  %v6932_v4 = vld [vmem:[%s7968_s7 + $0x18] sm:$0xff]  ;;  %v6952_v6 = vld [vmem:[%s7968_s7 + $0x40] sm:$0xff] }
 0x2b6   : > { %2743 = vmatprep.subr.mxu1 %v2497_v16  ;;  %v2046_v9 = vpop.f32.mrf.mxu1 }
 0x2b7   : > { %2744 = vmatpush1.msra.mxu1 %v2496_v17  ;;  %v1967_v17 = vadd.f32 %v1962_v7, %v1881_v14  ;;  %v4690_v7 = vld [vmem:[#allocation10 + $0x13b0] sm:$0xff]  ;;  %v4636_v14 = vld [vmem:[#allocation10 + $0x1200] sm:$0xff] }
 0x2b8   : > { %6913 = vmatmul.mubr.msk.f32.vlgmr.msra.gmra.mxu1 %vm2638_vm2, %v7647_v48  ;;  %2871 = vmatprep.subr.mxu1 %v2627_v18  ;;  %v2048_v11 = vpop.f32.mrf.mxu1  ;;  %v1968_v18 = vadd.f32 %v1964_v8, %v1883_v15  ;;  %v4673_v8 = vld [vmem:[#allocation10 + $0x1328] sm:$0xff] }
 0x2b9   : > { %2872 = vmatpush1.msra.mxu1 %v2626_v19  ;;  %2919 = vmatprep.mubr.f32.mxu1 %v7315_v24  ;;  %v4333_v15 = vld [vmem:[#allocation10 + $0x888] sm:$0xff] }
 0x2ba   : > { %2873 = vmatprep.subr.mxu1 %v2609_v20  ;;  %v2051_v20 = vadd.f32 %v2046_v9, %v1967_v17  ;;  %v4672_v9 = vld [vmem:[#allocation10 + $0x1320] sm:$0xff] }
 0x2bb   : > { %2874 = vmatpush1.msra.mxu1 %v2608_v21  ;;  %v4332_v17 = vld [vmem:[#allocation10 + $0x880] sm:$0xff] }
 0x2bc   : > { %2875 = vmatprep.subr.mxu1 %v2591_v22 }
 0x2bd   : > { %2876 = vmatpush1.msra.mxu1 %v2590_v23 }
 0x2be   : > { %2877 = vmatprep.subr.mxu1 %v2573_v56 }
 0x2bf   : > { %2878 = vmatpush1.msra.mxu1 %v2572_v25 }
 0x2c0   : > { %2879 = vmatprep.subr.mxu1 %v2555_v26 }
 0x2c1   : > { %2880 = vmatpush1.msra.mxu1 %v2554_v10 }
 0x2c2   : > { %2881 = vmatprep.subr.mxu1 %v2537_v27 }
 0x2c3   : > { %2882 = vmatpush1.msra.mxu1 %v2536_v28  ;;  %v7706_v28 = vpop.permute.xlu1 %6692 }
 0x2c4   : > { %2883 = vmatprep.subr.mxu1 %v2519_v29 }
 0x2c5   : > { %2884 = vmatpush1.msra.mxu1 %v2518_v30 }
 0x2c6   : > { %2885 = vmatprep.subr.mxu1 %v2501_v31 }
 0x2c7   : > { %2886 = vmatpush1.msra.mxu1 %v2500_v32 }
 0x2c8   : > { %6915 = vmatmul.mubr.msk.f32.vlgmr.msra.gmra.mxu1 %vm2638_vm2, %v7647_v48  ;;  %3013 = vmatprep.subr.mxu1 %v2631_v33  ;;  %v2477_v33 = vpop.permute.xlu0 %2476 }
 0x2c9   : > { %3014 = vmatpush1.msra.mxu1 %v2630_v34  ;;  %3061 = vmatprep.mubr.f32.mxu1 %v7315_v24 }
 0x2ca   : > { %3015 = vmatprep.subr.mxu1 %v2613_v35 }
 0x2cb   : > { %3016 = vmatpush1.msra.mxu1 %v2612_v36 }
 0x2cc   : > { %3017 = vmatprep.subr.mxu1 %v2595_v63  ;;  %v2485_v63 = vpop.permute.xlu1 %2484 }
 0x2cd   : > { %3018 = vmatpush1.msra.mxu1 %v2594_v37 }
 0x2ce   : > { %3019 = vmatprep.subr.mxu1 %v2577_v38 }
 0x2cf   : > { %3020 = vmatpush1.msra.mxu1 %v2576_v39 }
 0x2d0   : > { %3021 = vmatprep.subr.mxu1 %v2559_v40 }
 0x2d1   : > { %3022 = vmatpush1.msra.mxu1 %v2558_v41 }
 0x2d2   : > { %3023 = vmatprep.subr.mxu1 %v2541_v42 }
 0x2d3   : > { %3024 = vmatpush1.msra.mxu1 %v2540_v43 }
 0x2d4   : > { %3025 = vmatprep.subr.mxu1 %v2523_v44  ;;  %v2130_v12 = vpop.f32.mrf.mxu1  ;;  %v2850_v44 = vpop.f32.mrf.mxu0 }
 0x2d5   : > { %3026 = vmatpush1.msra.mxu1 %v2522_v45  ;;  %v2135_v22 = vadd.f32 %v2130_v12, %v2051_v20  ;;  %v4654_v12 = vld [vmem:[#allocation10 + $0x1290] sm:$0xff]  ;;  %v4315_v20 = vld [vmem:[#allocation10 + $0x7f8] sm:$0xff] }
 0x2d6   : > { %3027 = vmatprep.subr.mxu1 %v2505_v46  ;;  %v2132_v13 = vpop.f32.mrf.mxu1  ;;  %v2852_v45 = vpop.f32.mrf.mxu0 }
 0x2d7   : > { %3028 = vmatpush1.msra.mxu1 %v2504_v47 }
 0x2d8   : > { %6917 = vmatmul.mubr.msk.f32.vlgmr.msra.gmra.mxu1 %vm2638_vm2, %v7647_v48  ;;  %3155 = vmatprep.subr.mxu1 %v2635_v49  ;;  %v2214_v16 = vpop.f32.mrf.mxu1  ;;  %v2992_v47 = vpop.f32.mrf.mxu0 }
 0x2d9   : > { %3156 = vmatpush1.msra.mxu1 %v2634_v50  ;;  %3203 = vmatprep.mubr.f32.mxu1 %v7315_v24  ;;  %v2219_v25 = vadd.f32 %v2214_v16, %v2135_v22  ;;  %v7769_v16 = vld [vmem:[%s7556_s30 + $0x10] sm:$0xff]  ;;  %v4297_v22 = vld [vmem:[#allocation10 + $0x768] sm:$0xff] }
 0x2da   : > { %3157 = vmatprep.subr.mxu1 %v2617_v51  ;;  %v2216_v19 = vpop.f32.mrf.mxu1  ;;  %v2994_v51 = vpop.f32.mrf.mxu0 }
 0x2db   : > { %3158 = vmatpush1.msra.mxu1 %v2616_v52  ;;  %v6956_v52 = vld [vmem:[%s7970_s9 + $0x8] sm:$0xff] }
 0x2dc   : > { %3159 = vmatprep.subr.mxu1 %v2599_v53  ;;  %4038 = vperm.xlu0 %7087, %v6956_v52   ;;  %v4116_v52 = vld [vmem:[#allocation10 + $0x1c0] sm:$0xff] }
 0x2dd   : > { %3160 = vmatpush1.msra.mxu1 %v2598_v54  ;;  %v6921_v54 = vld [vmem:[%s7968_s7 + $0x8] sm:$0xff] }
 0x2de   : > { %3161 = vmatprep.subr.mxu1 %v2581_v55  ;;  %v3134_v55 = vpop.f32.mrf.mxu0 }
 0x2df   : > { %3162 = vmatpush1.msra.mxu1 %v2580_v57  ;;  %v6957_v57 = vld [vmem:[%s7971_s10 + $0x8] sm:$0xff] }
 0x2e0   : > { %3163 = vmatprep.subr.mxu1 %v2563_v58  ;;  %v3281_v58 = vld [vmem:[%s7968_s7] sm:$0xff]  ;;  %4047 = vperm.xlu0 %7087, %v6957_v57   ;;  %v4098_v57 = vld [vmem:[#allocation10 + $0x130] sm:$0xff] }
 0x2e1   : > { %3164 = vmatpush1.msra.mxu1 %v2562_v59  ;;  %v3136_v59 = vpop.f32.mrf.mxu0 }
 0x2e2   : > { %3165 = vmatprep.subr.mxu1 %v2545_v60  ;;  %v6928_v60 = vld [vmem:[%s7968_s7 + $0x10] sm:$0xff] }
 0x2e3   : > { %3166 = vmatpush1.msra.mxu1 %v2544_v61  ;;  %v3276_v61 = vpop.f32.mrf.mxu0 }
 0x2e4   : > { %3167 = vmatprep.subr.mxu1 %v2527_v62  ;;  %v6936_v62 = vld [vmem:[%s7968_s7 + $0x20] sm:$0xff] }
 0x2e5   : > { %3168 = vmatpush1.msra.mxu1 %v2526_v0 }
 0x2e6   : > { %3169 = vmatprep.subr.mxu1 %v2509_v1  ;;  %v3278_v1 = vpop.f32.mrf.mxu0 }
 0x2e7   : > { %3170 = vmatpush1.msra.mxu1 %v2508_v2 }
 0x2e8   : > { %6919 = vmatmul.mubr.msk.f32.vlgmr.msra.gmra.mxu1 %vm2638_vm2, %v7647_v48  ;;  %v2052_v48 = vadd.f32 %v2048_v11, %v1968_v18  ;;  %v4655_v11 = vld [vmem:[#allocation10 + $0x1298] sm:$0xff] }
 0x2e9   : > { %3359 = vmatprep.mubr.f32.mxu1 %v7315_v24  ;;  %v7772_v18 = vld [vmem:[%s7556_s30 + $0x8] sm:$0xff] }
 0x2ea   : > { %v2136_v23 = vadd.f32 %v2132_v13, %v2052_v48  ;;  %v4637_v13 = vld [vmem:[#allocation10 + $0x1208] sm:$0xff]  ;;  %v4314_v48 = vld [vmem:[#allocation10 + $0x7f0] sm:$0xff] }
 0x2ec   : > { %v2220_v26 = vadd.f32 %v2216_v19, %v2136_v23  ;;  %v6940_v23 = vld [vmem:[%s7968_s7 + $0x28] sm:$0xff] }
 0x316   : > { %v2298_v21 = vpop.f32.mrf.mxu1 }
 0x317   : > { %v2303_v27 = vadd.f32 %v2298_v21, %v2219_v25  ;;  %v4279_v25 = vld [vmem:[#allocation10 + $0x6d8] sm:$0xff] }
 0x318   : > { %v2300_v56 = vpop.f32.mrf.mxu1 }
 0x319   : > { %v2304_v29 = vadd.f32 %v2300_v56, %v2220_v26  ;;  %v4296_v56 = vld [vmem:[#allocation10 + $0x760] sm:$0xff]  ;;  %v4278_v26 = vld [vmem:[#allocation10 + $0x6d0] sm:$0xff] }
 0x31a   : > { %v2382_v10 = vpop.f32.mrf.mxu1 }
 0x31b   : > { %v2387_v31 = vadd.f32 %v2382_v10, %v2303_v27  ;;  %v4261_v10 = vld [vmem:[#allocation10 + $0x648] sm:$0xff]  ;;  %v4260_v27 = vld [vmem:[#allocation10 + $0x640] sm:$0xff] }
 0x31c   : > { %v2384_v30 = vpop.f32.mrf.mxu1 }
 0x31d   : > { %v2388_v34 = vadd.f32 %v2384_v30, %v2304_v29  ;;  %v4243_v29 = vld [vmem:[#allocation10 + $0x5b8] sm:$0xff]  ;;  %v4242_v30 = vld [vmem:[#allocation10 + $0x5b0] sm:$0xff] }
 0x358   : > { %v2466_v32 = vpop.f32.mrf.mxu1 }
 0x359   : > { %v2471_v35 = vadd.f32 %v2466_v32, %v2387_v31  ;;  %v4225_v31 = vld [vmem:[#allocation10 + $0x528] sm:$0xff]  ;;  %v4224_v32 = vld [vmem:[#allocation10 + $0x520] sm:$0xff] }
 0x35a   : > { %v2468_v36 = vpop.f32.mrf.mxu1 }
 0x35b   : > { %v2479_v37 = vmul.f32 %v2477_v33, %v2471_v35  ;;  %v2472_v38 = vadd.f32 %v2468_v36, %v2388_v34  ;;  %v4206_v34 = vld [vmem:[#allocation10 + $0x490] sm:$0xff]  ;;  %v4189_v35 = vld [vmem:[#allocation10 + $0x408] sm:$0xff]  ;;  %v4188_v36 = vld [vmem:[#allocation10 + $0x400] sm:$0xff] }
 0x35d   : > { %v2480_v39 = vmul.f32 %v2477_v33, %v2472_v38  ;;  %v2487_v40 = vadd.f32 %v2485_v63, %v2479_v37  ;;  %v4207_v33 = vld [vmem:[#allocation10 + $0x498] sm:$0xff]  ;;  %v4170_v38 = vld [vmem:[#allocation10 + $0x370] sm:$0xff] }
 0x35e   : > { %v4171_v37 = vld [vmem:[#allocation10 + $0x378] sm:$0xff] }
 0x35f   : > { %v2488_v41 = vadd.f32 %v2485_v63, %v2480_v39  ;;  %v2489_v42 = vmax.f32 %v2487_v40, 0.0  ;;  %v4153_v40 = vld [vmem:[#allocation10 + $0x2e8] sm:$0xff] }
 0x361   : > { %v2490_v43 = vmax.f32 %v2488_v41, 0.0  ;;  %2491 = vst [vmem:[%s7709_s23] sm:$0xff] %v2489_v42  ;;  %v6948_v41 = vld [vmem:[%s7968_s7 + $0x38] sm:$0xff] }
 0x362   : > { %v4331_v42 = vld [vmem:[#allocation10 + $0x878] sm:$0xff] }
 0x363   : > { %2492 = vst [vmem:[%s7709_s23 + $0x8] sm:$0xff] %v2490_v43  ;;  %v4152_v43 = vld [vmem:[#allocation10 + $0x2e0] sm:$0xff] }
 0x368   : > { %v2708_v46 = vpop.f32.mrf.mxu1 }
 0x36a   : > { %v2710_v49 = vpop.f32.mrf.mxu1 }
 0x378   : > { %v2779_v50 = vpop.f32.mrf.mxu1 }
 0x37a   : > { %v2781_v53 = vpop.f32.mrf.mxu1 }
 0x37b   : > { %6922 = vmatprep.subr.msk.mxu1 %vm3288_vm3, %v2781_v53  ;;  %v4294_v53 = vld [vmem:[#allocation10 + $0x750] sm:$0xff] }
 0x37c   : > { %6923 = vmatpush1.msk.msra.mxu1 %vm3288_vm3, %v2779_v50  ;;  %v4117_v50 = vld [vmem:[#allocation10 + $0x1c8] sm:$0xff] }
 0x37d   : > { %6924 = vmatmul.mubr.msk.f32.vlgmr.msra.gmra.mxu1 %vm3284_vm4, %v6921_v54  ;;  %6925 = vmatprep.subr.msk.mxu1 %vm3288_vm3, %v2710_v49  ;;  %v4312_v49 = vld [vmem:[#allocation10 + $0x7e0] sm:$0xff]  ;;  %v4099_v54 = vld [vmem:[#allocation10 + $0x138] sm:$0xff] }
 0x37e   : > { %6926 = vmatpush1.msk.msra.mxu1 %vm3288_vm3, %v2708_v46  ;;  %3439 = vmatprep.mubr.f32.mxu1 %v7315_v24  ;;  %v4313_v46 = vld [vmem:[#allocation10 + $0x7e8] sm:$0xff] }
 0x37f   : > { %6929 = vmatprep.subr.msk.mxu1 %vm3288_vm3, %v2852_v45  ;;  %v4135_v45 = vld [vmem:[#allocation10 + $0x258] sm:$0xff] }
 0x381   : > { %6927 = vmatmul.mubr.msk.f32.vlgmr.msra.gmra.mxu1 %vm3284_vm4, %v3281_v58  ;;  %v4276_v58 = vld [vmem:[#allocation10 + $0x6c0] sm:$0xff] }
 0x382   : > { %6930 = vmatpush1.msk.msra.mxu1 %vm3288_vm3, %v2850_v44  ;;  %3521 = vmatprep.mubr.f32.mxu1 %v7315_v24  ;;  %v4330_v44 = vld [vmem:[#allocation10 + $0x870] sm:$0xff] }
 0x383   : > { %6937 = vmatprep.subr.msk.mxu1 %vm3288_vm3, %v2994_v51  ;;  %v4295_v51 = vld [vmem:[#allocation10 + $0x758] sm:$0xff] }
 0x385   : > { %6931 = vmatmul.mubr.msk.f32.vlgmr.msra.gmra.mxu1 %vm3284_vm4, %v6928_v60  ;;  %v4259_v60 = vld [vmem:[#allocation10 + $0x638] sm:$0xff] }
 0x386   : > { %6938 = vmatpush1.msk.msra.mxu1 %vm3288_vm3, %v2992_v47  ;;  %3689 = vmatprep.mubr.f32.mxu1 %v7315_v24  ;;  %v4134_v47 = vld [vmem:[#allocation10 + $0x250] sm:$0xff] }
 0x387   : > { %6945 = vmatprep.subr.msk.mxu1 %vm3288_vm3, %v3136_v59  ;;  %v4081_v59 = vld [vmem:[#allocation10 + $0xa8] sm:$0xff] }
 0x388   : > { %v2921_v0 = vpop.f32.mrf.mxu1 }
 0x389   : > { %6939 = vmatmul.mubr.msk.f32.vlgmr.msra.gmra.mxu1 %vm3284_vm4, %v6936_v62  ;;  %v4258_v62 = vld [vmem:[#allocation10 + $0x630] sm:$0xff] }
 0x38a   : > { %v2923_v2 = vpop.f32.mrf.mxu1  ;;  %6946 = vmatpush1.msk.msra.mxu1 %vm3288_vm3, %v3134_v55  ;;  %3857 = vmatprep.mubr.f32.mxu1 %v7315_v24  ;;  %v4277_v55 = vld [vmem:[#allocation10 + $0x6c8] sm:$0xff] }
 0x38b   : > { %6933 = vmatprep.subr.msk.mxu0 %vm3288_vm3, %v2923_v2  ;;  %6953 = vmatprep.subr.msk.mxu1 %vm3288_vm3, %v3278_v1  ;;  %v4241_v1 = vld [vmem:[#allocation10 + $0x5a8] sm:$0xff]  ;;  %v4062_v2 = vld [vmem:[#allocation10 + $0x10] sm:$0xff] }
 0x38c   : > { %6934 = vmatpush1.msk.msra.mxu0 %vm3288_vm3, %v2921_v0  ;;  %v4063_v0 = vld [vmem:[#allocation10 + $0x18] sm:$0xff] }
 0x38d   : > { %6947 = vmatmul.mubr.msk.f32.vlgmr.msra.gmra.mxu1 %vm3284_vm4, %v6944_v3  ;;  %6935 = vmatmul.mubr.msk.f32.vlgmr.msra.gmra.mxu0 %vm3284_vm4, %v6932_v4  ;;  %v4240_v3 = vld [vmem:[#allocation10 + $0x5a0] sm:$0xff]  ;;  %v4621_v4 = vld [vmem:[#allocation10 + $0x1188] sm:$0xff] }
 0x38e   : > { %6954 = vmatpush1.msk.msra.mxu1 %vm3288_vm3, %v3276_v61  ;;  %4025 = vmatprep.mubr.f32.mxu1 %v7315_v24  ;;  %v4080_v61 = vld [vmem:[#allocation10 + $0xa0] sm:$0xff] }
 0x38f   : > { %4807 = vmatprep.subr.mxu1 %v4691_v5  ;;  %3773 = vmatprep.mubr.f32.mxu0 %v7315_v24  ;;  %v4223_v5 = vld [vmem:[#allocation10 + $0x518] sm:$0xff] }
 0x391   : > { %6955 = vmatmul.mubr.msk.f32.vlgmr.msra.gmra.mxu1 %vm3284_vm4, %v6952_v6  ;;  %v4620_v6 = vld [vmem:[#allocation10 + $0x1180] sm:$0xff] }
 0x392   : > { %4808 = vmatpush1.msra.mxu1 %v4690_v7  ;;  %4847 = vmatprep.mubr.f32.mxu1 %v7315_v24  ;;  %v4222_v7 = vld [vmem:[#allocation10 + $0x510] sm:$0xff] }
 0x393   : > { %4809 = vmatprep.subr.mxu1 %v4673_v8  ;;  %v4603_v8 = vld [vmem:[#allocation10 + $0x10f8] sm:$0xff] }
 0x394   : > { %4810 = vmatpush1.msra.mxu1 %v4672_v9  ;;  %v4205_v9 = vld [vmem:[#allocation10 + $0x488] sm:$0xff] }
 0x395   : > { %4811 = vmatprep.subr.mxu1 %v4655_v11  ;;  %v4602_v11 = vld [vmem:[#allocation10 + $0x10f0] sm:$0xff] }
 0x396   : > { %4812 = vmatpush1.msra.mxu1 %v4654_v12  ;;  %v4204_v12 = vld [vmem:[#allocation10 + $0x480] sm:$0xff] }
 0x397   : > { %4813 = vmatprep.subr.mxu1 %v4637_v13  ;;  %v4585_v13 = vld [vmem:[#allocation10 + $0x1068] sm:$0xff] }
 0x398   : > { %4814 = vmatpush1.msra.mxu1 %v4636_v14  ;;  %v3063_v19 = vpop.f32.mrf.mxu1  ;;  %v4187_v14 = vld [vmem:[#allocation10 + $0x3f8] sm:$0xff] }
 0x399   : > { %4854 = vmatprep.subr.mxu1 %v4333_v15  ;;  %6960 = vmatmul.mubr.msk.f32.vlgmr.msra.gmra.mxu1 %vm4708_vm5, %v7769_v16  ;;  %v4584_v15 = vld [vmem:[#allocation10 + $0x1060] sm:$0xff] }
 0x39a   : > { %4855 = vmatpush1.msra.mxu1 %v4332_v17  ;;  %v3065_v21 = vpop.f32.mrf.mxu1  ;;  %4918 = vmatprep.mubr.f32.mxu1 %v7772_v18  ;;  %v4186_v17 = vld [vmem:[#allocation10 + $0x3f0] sm:$0xff] }
 0x39b   : > { %4856 = vmatprep.subr.mxu1 %v4315_v20  ;;  %6941 = vmatprep.subr.msk.mxu0 %vm3288_vm3, %v3065_v21  ;;  %v4169_v20 = vld [vmem:[#allocation10 + $0x368] sm:$0xff]  ;;  %v4168_v21 = vld [vmem:[#allocation10 + $0x360] sm:$0xff] }
 0x39c   : > { %4857 = vmatpush1.msra.mxu1 %v4314_v48  ;;  %6942 = vmatpush1.msk.msra.mxu0 %vm3288_vm3, %v3063_v19  ;;  %v4567_v19 = vld [vmem:[#allocation10 + $0xfd8] sm:$0xff]  ;;  %v4566_v48 = vld [vmem:[#allocation10 + $0xfd0] sm:$0xff] }
 0x39d   : > { %4858 = vmatprep.subr.mxu1 %v4297_v22  ;;  %6943 = vmatmul.mubr.msk.f32.vlgmr.msra.gmra.mxu0 %vm3284_vm4, %v6940_v23  ;;  %v4549_v22 = vld [vmem:[#allocation10 + $0xf48] sm:$0xff]  ;;  %v4151_v23 = vld [vmem:[#allocation10 + $0x2d8] sm:$0xff] }
 0x39e   : > { %4859 = vmatpush1.msra.mxu1 %v4296_v56  ;;  %3941 = vmatprep.mubr.f32.mxu0 %v7315_v24  ;;  %v4548_v56 = vld [vmem:[#allocation10 + $0xf40] sm:$0xff] }
 0x39f   : > { %4860 = vmatprep.subr.mxu1 %v4279_v25  ;;  %v4150_v25 = vld [vmem:[#allocation10 + $0x2d0] sm:$0xff] }
 0x3a0   : > { %4861 = vmatpush1.msra.mxu1 %v4278_v26  ;;  %v4531_v26 = vld [vmem:[#allocation10 + $0xeb8] sm:$0xff] }
 0x3a1   : > { %4862 = vmatprep.subr.mxu1 %v4261_v10  ;;  %v4133_v10 = vld [vmem:[#allocation10 + $0x248] sm:$0xff] }
 0x3a2   : > { %4863 = vmatpush1.msra.mxu1 %v4260_v27  ;;  %v4530_v27 = vld [vmem:[#allocation10 + $0xeb0] sm:$0xff] }
 0x3a3   : > { %4864 = vmatprep.subr.mxu1 %v4243_v29  ;;  %v4132_v29 = vld [vmem:[#allocation10 + $0x240] sm:$0xff] }
 0x3a4   : > { %4865 = vmatpush1.msra.mxu1 %v4242_v30  ;;  %v4513_v30 = vld [vmem:[#allocation10 + $0xe28] sm:$0xff] }
 0x3a5   : > { %4866 = vmatprep.subr.mxu1 %v4225_v31  ;;  %v4115_v31 = vld [vmem:[#allocation10 + $0x1b8] sm:$0xff] }
 0x3a6   : > { %4867 = vmatpush1.msra.mxu1 %v4224_v32  ;;  %v4512_v32 = vld [vmem:[#allocation10 + $0xe20] sm:$0xff] }
 0x3a7   : > { %4868 = vmatprep.subr.mxu1 %v4207_v33  ;;  %v4114_v33 = vld [vmem:[#allocation10 + $0x1b0] sm:$0xff] }
 0x3a8   : > { %4869 = vmatpush1.msra.mxu1 %v4206_v34  ;;  %v3205_v63 = vpop.f32.mrf.mxu1  ;;  %v4495_v34 = vld [vmem:[#allocation10 + $0xd98] sm:$0xff] }
 0x3a9   : > { %4870 = vmatprep.subr.mxu1 %v4189_v35  ;;  %v4097_v35 = vld [vmem:[#allocation10 + $0x128] sm:$0xff] }
 0x3aa   : > { %4871 = vmatpush1.msra.mxu1 %v4188_v36  ;;  %v3207_v39 = vpop.f32.mrf.mxu1  ;;  %v4494_v36 = vld [vmem:[#allocation10 + $0xd90] sm:$0xff] }
 0x3ab   : > { %4872 = vmatprep.subr.mxu1 %v4171_v37  ;;  %6949 = vmatprep.subr.msk.mxu0 %vm3288_vm3, %v3207_v39  ;;  %v4477_v37 = vld [vmem:[#allocation10 + $0xd08] sm:$0xff]  ;;  %v4476_v39 = vld [vmem:[#allocation10 + $0xd00] sm:$0xff] }
 0x3ac   : > { %4873 = vmatpush1.msra.mxu1 %v4170_v38  ;;  %6950 = vmatpush1.msk.msra.mxu0 %vm3288_vm3, %v3205_v63  ;;  %v4096_v63 = vld [vmem:[#allocation10 + $0x120] sm:$0xff]  ;;  %v4079_v38 = vld [vmem:[#allocation10 + $0x98] sm:$0xff] }
 0x3ad   : > { %4874 = vmatprep.subr.mxu1 %v4153_v40  ;;  %6951 = vmatmul.mubr.msk.f32.vlgmr.msra.gmra.mxu0 %vm3284_vm4, %v6948_v41  ;;  %v4078_v40 = vld [vmem:[#allocation10 + $0x90] sm:$0xff]  ;;  %v4459_v41 = vld [vmem:[#allocation10 + $0xc78] sm:$0xff] }
 0x3ae   : > { %4712 = vmatprep.subr.mxu0 %v4331_v42  ;;  %4875 = vmatpush1.msra.mxu1 %v4152_v43  ;;  %v4061_v42 = vld [vmem:[#allocation10 + $0x8] sm:$0xff]  ;;  %v4458_v43 = vld [vmem:[#allocation10 + $0xc70] sm:$0xff] }
 0x3af   : > { %4713 = vmatpush1.msra.mxu0 %v4330_v44  ;;  %4876 = vmatprep.subr.mxu1 %v4135_v45  ;;  %v4060_v44 = vld [vmem:[#allocation10] sm:$0xff]  ;;  %v4441_v45 = vld [vmem:[#allocation10 + $0xbe8] sm:$0xff] }
 0x3b0   : > { %4714 = vmatprep.subr.mxu0 %v4313_v46  ;;  %4877 = vmatpush1.msra.mxu1 %v4134_v47  ;;  %v4619_v46 = vld [vmem:[#allocation10 + $0x1178] sm:$0xff]  ;;  %v4440_v47 = vld [vmem:[#allocation10 + $0xbe0] sm:$0xff] }
 0x3b1   : > { %4715 = vmatpush1.msra.mxu0 %v4312_v49  ;;  %4878 = vmatprep.subr.mxu1 %v4117_v50  ;;  %v4618_v49 = vld [vmem:[#allocation10 + $0x1170] sm:$0xff]  ;;  %v4423_v50 = vld [vmem:[#allocation10 + $0xb58] sm:$0xff] }
 0x3b2   : > { %4716 = vmatprep.subr.mxu0 %v4295_v51  ;;  %4879 = vmatpush1.msra.mxu1 %v4116_v52  ;;  %v4601_v51 = vld [vmem:[#allocation10 + $0x10e8] sm:$0xff]  ;;  %v4422_v52 = vld [vmem:[#allocation10 + $0xb50] sm:$0xff] }
 0x3b3   : > { %4717 = vmatpush1.msra.mxu0 %v4294_v53  ;;  %4880 = vmatprep.subr.mxu1 %v4099_v54  ;;  %v4600_v53 = vld [vmem:[#allocation10 + $0x10e0] sm:$0xff]  ;;  %v4405_v54 = vld [vmem:[#allocation10 + $0xac8] sm:$0xff] }
 0x3b4   : > { %4718 = vmatprep.subr.mxu0 %v4277_v55  ;;  %4881 = vmatpush1.msra.mxu1 %v4098_v57  ;;  %v4583_v55 = vld [vmem:[#allocation10 + $0x1058] sm:$0xff]  ;;  %v4404_v57 = vld [vmem:[#allocation10 + $0xac0] sm:$0xff] }
 0x3b5   : > { %4719 = vmatpush1.msra.mxu0 %v4276_v58  ;;  %4882 = vmatprep.subr.mxu1 %v4081_v59  ;;  %v4582_v58 = vld [vmem:[#allocation10 + $0x1050] sm:$0xff]  ;;  %v4387_v59 = vld [vmem:[#allocation10 + $0xa38] sm:$0xff] }
 0x3b6   : > { %4720 = vmatprep.subr.mxu0 %v4259_v60  ;;  %4883 = vmatpush1.msra.mxu1 %v4080_v61  ;;  %v4565_v60 = vld [vmem:[#allocation10 + $0xfc8] sm:$0xff]  ;;  %v4386_v61 = vld [vmem:[#allocation10 + $0xa30] sm:$0xff] }
 0x3b7   : > { %4721 = vmatpush1.msra.mxu0 %v4258_v62  ;;  %4884 = vmatprep.subr.mxu1 %v4063_v0  ;;  %v4564_v62 = vld [vmem:[#allocation10 + $0xfc0] sm:$0xff]  ;;  %v4369_v0 = vld [vmem:[#allocation10 + $0x9a8] sm:$0xff] }
 0x3b8   : > { %4722 = vmatprep.subr.mxu0 %v4241_v1  ;;  %4885 = vmatpush1.msra.mxu1 %v4062_v2  ;;  %v4547_v1 = vld [vmem:[#allocation10 + $0xf38] sm:$0xff]  ;;  %v4368_v2 = vld [vmem:[#allocation10 + $0x9a0] sm:$0xff] }
 0x3b9   : > { %4723 = vmatpush1.msra.mxu0 %v4240_v3  ;;  %4886 = vmatprep.subr.mxu1 %v4621_v4  ;;  %v4546_v3 = vld [vmem:[#allocation10 + $0xf30] sm:$0xff]  ;;  %v4351_v4 = vld [vmem:[#allocation10 + $0x918] sm:$0xff] }
 0x3ba   : > { %4724 = vmatprep.subr.mxu0 %v4223_v5  ;;  %4887 = vmatpush2.msra.mxu1 %v4620_v6  ;;  %v4529_v5 = vld [vmem:[#allocation10 + $0xea8] sm:$0xff]  ;;  %v4350_v6 = vld [vmem:[#allocation10 + $0x910] sm:$0xff] }
 0x3bb   : > { %4725 = vmatpush1.msra.mxu0 %v4222_v7  ;;  %4888 = vmatprep.subr.mxu1 %v4603_v8  ;;  %v4528_v7 = vld [vmem:[#allocation10 + $0xea0] sm:$0xff]  ;;  %v4693_v8 = vld [vmem:[#allocation10 + $0x13c8] sm:$0xff] }
 0x3bc   : > { %4726 = vmatprep.subr.mxu0 %v4205_v9  ;;  %4889 = vmatpush2.msra.mxu1 %v4602_v11  ;;  %v4511_v9 = vld [vmem:[#allocation10 + $0xe18] sm:$0xff]  ;;  %v7791_v11 = vld [vmem:[%s7556_s30] sm:$0xff] }
 0x3bd   : > { %4727 = vmatpush1.msra.mxu0 %v4204_v12  ;;  %4890 = vmatprep.subr.mxu1 %v4585_v13  ;;  %v4692_v12 = vld [vmem:[#allocation10 + $0x13c0] sm:$0xff]  ;;  %v4510_v13 = vld [vmem:[#allocation10 + $0xe10] sm:$0xff] }
 0x3be   : > { %4728 = vmatprep.subr.mxu0 %v4187_v14  ;;  %4891 = vmatpush2.msra.mxu1 %v4584_v15  ;;  %v4675_v14 = vld [vmem:[#allocation10 + $0x1338] sm:$0xff]  ;;  %v4493_v15 = vld [vmem:[#allocation10 + $0xd88] sm:$0xff] }
 0x3bf   : > { %4729 = vmatpush1.msra.mxu0 %v4186_v17  ;;  %4892 = vmatprep.subr.mxu1 %v4567_v19  ;;  %v4674_v17 = vld [vmem:[#allocation10 + $0x1330] sm:$0xff]  ;;  %v4492_v19 = vld [vmem:[#allocation10 + $0xd80] sm:$0xff] }
 0x3c0   : > { %4730 = vmatprep.subr.mxu0 %v4169_v20  ;;  %4893 = vmatpush2.msra.mxu1 %v4566_v48  ;;  %v4657_v20 = vld [vmem:[#allocation10 + $0x12a8] sm:$0xff]  ;;  %v4475_v48 = vld [vmem:[#allocation10 + $0xcf8] sm:$0xff] }
 0x3c1   : > { %4731 = vmatpush1.msra.mxu0 %v4168_v21  ;;  %4894 = vmatprep.subr.mxu1 %v4549_v22  ;;  %v4656_v21 = vld [vmem:[#allocation10 + $0x12a0] sm:$0xff]  ;;  %v4474_v22 = vld [vmem:[#allocation10 + $0xcf0] sm:$0xff] }
 0x3c2   : > { %4732 = vmatprep.subr.mxu0 %v4151_v23  ;;  %4895 = vmatpush2.msra.mxu1 %v4548_v56  ;;  %v4639_v23 = vld [vmem:[#allocation10 + $0x1218] sm:$0xff]  ;;  %v4457_v56 = vld [vmem:[#allocation10 + $0xc68] sm:$0xff] }
 0x3c3   : > { %4733 = vmatpush1.msra.mxu0 %v4150_v25  ;;  %4896 = vmatprep.subr.mxu1 %v4531_v26  ;;  %v4638_v25 = vld [vmem:[#allocation10 + $0x1210] sm:$0xff]  ;;  %v4456_v26 = vld [vmem:[#allocation10 + $0xc60] sm:$0xff] }
 0x3c4   : > { %4734 = vmatprep.subr.mxu0 %v4133_v10  ;;  %4897 = vmatpush2.msra.mxu1 %v4530_v27  ;;  %v4695_v10 = vld [vmem:[#allocation10 + $0x13d8] sm:$0xff] }
 0x3c5   : > { %4735 = vmatpush1.msra.mxu0 %v4132_v29  ;;  %4898 = vmatprep.subr.mxu1 %v4513_v30  ;;  %v4439_v27 = vld [vmem:[#allocation10 + $0xbd8] sm:$0xff]  ;;  %v4694_v29 = vld [vmem:[#allocation10 + $0x13d0] sm:$0xff] }
 0x3c6   : > { %4736 = vmatprep.subr.mxu0 %v4115_v31  ;;  %4899 = vmatpush2.msra.mxu1 %v4512_v32  ;;  %v4438_v30 = vld [vmem:[#allocation10 + $0xbd0] sm:$0xff]  ;;  %v4677_v31 = vld [vmem:[#allocation10 + $0x1348] sm:$0xff] }
 0x3c7   : > { %4737 = vmatpush1.msra.mxu0 %v4114_v33  ;;  %4900 = vmatprep.subr.mxu1 %v4495_v34  ;;  %v4421_v32 = vld [vmem:[#allocation10 + $0xb48] sm:$0xff]  ;;  %v4676_v33 = vld [vmem:[#allocation10 + $0x1340] sm:$0xff] }
 0x3c8   : > { %4738 = vmatprep.subr.mxu0 %v4097_v35  ;;  %4901 = vmatpush2.msra.mxu1 %v4494_v36  ;;  %v4420_v34 = vld [vmem:[#allocation10 + $0xb40] sm:$0xff]  ;;  %v4659_v35 = vld [vmem:[#allocation10 + $0x12b8] sm:$0xff] }
 0x3c9   : > { %4739 = vmatpush1.msra.mxu0 %v4096_v63  ;;  %4902 = vmatprep.subr.mxu1 %v4477_v37  ;;  %v4403_v36 = vld [vmem:[#allocation10 + $0xab8] sm:$0xff]  ;;  %v4658_v63 = vld [vmem:[#allocation10 + $0x12b0] sm:$0xff] }
 0x3ca   : > { %4740 = vmatprep.subr.mxu0 %v4079_v38  ;;  %4903 = vmatpush2.msra.mxu1 %v4476_v39  ;;  %v4402_v37 = vld [vmem:[#allocation10 + $0xab0] sm:$0xff]  ;;  %v4641_v38 = vld [vmem:[#allocation10 + $0x1228] sm:$0xff] }
 0x3cb   : > { %4741 = vmatpush1.msra.mxu0 %v4078_v40  ;;  %4904 = vmatprep.subr.mxu1 %v4459_v41  ;;  %v4385_v39 = vld [vmem:[#allocation10 + $0xa28] sm:$0xff]  ;;  %v4640_v40 = vld [vmem:[#allocation10 + $0x1220] sm:$0xff] }
 0x3cc   : > { %4742 = vmatprep.subr.mxu0 %v4061_v42  ;;  %4905 = vmatpush2.msra.mxu1 %v4458_v43  ;;  %v4384_v41 = vld [vmem:[#allocation10 + $0xa20] sm:$0xff]  ;;  %v4337_v42 = vld [vmem:[#allocation10 + $0x8a8] sm:$0xff]  ;;  %v4367_v43 = vld [vmem:[#allocation10 + $0x998] sm:$0xff] }
 0x3cd   : > { %4743 = vmatpush1.msra.mxu0 %v4060_v44  ;;  %4906 = vmatprep.subr.mxu1 %v4441_v45  ;;  %v4336_v44 = vld [vmem:[#allocation10 + $0x8a0] sm:$0xff]  ;;  %v4366_v45 = vld [vmem:[#allocation10 + $0x990] sm:$0xff] }
 0x3ce   : > { %4744 = vmatprep.subr.mxu0 %v4619_v46  ;;  %4907 = vmatpush2.msra.mxu1 %v4440_v47  ;;  %v4319_v46 = vld [vmem:[#allocation10 + $0x818] sm:$0xff]  ;;  %v4349_v47 = vld [vmem:[#allocation10 + $0x908] sm:$0xff] }
 0x3cf   : > { %4745 = vmatpush2.msra.mxu0 %v4618_v49  ;;  %4908 = vmatprep.subr.mxu1 %v4423_v50  ;;  %v4318_v49 = vld [vmem:[#allocation10 + $0x810] sm:$0xff]  ;;  %v4348_v50 = vld [vmem:[#allocation10 + $0x900] sm:$0xff] }
 0x3d0   : > { %4746 = vmatprep.subr.mxu0 %v4601_v51  ;;  %4909 = vmatpush2.msra.mxu1 %v4422_v52  ;;  %v4301_v51 = vld [vmem:[#allocation10 + $0x788] sm:$0xff]  ;;  %v4335_v52 = vld [vmem:[#allocation10 + $0x898] sm:$0xff] }
 0x3d1   : > { %4747 = vmatpush2.msra.mxu0 %v4600_v53  ;;  %4910 = vmatprep.subr.mxu1 %v4405_v54  ;;  %v4300_v53 = vld [vmem:[#allocation10 + $0x780] sm:$0xff]  ;;  %v4334_v54 = vld [vmem:[#allocation10 + $0x890] sm:$0xff] }
 0x3d2   : > { %4748 = vmatprep.subr.mxu0 %v4583_v55  ;;  %4911 = vmatpush2.msra.mxu1 %v4404_v57  ;;  %v4283_v55 = vld [vmem:[#allocation10 + $0x6f8] sm:$0xff]  ;;  %v4317_v57 = vld [vmem:[#allocation10 + $0x808] sm:$0xff] }
 0x3d3   : > { %4749 = vmatpush2.msra.mxu0 %v4582_v58  ;;  %4912 = vmatprep.subr.mxu1 %v4387_v59  ;;  %v4316_v58 = vld [vmem:[#allocation10 + $0x800] sm:$0xff]  ;;  %v4265_v59 = vld [vmem:[#allocation10 + $0x668] sm:$0xff] }
 0x3d4   : > { %4750 = vmatprep.subr.mxu0 %v4565_v60  ;;  %4913 = vmatpush2.msra.mxu1 %v4386_v61  ;;  %v4299_v60 = vld [vmem:[#allocation10 + $0x778] sm:$0xff]  ;;  %v4264_v61 = vld [vmem:[#allocation10 + $0x660] sm:$0xff] }
 0x3d5   : > { %4751 = vmatpush2.msra.mxu0 %v4564_v62  ;;  %4914 = vmatprep.subr.mxu1 %v4369_v0  ;;  %v4298_v62 = vld [vmem:[#allocation10 + $0x770] sm:$0xff]  ;;  %v4247_v0 = vld [vmem:[#allocation10 + $0x5d8] sm:$0xff] }
 0x3d6   : > { %4752 = vmatprep.subr.mxu0 %v4547_v1  ;;  %4915 = vmatpush2.msra.mxu1 %v4368_v2  ;;  %v4246_v1 = vld [vmem:[#allocation10 + $0x5d0] sm:$0xff]  ;;  %v4280_v2 = vld [vmem:[#allocation10 + $0x6e0] sm:$0xff] }
 0x3d7   : > { %4753 = vmatpush2.msra.mxu0 %v4546_v3  ;;  %4916 = vmatprep.subr.mxu1 %v4351_v4  ;;  %v4229_v3 = vld [vmem:[#allocation10 + $0x548] sm:$0xff]  ;;  %v4263_v4 = vld [vmem:[#allocation10 + $0x658] sm:$0xff] }
 0x3d8   : > { %4754 = vmatprep.subr.mxu0 %v4529_v5  ;;  %4917 = vmatpush2.msra.mxu1 %v4350_v6  ;;  %v4228_v5 = vld [vmem:[#allocation10 + $0x540] sm:$0xff]  ;;  %v4262_v6 = vld [vmem:[#allocation10 + $0x650] sm:$0xff] }
 0x3d9   : > { %4755 = vmatpush2.msra.mxu0 %v4528_v7  ;;  %4949 = vmatprep.subr.mxu1 %v4693_v8  ;;  %v4211_v7 = vld [vmem:[#allocation10 + $0x4b8] sm:$0xff]  ;;  %v4245_v8 = vld [vmem:[#allocation10 + $0x5c8] sm:$0xff] }
 0x3da   : > { %4756 = vmatprep.subr.mxu0 %v4511_v9  ;;  %4919 = vmatmul.mubr.f32.vlgmr.msra.gmra.mxu1 %v7791_v11  ;;  %v4210_v9 = vld [vmem:[#allocation10 + $0x4b0] sm:$0xff] }
 0x3db   : > { %4950 = vmatpush1.msra.mxu1 %v4692_v12  ;;  %4757 = vmatpush2.msra.mxu0 %v4510_v13  ;;  %v4244_v12 = vld [vmem:[#allocation10 + $0x5c0] sm:$0xff]  ;;  %v4193_v13 = vld [vmem:[#allocation10 + $0x428] sm:$0xff] }
 0x3dc   : > { %4951 = vmatprep.subr.mxu1 %v4675_v14  ;;  %4758 = vmatprep.subr.mxu0 %v4493_v15  ;;  %v4227_v14 = vld [vmem:[#allocation10 + $0x538] sm:$0xff]  ;;  %v4192_v15 = vld [vmem:[#allocation10 + $0x420] sm:$0xff] }
 0x3dd   : > { %4952 = vmatpush1.msra.mxu1 %v4674_v17  ;;  %4759 = vmatpush2.msra.mxu0 %v4492_v19  ;;  %v4226_v17 = vld [vmem:[#allocation10 + $0x530] sm:$0xff]  ;;  %v4175_v19 = vld [vmem:[#allocation10 + $0x398] sm:$0xff] }
 0x3de   : > { %4953 = vmatprep.subr.mxu1 %v4657_v20  ;;  %4760 = vmatprep.subr.mxu0 %v4475_v48  ;;  %v4209_v20 = vld [vmem:[#allocation10 + $0x4a8] sm:$0xff]  ;;  %v4174_v48 = vld [vmem:[#allocation10 + $0x390] sm:$0xff] }
 0x3df   : > { %4954 = vmatpush1.msra.mxu1 %v4656_v21  ;;  %4761 = vmatpush2.msra.mxu0 %v4474_v22  ;;  %v4208_v21 = vld [vmem:[#allocation10 + $0x4a0] sm:$0xff]  ;;  %v4157_v22 = vld [vmem:[#allocation10 + $0x308] sm:$0xff] }
 0x3e0   : > { %4955 = vmatprep.subr.mxu1 %v4639_v23  ;;  %4762 = vmatprep.subr.mxu0 %v4457_v56  ;;  %v4191_v23 = vld [vmem:[#allocation10 + $0x418] sm:$0xff]  ;;  %v4156_v56 = vld [vmem:[#allocation10 + $0x300] sm:$0xff] }
 0x3e1   : > { %4956 = vmatpush1.msra.mxu1 %v4638_v25  ;;  %4763 = vmatpush2.msra.mxu0 %v4456_v26  ;;  %v4190_v25 = vld [vmem:[#allocation10 + $0x410] sm:$0xff]  ;;  %v4139_v26 = vld [vmem:[#allocation10 + $0x278] sm:$0xff] }
 0x3e2   : > { %4989 = vmatprep.mubr.f32.mxu1 %v7315_v24  ;;  %5091 = vmatprep.subr.mxu1 %v4695_v10  ;;  %v4173_v10 = vld [vmem:[#allocation10 + $0x388] sm:$0xff] }
 0x3e3   : > { %4764 = vmatprep.subr.mxu0 %v4439_v27  ;;  %6961 = vmatmul.mubr.msk.f32.vlgmr.msra.gmra.mxu1 %vm4708_vm5, %v7769_v16  ;;  %v4138_v27 = vld [vmem:[#allocation10 + $0x270] sm:$0xff] }
 0x3e4   : > { %5092 = vmatpush1.msra.mxu1 %v4694_v29  ;;  %4765 = vmatpush2.msra.mxu0 %v4438_v30  ;;  %v4172_v29 = vld [vmem:[#allocation10 + $0x380] sm:$0xff]  ;;  %v4121_v30 = vld [vmem:[#allocation10 + $0x1e8] sm:$0xff] }
 0x3e5   : > { %5093 = vmatprep.subr.mxu1 %v4677_v31  ;;  %4766 = vmatprep.subr.mxu0 %v4421_v32  ;;  %v4155_v31 = vld [vmem:[#allocation10 + $0x2f8] sm:$0xff]  ;;  %v4120_v32 = vld [vmem:[#allocation10 + $0x1e0] sm:$0xff] }
 0x3e6   : > { %5094 = vmatpush1.msra.mxu1 %v4676_v33  ;;  %4767 = vmatpush2.msra.mxu0 %v4420_v34  ;;  %v4154_v33 = vld [vmem:[#allocation10 + $0x2f0] sm:$0xff]  ;;  %v4103_v34 = vld [vmem:[#allocation10 + $0x158] sm:$0xff] }
 0x3e7   : > { %5095 = vmatprep.subr.mxu1 %v4659_v35  ;;  %4768 = vmatprep.subr.mxu0 %v4403_v36  ;;  %v4137_v35 = vld [vmem:[#allocation10 + $0x268] sm:$0xff]  ;;  %v4102_v36 = vld [vmem:[#allocation10 + $0x150] sm:$0xff] }
 0x3e8   : > { %5096 = vmatpush1.msra.mxu1 %v4658_v63  ;;  %4769 = vmatpush2.msra.mxu0 %v4402_v37  ;;  %v4136_v63 = vld [vmem:[#allocation10 + $0x260] sm:$0xff]  ;;  %v4085_v37 = vld [vmem:[#allocation10 + $0xc8] sm:$0xff] }
 0x3e9   : > { %5097 = vmatprep.subr.mxu1 %v4641_v38  ;;  %4770 = vmatprep.subr.mxu0 %v4385_v39  ;;  %v4119_v38 = vld [vmem:[#allocation10 + $0x1d8] sm:$0xff]  ;;  %v4084_v39 = vld [vmem:[#allocation10 + $0xc0] sm:$0xff] }
 0x3ea   : > { %5098 = vmatpush1.msra.mxu1 %v4640_v40  ;;  %4771 = vmatpush2.msra.mxu0 %v4384_v41  ;;  %v4118_v40 = vld [vmem:[#allocation10 + $0x1d0] sm:$0xff]  ;;  %v4067_v41 = vld [vmem:[#allocation10 + $0x38] sm:$0xff] }
 0x3eb   : > { %5131 = vmatprep.mubr.f32.mxu1 %v7315_v24  ;;  %5138 = vmatprep.subr.mxu1 %v4337_v42  ;;  %v4101_v42 = vld [vmem:[#allocation10 + $0x148] sm:$0xff] }
 0x3ec   : > { %4772 = vmatprep.subr.mxu0 %v4367_v43  ;;  %6962 = vmatmul.mubr.msk.f32.vlgmr.msra.gmra.mxu1 %vm4708_vm5, %v7769_v16  ;;  %v4282_v16 = vld [vmem:[#allocation10 + $0x6f0] sm:$0xff] }
 0x3ed   : > { %5139 = vmatpush1.msra.mxu1 %v4336_v44  ;;  %4773 = vmatpush2.msra.mxu0 %v4366_v45  ;;  %v4066_v43 = vld [vmem:[#allocation10 + $0x30] sm:$0xff]  ;;  %v4100_v44 = vld [vmem:[#allocation10 + $0x140] sm:$0xff]  ;;  %v4625_v45 = vld [vmem:[#allocation10 + $0x11a8] sm:$0xff] }
 0x3ee   : > { %5140 = vmatprep.subr.mxu1 %v4319_v46  ;;  %4774 = vmatprep.subr.mxu0 %v4349_v47  ;;  %v4083_v46 = vld [vmem:[#allocation10 + $0xb8] sm:$0xff]  ;;  %v4624_v47 = vld [vmem:[#allocation10 + $0x11a0] sm:$0xff] }
 0x3ef   : > { %5141 = vmatpush1.msra.mxu1 %v4318_v49  ;;  %4775 = vmatpush2.msra.mxu0 %v4348_v50  ;;  %v4082_v49 = vld [vmem:[#allocation10 + $0xb0] sm:$0xff]  ;;  %v4607_v50 = vld [vmem:[#allocation10 + $0x1118] sm:$0xff] }
 0x3f0   : > { %4776 = vmatprep.mubr.f32.mxu0 %v7772_v18  ;;  %5142 = vmatprep.subr.mxu1 %v4301_v51  ;;  %v4281_v18 = vld [vmem:[#allocation10 + $0x6e8] sm:$0xff] }
 0x3f1   : > { %4777 = vmatmul.mubr.f32.vlgmr.msra.gmra.mxu0 %v7791_v11  ;;  %4996 = vmatprep.subr.mxu0 %v4335_v52  ;;  %v4065_v51 = vld [vmem:[#allocation10 + $0x28] sm:$0xff]  ;;  %v4606_v52 = vld [vmem:[#allocation10 + $0x1110] sm:$0xff] }
 0x3f2   : > { %5143 = vmatpush1.msra.mxu1 %v4300_v53  ;;  %4997 = vmatpush1.msra.mxu0 %v4334_v54  ;;  %v4064_v53 = vld [vmem:[#allocation10 + $0x20] sm:$0xff]  ;;  %v4589_v54 = vld [vmem:[#allocation10 + $0x1088] sm:$0xff] }
 0x3f3   : > { %5144 = vmatprep.subr.mxu1 %v4283_v55  ;;  %4998 = vmatprep.subr.mxu0 %v4317_v57  ;;  %v4623_v55 = vld [vmem:[#allocation10 + $0x1198] sm:$0xff]  ;;  %v4588_v57 = vld [vmem:[#allocation10 + $0x1080] sm:$0xff] }
 0x3f4   : > { %5145 = vmatpush1.msra.mxu1 %v4282_v16  ;;  %4999 = vmatpush1.msra.mxu0 %v4316_v58  ;;  %v4622_v16 = vld [vmem:[#allocation10 + $0x1190] sm:$0xff]  ;;  %v4571_v58 = vld [vmem:[#allocation10 + $0xff8] sm:$0xff] }
 0x3f5   : > { %5146 = vmatprep.subr.mxu1 %v4265_v59  ;;  %5000 = vmatprep.subr.mxu0 %v4299_v60  ;;  %v4605_v59 = vld [vmem:[#allocation10 + $0x1108] sm:$0xff]  ;;  %v4570_v60 = vld [vmem:[#allocation10 + $0xff0] sm:$0xff] }
 0x3f6   : > { %5147 = vmatpush1.msra.mxu1 %v4264_v61  ;;  %5001 = vmatpush1.msra.mxu0 %v4298_v62  ;;  %v4604_v61 = vld [vmem:[#allocation10 + $0x1100] sm:$0xff]  ;;  %v4553_v62 = vld [vmem:[#allocation10 + $0xf68] sm:$0xff] }
 0x3f7   : > { %5148 = vmatprep.subr.mxu1 %v4247_v0  ;;  %5002 = vmatprep.subr.mxu0 %v4281_v18  ;;  %v4587_v0 = vld [vmem:[#allocation10 + $0x1078] sm:$0xff]  ;;  %v4552_v18 = vld [vmem:[#allocation10 + $0xf60] sm:$0xff] }
 0x3f8   : > { %5149 = vmatpush1.msra.mxu1 %v4246_v1  ;;  %5003 = vmatpush1.msra.mxu0 %v4280_v2  ;;  %v4586_v1 = vld [vmem:[#allocation10 + $0x1070] sm:$0xff]  ;;  %v4535_v2 = vld [vmem:[#allocation10 + $0xed8] sm:$0xff] }
 0x3f9   : > { %5150 = vmatprep.subr.mxu1 %v4229_v3  ;;  %5004 = vmatprep.subr.mxu0 %v4263_v4  ;;  %v4569_v3 = vld [vmem:[#allocation10 + $0xfe8] sm:$0xff]  ;;  %v4534_v4 = vld [vmem:[#allocation10 + $0xed0] sm:$0xff] }
 0x3fa   : > { %5151 = vmatpush1.msra.mxu1 %v4228_v5  ;;  %5005 = vmatpush1.msra.mxu0 %v4262_v6  ;;  %v4568_v5 = vld [vmem:[#allocation10 + $0xfe0] sm:$0xff]  ;;  %v4517_v6 = vld [vmem:[#allocation10 + $0xe48] sm:$0xff] }
 0x3fb   : > { %5152 = vmatprep.subr.mxu1 %v4211_v7  ;;  %5006 = vmatprep.subr.mxu0 %v4245_v8  ;;  %v4551_v7 = vld [vmem:[#allocation10 + $0xf58] sm:$0xff]  ;;  %v4516_v8 = vld [vmem:[#allocation10 + $0xe40] sm:$0xff] }
 0x3fc   : > { %5153 = vmatpush1.msra.mxu1 %v4210_v9  ;;  %5007 = vmatpush1.msra.mxu0 %v4244_v12  ;;  %v4550_v9 = vld [vmem:[#allocation10 + $0xf50] sm:$0xff]  ;;  %v4499_v12 = vld [vmem:[#allocation10 + $0xdb8] sm:$0xff] }
 0x3fd   : > { %5154 = vmatprep.subr.mxu1 %v4193_v13  ;;  %5008 = vmatprep.subr.mxu0 %v4227_v14  ;;  %v4533_v13 = vld [vmem:[#allocation10 + $0xec8] sm:$0xff]  ;;  %v4498_v14 = vld [vmem:[#allocation10 + $0xdb0] sm:$0xff] }
 0x3fe   : > { %5155 = vmatpush1.msra.mxu1 %v4192_v15  ;;  %5009 = vmatpush1.msra.mxu0 %v4226_v17  ;;  %v4532_v15 = vld [vmem:[#allocation10 + $0xec0] sm:$0xff]  ;;  %v4481_v17 = vld [vmem:[#allocation10 + $0xd28] sm:$0xff] }
 0x3ff   : > { %5156 = vmatprep.subr.mxu1 %v4175_v19  ;;  %5010 = vmatprep.subr.mxu0 %v4209_v20  ;;  %v4515_v19 = vld [vmem:[#allocation10 + $0xe38] sm:$0xff]  ;;  %v4480_v20 = vld [vmem:[#allocation10 + $0xd20] sm:$0xff] }
 0x400   : > { %5157 = vmatpush1.msra.mxu1 %v4174_v48  ;;  %5011 = vmatpush1.msra.mxu0 %v4208_v21  ;;  %v4514_v48 = vld [vmem:[#allocation10 + $0xe30] sm:$0xff]  ;;  %v4463_v21 = vld [vmem:[#allocation10 + $0xc98] sm:$0xff] }
 0x401   : > { %5158 = vmatprep.subr.mxu1 %v4157_v22  ;;  %5012 = vmatprep.subr.mxu0 %v4191_v23  ;;  %v4497_v22 = vld [vmem:[#allocation10 + $0xda8] sm:$0xff]  ;;  %v4462_v23 = vld [vmem:[#allocation10 + $0xc90] sm:$0xff] }
 0x402   : > { %5159 = vmatpush1.msra.mxu1 %v4156_v56  ;;  %5013 = vmatpush1.msra.mxu0 %v4190_v25  ;;  %v4496_v56 = vld [vmem:[#allocation10 + $0xda0] sm:$0xff]  ;;  %v4445_v25 = vld [vmem:[#allocation10 + $0xc08] sm:$0xff] }
 0x403   : > { %5160 = vmatprep.subr.mxu1 %v4139_v26  ;;  %5014 = vmatprep.subr.mxu0 %v4173_v10  ;;  %v4479_v26 = vld [vmem:[#allocation10 + $0xd18] sm:$0xff]  ;;  %v4444_v10 = vld [vmem:[#allocation10 + $0xc00] sm:$0xff] }
 0x404   : > { %5161 = vmatpush1.msra.mxu1 %v4138_v27  ;;  %5015 = vmatpush1.msra.mxu0 %v4172_v29  ;;  %v4478_v27 = vld [vmem:[#allocation10 + $0xd10] sm:$0xff]  ;;  %v4427_v29 = vld [vmem:[#allocation10 + $0xb78] sm:$0xff] }
 0x405   : > { %5162 = vmatprep.subr.mxu1 %v4121_v30  ;;  %5016 = vmatprep.subr.mxu0 %v4155_v31  ;;  %v4461_v30 = vld [vmem:[#allocation10 + $0xc88] sm:$0xff]  ;;  %v4426_v31 = vld [vmem:[#allocation10 + $0xb70] sm:$0xff] }
 0x406   : > { %5163 = vmatpush1.msra.mxu1 %v4120_v32  ;;  %5017 = vmatpush1.msra.mxu0 %v4154_v33  ;;  %v4460_v32 = vld [vmem:[#allocation10 + $0xc80] sm:$0xff]  ;;  %v4409_v33 = vld [vmem:[#allocation10 + $0xae8] sm:$0xff] }
 0x407   : > { %5164 = vmatprep.subr.mxu1 %v4103_v34  ;;  %5018 = vmatprep.subr.mxu0 %v4137_v35  ;;  %v4443_v34 = vld [vmem:[#allocation10 + $0xbf8] sm:$0xff]  ;;  %v4408_v35 = vld [vmem:[#allocation10 + $0xae0] sm:$0xff] }
 0x408   : > { %5165 = vmatpush1.msra.mxu1 %v4102_v36  ;;  %5019 = vmatpush1.msra.mxu0 %v4136_v63  ;;  %v4442_v36 = vld [vmem:[#allocation10 + $0xbf0] sm:$0xff]  ;;  %v4391_v63 = vld [vmem:[#allocation10 + $0xa58] sm:$0xff] }
 0x409   : > { %5166 = vmatprep.subr.mxu1 %v4085_v37  ;;  %5020 = vmatprep.subr.mxu0 %v4119_v38  ;;  %v4425_v37 = vld [vmem:[#allocation10 + $0xb68] sm:$0xff]  ;;  %v4390_v38 = vld [vmem:[#allocation10 + $0xa50] sm:$0xff] }
 0x40a   : > { %5167 = vmatpush1.msra.mxu1 %v4084_v39  ;;  %5021 = vmatpush1.msra.mxu0 %v4118_v40  ;;  %v4424_v39 = vld [vmem:[#allocation10 + $0xb60] sm:$0xff]  ;;  %v4373_v40 = vld [vmem:[#allocation10 + $0x9c8] sm:$0xff] }
 0x40b   : > { %5168 = vmatprep.subr.mxu1 %v4067_v41  ;;  %5022 = vmatprep.subr.mxu0 %v4101_v42  ;;  %v4407_v41 = vld [vmem:[#allocation10 + $0xad8] sm:$0xff]  ;;  %v4372_v42 = vld [vmem:[#allocation10 + $0x9c0] sm:$0xff] }
 0x40c   : > { %5169 = vmatpush1.msra.mxu1 %v4066_v43  ;;  %5023 = vmatpush1.msra.mxu0 %v4100_v44  ;;  %v4406_v43 = vld [vmem:[#allocation10 + $0xad0] sm:$0xff]  ;;  %v4355_v44 = vld [vmem:[#allocation10 + $0x938] sm:$0xff] }
 0x40d   : > { %5170 = vmatprep.subr.mxu1 %v4625_v45  ;;  %5024 = vmatprep.subr.mxu0 %v4083_v46  ;;  %v4389_v45 = vld [vmem:[#allocation10 + $0xa48] sm:$0xff]  ;;  %v4354_v46 = vld [vmem:[#allocation10 + $0x930] sm:$0xff] }
 0x40e   : > { %5171 = vmatpush2.msra.mxu1 %v4624_v47  ;;  %5025 = vmatpush1.msra.mxu0 %v4082_v49  ;;  %v4388_v47 = vld [vmem:[#allocation10 + $0xa40] sm:$0xff]  ;;  %v4699_v49 = vld [vmem:[#allocation10 + $0x13f8] sm:$0xff] }
 0x40f   : > { %5172 = vmatprep.subr.mxu1 %v4607_v50  ;;  %5026 = vmatprep.subr.mxu0 %v4065_v51  ;;  %v4371_v50 = vld [vmem:[#allocation10 + $0x9b8] sm:$0xff]  ;;  %v4698_v51 = vld [vmem:[#allocation10 + $0x13f0] sm:$0xff] }
 0x410   : > { %5173 = vmatpush2.msra.mxu1 %v4606_v52  ;;  %5027 = vmatpush1.msra.mxu0 %v4064_v53  ;;  %v4370_v52 = vld [vmem:[#allocation10 + $0x9b0] sm:$0xff] }
 0x411   : > { %5174 = vmatprep.subr.mxu1 %v4589_v54  ;;  %5028 = vmatprep.subr.mxu0 %v4623_v55  ;;  %v7803_v53 = vld [vmem:[%s7556_s30 + $0x8] sm:$0xff]  ;;  %v4681_v54 = vld [vmem:[#allocation10 + $0x1368] sm:$0xff] }
 0x412   : > { %5175 = vmatpush2.msra.mxu1 %v4588_v57  ;;  %5029 = vmatpush2.msra.mxu0 %v4622_v16  ;;  %v4353_v55 = vld [vmem:[#allocation10 + $0x928] sm:$0xff]  ;;  %v4680_v57 = vld [vmem:[#allocation10 + $0x1360] sm:$0xff] }
 0x413   : > { %5176 = vmatprep.subr.mxu1 %v4571_v58  ;;  %5030 = vmatprep.subr.mxu0 %v4605_v59  ;;  %v4352_v16 = vld [vmem:[#allocation10 + $0x920] sm:$0xff]  ;;  %v4663_v58 = vld [vmem:[#allocation10 + $0x12d8] sm:$0xff]  ;;  %v4697_v59 = vld [vmem:[#allocation10 + $0x13e8] sm:$0xff] }
 0x414   : > { %5177 = vmatpush2.msra.mxu1 %v4570_v60  ;;  %5031 = vmatpush2.msra.mxu0 %v4604_v61  ;;  %v4662_v60 = vld [vmem:[#allocation10 + $0x12d0] sm:$0xff]  ;;  %v4696_v61 = vld [vmem:[#allocation10 + $0x13e0] sm:$0xff] }
 0x415   : > { %5178 = vmatprep.subr.mxu1 %v4553_v62  ;;  %5032 = vmatprep.subr.mxu0 %v4587_v0  ;;  %v4645_v62 = vld [vmem:[#allocation10 + $0x1248] sm:$0xff]  ;;  %v4679_v0 = vld [vmem:[#allocation10 + $0x1358] sm:$0xff] }
 0x416   : > { %5179 = vmatpush2.msra.mxu1 %v4552_v18  ;;  %5033 = vmatpush2.msra.mxu0 %v4586_v1  ;;  %v4644_v18 = vld [vmem:[#allocation10 + $0x1240] sm:$0xff]  ;;  %v4678_v1 = vld [vmem:[#allocation10 + $0x1350] sm:$0xff] }
 0x417   : > { %5180 = vmatprep.subr.mxu1 %v4535_v2  ;;  %5034 = vmatprep.subr.mxu0 %v4569_v3  ;;  %v4341_v2 = vld [vmem:[#allocation10 + $0x8c8] sm:$0xff] }
 0x418   : > { %5181 = vmatpush2.msra.mxu1 %v4534_v4  ;;  %5035 = vmatpush2.msra.mxu0 %v4568_v5  ;;  %v4661_v3 = vld [vmem:[#allocation10 + $0x12c8] sm:$0xff]  ;;  %v4340_v4 = vld [vmem:[#allocation10 + $0x8c0] sm:$0xff] }
 0x419   : > { %5182 = vmatprep.subr.mxu1 %v4517_v6  ;;  %5036 = vmatprep.subr.mxu0 %v4551_v7  ;;  %v4660_v5 = vld [vmem:[#allocation10 + $0x12c0] sm:$0xff]  ;;  %v4323_v6 = vld [vmem:[#allocation10 + $0x838] sm:$0xff] }
 0x41a   : > { %5183 = vmatpush2.msra.mxu1 %v4516_v8  ;;  %5037 = vmatpush2.msra.mxu0 %v4550_v9  ;;  %v4643_v7 = vld [vmem:[#allocation10 + $0x1238] sm:$0xff]  ;;  %v4322_v8 = vld [vmem:[#allocation10 + $0x830] sm:$0xff] }
 0x41b   : > { %5184 = vmatprep.subr.mxu1 %v4499_v12  ;;  %5038 = vmatprep.subr.mxu0 %v4533_v13  ;;  %v4642_v9 = vld [vmem:[#allocation10 + $0x1230] sm:$0xff]  ;;  %v4305_v12 = vld [vmem:[#allocation10 + $0x7a8] sm:$0xff]  ;;  %v4339_v13 = vld [vmem:[#allocation10 + $0x8b8] sm:$0xff] }
 0x41c   : > { %5185 = vmatpush2.msra.mxu1 %v4498_v14  ;;  %5039 = vmatpush2.msra.mxu0 %v4532_v15  ;;  %v4304_v14 = vld [vmem:[#allocation10 + $0x7a0] sm:$0xff]  ;;  %v4338_v15 = vld [vmem:[#allocation10 + $0x8b0] sm:$0xff] }
 0x41d   : > { %5186 = vmatprep.subr.mxu1 %v4481_v17  ;;  %5040 = vmatprep.subr.mxu0 %v4515_v19  ;;  %v4287_v17 = vld [vmem:[#allocation10 + $0x718] sm:$0xff]  ;;  %v4321_v19 = vld [vmem:[#allocation10 + $0x828] sm:$0xff] }
 0x41e   : > { %5187 = vmatpush2.msra.mxu1 %v4480_v20  ;;  %5041 = vmatpush2.msra.mxu0 %v4514_v48  ;;  %v4286_v20 = vld [vmem:[#allocation10 + $0x710] sm:$0xff]  ;;  %v4320_v48 = vld [vmem:[#allocation10 + $0x820] sm:$0xff] }
 0x41f   : > { %5188 = vmatprep.subr.mxu1 %v4463_v21  ;;  %5042 = vmatprep.subr.mxu0 %v4497_v22  ;;  %v4269_v21 = vld [vmem:[#allocation10 + $0x688] sm:$0xff]  ;;  %v4303_v22 = vld [vmem:[#allocation10 + $0x798] sm:$0xff] }
 0x420   : > { %5189 = vmatpush2.msra.mxu1 %v4462_v23  ;;  %5043 = vmatpush2.msra.mxu0 %v4496_v56  ;;  %v4268_v23 = vld [vmem:[#allocation10 + $0x680] sm:$0xff]  ;;  %v4302_v56 = vld [vmem:[#allocation10 + $0x790] sm:$0xff] }
 0x421   : > { %5190 = vmatprep.subr.mxu1 %v4445_v25  ;;  %5044 = vmatprep.subr.mxu0 %v4479_v26  ;;  %v4251_v25 = vld [vmem:[#allocation10 + $0x5f8] sm:$0xff]  ;;  %v4285_v26 = vld [vmem:[#allocation10 + $0x708] sm:$0xff] }
 0x422   : > { %5191 = vmatpush2.msra.mxu1 %v4444_v10  ;;  %5045 = vmatpush2.msra.mxu0 %v4478_v27  ;;  %v4250_v10 = vld [vmem:[#allocation10 + $0x5f0] sm:$0xff]  ;;  %v4284_v27 = vld [vmem:[#allocation10 + $0x700] sm:$0xff] }
 0x423   : > { %5192 = vmatprep.subr.mxu1 %v4427_v29  ;;  %5046 = vmatprep.subr.mxu0 %v4461_v30  ;;  %v4233_v29 = vld [vmem:[#allocation10 + $0x568] sm:$0xff]  ;;  %v4267_v30 = vld [vmem:[#allocation10 + $0x678] sm:$0xff] }
 0x424   : > { %5193 = vmatpush2.msra.mxu1 %v4426_v31  ;;  %5047 = vmatpush2.msra.mxu0 %v4460_v32  ;;  %v4232_v31 = vld [vmem:[#allocation10 + $0x560] sm:$0xff]  ;;  %v4266_v32 = vld [vmem:[#allocation10 + $0x670] sm:$0xff] }
 0x425   : > { %5194 = vmatprep.subr.mxu1 %v4409_v33  ;;  %5048 = vmatprep.subr.mxu0 %v4443_v34  ;;  %v4215_v34 = vld [vmem:[#allocation10 + $0x4d8] sm:$0xff] }
 0x426   : > { %5195 = vmatpush2.msra.mxu1 %v4408_v35  ;;  %5049 = vmatpush2.msra.mxu0 %v4442_v36  ;;  %v4249_v35 = vld [vmem:[#allocation10 + $0x5e8] sm:$0xff]  ;;  %v4214_v36 = vld [vmem:[#allocation10 + $0x4d0] sm:$0xff] }
 0x427   : > { %5196 = vmatprep.subr.mxu1 %v4391_v63  ;;  %5050 = vmatprep.subr.mxu0 %v4425_v37  ;;  %v4248_v63 = vld [vmem:[#allocation10 + $0x5e0] sm:$0xff]  ;;  %v4197_v37 = vld [vmem:[#allocation10 + $0x448] sm:$0xff] }
 0x428   : > { %5197 = vmatpush2.msra.mxu1 %v4390_v38  ;;  %5051 = vmatpush2.msra.mxu0 %v4424_v39  ;;  %v4231_v38 = vld [vmem:[#allocation10 + $0x558] sm:$0xff]  ;;  %v4196_v39 = vld [vmem:[#allocation10 + $0x440] sm:$0xff] }
 0x429   : > { %5198 = vmatprep.subr.mxu1 %v4373_v40  ;;  %5052 = vmatprep.subr.mxu0 %v4407_v41  ;;  %v4230_v40 = vld [vmem:[#allocation10 + $0x550] sm:$0xff] }
 0x42a   : > { %5199 = vmatpush2.msra.mxu1 %v4372_v42  ;;  %5053 = vmatpush2.msra.mxu0 %v4406_v43  ;;  %v4179_v42 = vld [vmem:[#allocation10 + $0x3b8] sm:$0xff]  ;;  %v4213_v43 = vld [vmem:[#allocation10 + $0x4c8] sm:$0xff] }
 0x42b   : > { %5200 = vmatprep.subr.mxu1 %v4355_v44  ;;  %5054 = vmatprep.subr.mxu0 %v4389_v45  ;;  %v4178_v44 = vld [vmem:[#allocation10 + $0x3b0] sm:$0xff]  ;;  %v4212_v45 = vld [vmem:[#allocation10 + $0x4c0] sm:$0xff] }
 0x42c   : > { %5201 = vmatpush2.msra.mxu1 %v4354_v46  ;;  %5055 = vmatpush2.msra.mxu0 %v4388_v47  ;;  %v4161_v46 = vld [vmem:[#allocation10 + $0x328] sm:$0xff]  ;;  %v4195_v47 = vld [vmem:[#allocation10 + $0x438] sm:$0xff] }
 0x42d   : > { %5202 = vmatprep.mubr.f32.mxu1 %v7803_v53  ;;  %5375 = vmatprep.subr.mxu1 %v4699_v49  ;;  %v4160_v49 = vld [vmem:[#allocation10 + $0x320] sm:$0xff] }
 0x42e   : > { %5056 = vmatprep.subr.mxu0 %v4371_v50  ;;  %5203 = vmatmul.mubr.f32.vlgmr.msra.gmra.mxu1 %v7791_v11  ;;  %v4194_v50 = vld [vmem:[#allocation10 + $0x430] sm:$0xff] }
 0x42f   : > { %5376 = vmatpush1.msra.mxu1 %v4698_v51  ;;  %5057 = vmatpush2.msra.mxu0 %v4370_v52  ;;  %v4143_v52 = vld [vmem:[#allocation10 + $0x298] sm:$0xff] }
 0x430   : > { %5377 = vmatprep.subr.mxu1 %v4681_v54  ;;  %5058 = vmatprep.subr.mxu0 %v4353_v55  ;;  %v4177_v54 = vld [vmem:[#allocation10 + $0x3a8] sm:$0xff]  ;;  %v4142_v55 = vld [vmem:[#allocation10 + $0x290] sm:$0xff] }
 0x431   : > { %5378 = vmatpush1.msra.mxu1 %v4680_v57  ;;  %5059 = vmatpush2.msra.mxu0 %v4352_v16  ;;  %v4176_v57 = vld [vmem:[#allocation10 + $0x3a0] sm:$0xff]  ;;  %v4125_v16 = vld [vmem:[#allocation10 + $0x208] sm:$0xff] }
 0x432   : > { %5060 = vmatprep.mubr.f32.mxu0 %v7803_v53  ;;  %5379 = vmatprep.subr.mxu1 %v4663_v58  ;;  %v4159_v58 = vld [vmem:[#allocation10 + $0x318] sm:$0xff] }
 0x433   : > { %5061 = vmatmul.mubr.f32.vlgmr.msra.gmra.mxu0 %v7791_v11  ;;  %5233 = vmatprep.subr.mxu0 %v4697_v59  ;;  %v7811_v11 = vld [vmem:[%s7556_s30 + $0x10] sm:$0xff] }
 0x434   : > { %5380 = vmatpush1.msra.mxu1 %v4662_v60  ;;  %5234 = vmatpush1.msra.mxu0 %v4696_v61  ;;  %v4124_v59 = vld [vmem:[#allocation10 + $0x200] sm:$0xff]  ;;  %v4158_v60 = vld [vmem:[#allocation10 + $0x310] sm:$0xff] }
 0x435   : > { %5381 = vmatprep.subr.mxu1 %v4645_v62  ;;  %5235 = vmatprep.subr.mxu0 %v4679_v0  ;;  %v4107_v62 = vld [vmem:[#allocation10 + $0x178] sm:$0xff]  ;;  %v4141_v0 = vld [vmem:[#allocation10 + $0x288] sm:$0xff] }
 0x436   : > { %5382 = vmatpush1.msra.mxu1 %v4644_v18  ;;  %5236 = vmatpush1.msra.mxu0 %v4678_v1  ;;  %v4106_v18 = vld [vmem:[#allocation10 + $0x170] sm:$0xff]  ;;  %v4140_v1 = vld [vmem:[#allocation10 + $0x280] sm:$0xff] }
 0x437   : > { %5415 = vmatprep.mubr.f32.mxu1 %v7315_v24  ;;  %5422 = vmatprep.subr.mxu1 %v4341_v2  ;;  %v4089_v2 = vld [vmem:[#allocation10 + $0xe8] sm:$0xff] }
 0x438   : > { %5237 = vmatprep.subr.mxu0 %v4661_v3  ;;  %6964 = vmatmul.mubr.msk.f32.vlgmr.msra.gmra.mxu1 %vm4708_vm5, %v7811_v11  ;;  %v4123_v3 = vld [vmem:[#allocation10 + $0x1f8] sm:$0xff] }
 0x439   : > { %5423 = vmatpush1.msra.mxu1 %v4340_v4  ;;  %5238 = vmatpush1.msra.mxu0 %v4660_v5  ;;  %v4088_v4 = vld [vmem:[#allocation10 + $0xe0] sm:$0xff]  ;;  %v4122_v5 = vld [vmem:[#allocation10 + $0x1f0] sm:$0xff] }
 0x43a   : > { %5424 = vmatprep.subr.mxu1 %v4323_v6  ;;  %5239 = vmatprep.subr.mxu0 %v4643_v7  ;;  %v4071_v7 = vld [vmem:[#allocation10 + $0x58] sm:$0xff] }
 0x43b   : > { %5425 = vmatpush1.msra.mxu1 %v4322_v8  ;;  %5240 = vmatpush1.msra.mxu0 %v4642_v9  ;;  %v4105_v8 = vld [vmem:[#allocation10 + $0x168] sm:$0xff]  ;;  %v4070_v9 = vld [vmem:[#allocation10 + $0x50] sm:$0xff] }
 0x43c   : > { %5273 = vmatprep.mubr.f32.mxu0 %v7315_v24  ;;  %5426 = vmatprep.subr.mxu1 %v4305_v12  ;;  %v4104_v12 = vld [vmem:[#allocation10 + $0x160] sm:$0xff] }
 0x43d   : > { %6963 = vmatmul.mubr.msk.f32.vlgmr.msra.gmra.mxu0 %vm4708_vm5, %v7811_v11  ;;  %5280 = vmatprep.subr.mxu0 %v4339_v13  ;;  %v7818_v33 = vpop.f32.mrf.mxu1  ;;  %v4629_v13 = vld [vmem:[#allocation10 + $0x11c8] sm:$0xff] }
 0x43e   : > { %5427 = vmatpush1.msra.mxu1 %v4304_v14  ;;  %5281 = vmatpush1.msra.mxu0 %v4338_v15  ;;  %v4087_v14 = vld [vmem:[#allocation10 + $0xd8] sm:$0xff] }
 0x43f   : > { %5428 = vmatprep.subr.mxu1 %v4287_v17  ;;  %5282 = vmatprep.subr.mxu0 %v4321_v19  ;;  %v7820_v41 = vpop.f32.mrf.mxu1  ;;  %v4628_v17 = vld [vmem:[#allocation10 + $0x11c0] sm:$0xff]  ;;  %v4086_v19 = vld [vmem:[#allocation10 + $0xd0] sm:$0xff] }
 0x440   : > { %5429 = vmatpush1.msra.mxu1 %v4286_v20  ;;  %5283 = vmatpush1.msra.mxu0 %v4320_v48  ;;  %v4611_v48 = vld [vmem:[#allocation10 + $0x1138] sm:$0xff] }
 0x441   : > { %5430 = vmatprep.subr.mxu1 %v4269_v21  ;;  %5284 = vmatprep.subr.mxu0 %v4303_v22  ;;  %v3441_v51 = vpop.f32.mrf.mxu1  ;;  %v4069_v21 = vld [vmem:[#allocation10 + $0x48] sm:$0xff] }
 0x442   : > { %5431 = vmatpush1.msra.mxu1 %v4268_v23  ;;  %5285 = vmatpush1.msra.mxu0 %v4302_v56  ;;  %v3442_v15 = vadd.f32 %v3441_v51, %v7818_v33  ;;  %v4610_v23 = vld [vmem:[#allocation10 + $0x1130] sm:$0xff]  ;;  %v4068_v56 = vld [vmem:[#allocation10 + $0x40] sm:$0xff]  ;;  %v4609_v33 = vld [vmem:[#allocation10 + $0x1128] sm:$0xff] }
 0x443   : > { %5432 = vmatprep.subr.mxu1 %v4251_v25  ;;  %5286 = vmatprep.subr.mxu0 %v4285_v26  ;;  %v3443_v61 = vpop.f32.mrf.mxu1  ;;  %v4593_v26 = vld [vmem:[#allocation10 + $0x10a8] sm:$0xff]  ;;  %v4555_v51 = vld [vmem:[#allocation10 + $0xf78] sm:$0xff] }
 0x444   : > { %5433 = vmatpush1.msra.mxu1 %v4250_v10  ;;  %5287 = vmatpush1.msra.mxu0 %v4284_v27  ;;  %v3444_v22 = vadd.f32 %v3443_v61, %v7820_v41  ;;  %v4627_v10 = vld [vmem:[#allocation10 + $0x11b8] sm:$0xff]  ;;  %v4590_v41 = vld [vmem:[#allocation10 + $0x1090] sm:$0xff]  ;;  %v4536_v61 = vld [vmem:[#allocation10 + $0xee0] sm:$0xff] }
 0x445   : > { %5434 = vmatprep.subr.mxu1 %v4233_v29  ;;  %5288 = vmatprep.subr.mxu0 %v4267_v30  ;;  %v3523_v6 = vpop.f32.mrf.mxu1  ;;  %v4592_v29 = vld [vmem:[#allocation10 + $0x10a0] sm:$0xff]  ;;  %v4626_v30 = vld [vmem:[#allocation10 + $0x11b0] sm:$0xff] }
 0x446   : > { %5435 = vmatpush1.msra.mxu1 %v4232_v31  ;;  %5289 = vmatpush1.msra.mxu0 %v4266_v32  ;;  %v3528_v27 = vadd.f32 %v3523_v6, %v3442_v15  ;;  %v4575_v32 = vld [vmem:[#allocation10 + $0x1018] sm:$0xff]  ;;  %v4501_v6 = vld [vmem:[#allocation10 + $0xdc8] sm:$0xff]  ;;  %v4448_v15 = vld [vmem:[#allocation10 + $0xc20] sm:$0xff] }
 0x447   : > { %5436 = vmatprep.subr.mxu1 %v4215_v34  ;;  %5290 = vmatprep.subr.mxu0 %v4249_v35  ;;  %v3525_v20 = vpop.f32.mrf.mxu1  ;;  %v4574_v35 = vld [vmem:[#allocation10 + $0x1010] sm:$0xff] }
 0x448   : > { %5437 = vmatpush1.msra.mxu1 %v4214_v36  ;;  %5291 = vmatpush1.msra.mxu0 %v4248_v63  ;;  %v3529_v34 = vadd.f32 %v3525_v20, %v3444_v22  ;;  %v4608_v36 = vld [vmem:[#allocation10 + $0x1120] sm:$0xff]  ;;  %v4039_v20 = vpop.permute.xlu0 %4038 }
 0x449   : > { %5438 = vmatprep.subr.mxu1 %v4197_v37  ;;  %5292 = vmatprep.subr.mxu0 %v4231_v38  ;;  %v3691_v31 = vpop.f32.mrf.mxu1  ;;  %v4557_v37 = vld [vmem:[#allocation10 + $0xf88] sm:$0xff]  ;;  %v4591_v38 = vld [vmem:[#allocation10 + $0x1098] sm:$0xff] }
 0x44a   : > { %5439 = vmatpush1.msra.mxu1 %v4196_v39  ;;  %5293 = vmatpush1.msra.mxu0 %v4230_v40  ;;  %v4556_v40 = vld [vmem:[#allocation10 + $0xf80] sm:$0xff] }
 0x44b   : > { %5440 = vmatprep.subr.mxu1 %v4179_v42  ;;  %5294 = vmatprep.subr.mxu0 %v4213_v43  ;;  %v3693_v42 = vpop.f32.mrf.mxu1  ;;  %v4539_v43 = vld [vmem:[#allocation10 + $0xef8] sm:$0xff] }
 0x44c   : > { %5441 = vmatpush1.msra.mxu1 %v4178_v44  ;;  %5295 = vmatpush1.msra.mxu0 %v4212_v45  ;;  %v4573_v44 = vld [vmem:[#allocation10 + $0x1008] sm:$0xff] }
 0x44d   : > { %5442 = vmatprep.subr.mxu1 %v4161_v46  ;;  %5296 = vmatprep.subr.mxu0 %v4195_v47  ;;  %v3607_v25 = vpop.f32.mrf.mxu0  ;;  %v4538_v46 = vld [vmem:[#allocation10 + $0xef0] sm:$0xff]  ;;  %v4572_v47 = vld [vmem:[#allocation10 + $0x1000] sm:$0xff] }
 0x44e   : > { %5443 = vmatpush1.msra.mxu1 %v4160_v49  ;;  %5297 = vmatpush1.msra.mxu0 %v4194_v50  ;;  %v3612_v39 = vadd.f32 %v3607_v25, %v3528_v27  ;;  %v4521_v50 = vld [vmem:[#allocation10 + $0xe68] sm:$0xff] }
 0x44f   : > { %5444 = vmatprep.subr.mxu1 %v4143_v52  ;;  %5298 = vmatprep.subr.mxu0 %v4177_v54  ;;  %v3609_v63 = vpop.f32.mrf.mxu0  ;;  %v4520_v54 = vld [vmem:[#allocation10 + $0xe60] sm:$0xff] }
 0x450   : > { %5445 = vmatpush1.msra.mxu1 %v4142_v55  ;;  %5299 = vmatpush1.msra.mxu0 %v4176_v57  ;;  %v3613_v45 = vadd.f32 %v3609_v63, %v3529_v34  ;;  %v3696_v52 = vadd.f32 %v3691_v31, %v3612_v39  ;;  %v4554_v55 = vld [vmem:[#allocation10 + $0xf70] sm:$0xff]  ;;  %v3859_v57 = vpop.f32.mrf.mxu1  ;;  %v4429_v34 = vld [vmem:[#allocation10 + $0xb88] sm:$0xff] }
 0x451   : > { %5446 = vmatprep.subr.mxu1 %v4125_v16  ;;  %5300 = vmatprep.subr.mxu0 %v4159_v58  ;;  %v4503_v16 = vld [vmem:[#allocation10 + $0xdd8] sm:$0xff]  ;;  %v4537_v58 = vld [vmem:[#allocation10 + $0xee8] sm:$0xff]  ;;  %v4394_v63 = vld [vmem:[#allocation10 + $0xa70] sm:$0xff] }
 0x452   : > { %5447 = vmatpush1.msra.mxu1 %v4124_v59  ;;  %5301 = vmatpush1.msra.mxu0 %v4158_v60  ;;  %v3697_v59 = vadd.f32 %v3693_v42, %v3613_v45  ;;  %v4502_v60 = vld [vmem:[#allocation10 + $0xdd0] sm:$0xff]  ;;  %v4377_v39 = vld [vmem:[#allocation10 + $0x9e8] sm:$0xff]  ;;  %v4359_v45 = vld [vmem:[#allocation10 + $0x958] sm:$0xff] }
 0x453   : > { %5448 = vmatprep.subr.mxu1 %v4107_v62  ;;  %5302 = vmatprep.subr.mxu0 %v4141_v0  ;;  %v4485_v0 = vld [vmem:[#allocation10 + $0xd48] sm:$0xff] }
 0x454   : > { %5449 = vmatpush1.msra.mxu1 %v4106_v18  ;;  %5303 = vmatpush1.msra.mxu0 %v4140_v1  ;;  %v4519_v18 = vld [vmem:[#allocation10 + $0xe58] sm:$0xff] }
 0x455   : > { %5450 = vmatprep.subr.mxu1 %v4089_v2  ;;  %5304 = vmatprep.subr.mxu0 %v4123_v3  ;;  %v4484_v2 = vld [vmem:[#allocation10 + $0xd40] sm:$0xff]  ;;  %v4518_v3 = vld [vmem:[#allocation10 + $0xe50] sm:$0xff] }
 0x456   : > { %5451 = vmatpush1.msra.mxu1 %v4088_v4  ;;  %5305 = vmatpush1.msra.mxu0 %v4122_v5  ;;  %v3861_v4 = vpop.f32.mrf.mxu1  ;;  %v4467_v5 = vld [vmem:[#allocation10 + $0xcb8] sm:$0xff] }
 0x457   : > { %5452 = vmatprep.subr.mxu1 %v4071_v7  ;;  %5306 = vmatprep.subr.mxu0 %v4105_v8  ;;  %v4466_v8 = vld [vmem:[#allocation10 + $0xcb0] sm:$0xff] }
 0x458   : > { %5453 = vmatpush1.msra.mxu1 %v4070_v9  ;;  %5307 = vmatpush1.msra.mxu0 %v4104_v12  ;;  %v4500_v9 = vld [vmem:[#allocation10 + $0xdc0] sm:$0xff]  ;;  %v4449_v12 = vld [vmem:[#allocation10 + $0xc28] sm:$0xff] }
 0x459   : > { %5454 = vmatprep.subr.mxu1 %v4629_v13  ;;  %5308 = vmatprep.subr.mxu0 %v4087_v14  ;;  %v4483_v13 = vld [vmem:[#allocation10 + $0xd38] sm:$0xff] }
 0x45a   : > { %5455 = vmatpush2.msra.mxu1 %v4628_v17  ;;  %5309 = vmatpush1.msra.mxu0 %v4086_v19  ;;  %v4482_v17 = vld [vmem:[#allocation10 + $0xd30] sm:$0xff]  ;;  %v4027_v19 = vpop.f32.mrf.mxu1 }
 0x45b   : > { %5456 = vmatprep.subr.mxu1 %v4611_v48  ;;  %5310 = vmatprep.subr.mxu0 %v4069_v21  ;;  %v4431_v48 = vld [vmem:[#allocation10 + $0xb98] sm:$0xff]  ;;  %v4465_v21 = vld [vmem:[#allocation10 + $0xca8] sm:$0xff] }
 0x45c   : > { %5457 = vmatpush2.msra.mxu1 %v4610_v23  ;;  %5311 = vmatpush1.msra.mxu0 %v4068_v56  ;;  %v4430_v23 = vld [vmem:[#allocation10 + $0xb90] sm:$0xff]  ;;  %v4464_v56 = vld [vmem:[#allocation10 + $0xca0] sm:$0xff] }
 0x45d   : > { %5458 = vmatprep.subr.mxu1 %v4593_v26  ;;  %5312 = vmatprep.subr.mxu0 %v4627_v10  ;;  %v3775_v49 = vpop.f32.mrf.mxu0  ;;  %v4413_v26 = vld [vmem:[#allocation10 + $0xb08] sm:$0xff]  ;;  %v4447_v10 = vld [vmem:[#allocation10 + $0xc18] sm:$0xff] }
 0x45e   : > { %5459 = vmatpush2.msra.mxu1 %v4592_v29  ;;  %5313 = vmatpush2.msra.mxu0 %v4626_v30  ;;  %v3780_v1 = vadd.f32 %v3775_v49, %v3696_v52  ;;  %v4412_v29 = vld [vmem:[#allocation10 + $0xb00] sm:$0xff]  ;;  %v4446_v30 = vld [vmem:[#allocation10 + $0xc10] sm:$0xff]  ;;  %v4703_v52 = vld [vmem:[#allocation10 + $0x1418] sm:$0xff] }
 0x45f   : > { %5460 = vmatprep.subr.mxu1 %v4575_v32  ;;  %5314 = vmatprep.subr.mxu0 %v4609_v33  ;;  %v3777_v62 = vpop.f32.mrf.mxu0  ;;  %v4029_v32 = vpop.f32.mrf.mxu1  ;;  %v4395_v33 = vld [vmem:[#allocation10 + $0xa78] sm:$0xff] }
 0x460   : > { %5461 = vmatpush2.msra.mxu1 %v4574_v35  ;;  %5315 = vmatpush2.msra.mxu0 %v4608_v36  ;;  %v3781_v7 = vadd.f32 %v3777_v62, %v3697_v59  ;;  %v3864_v14 = vadd.f32 %v3859_v57, %v3780_v1  ;;  %v4375_v57 = vld [vmem:[#allocation10 + $0x9d8] sm:$0xff]  ;;  %v7827_v62 = vld [vmem:[%s7556_s30] sm:$0xff] }
 0x461   : > { %5462 = vmatprep.subr.mxu1 %v4557_v37  ;;  %5316 = vmatprep.subr.mxu0 %v4591_v38  ;;  %v4428_v37 = vld [vmem:[#allocation10 + $0xb80] sm:$0xff]  ;;  %v4048_v38 = vpop.permute.xlu0 %4047  ;;  %v4667_v1 = vld [vmem:[#allocation10 + $0x12f8] sm:$0xff] }
 0x462   : > { %5463 = vmatpush2.msra.mxu1 %v4556_v40  ;;  %5317 = vmatpush2.msra.mxu0 %v4590_v41  ;;  %v3865_v22 = vadd.f32 %v3861_v4, %v3781_v7  ;;  %v4411_v40 = vld [vmem:[#allocation10 + $0xaf8] sm:$0xff]  ;;  %v4700_v4 = vld [vmem:[#allocation10 + $0x1400] sm:$0xff] }
 0x463   : > { %5464 = vmatprep.subr.mxu1 %v4539_v43  ;;  %5318 = vmatprep.subr.mxu0 %v4573_v44  ;;  %v4376_v43 = vld [vmem:[#allocation10 + $0x9e0] sm:$0xff]  ;;  %v4410_v44 = vld [vmem:[#allocation10 + $0xaf0] sm:$0xff] }
 0x464   : > { %5465 = vmatpush2.msra.mxu1 %v4538_v46  ;;  %5319 = vmatpush2.msra.mxu0 %v4572_v47  ;;  %v4393_v46 = vld [vmem:[#allocation10 + $0xa68] sm:$0xff]  ;;  %v4648_v7 = vld [vmem:[#allocation10 + $0x1260] sm:$0xff] }
 0x465   : > { %5466 = vmatprep.subr.mxu1 %v4521_v50  ;;  %5320 = vmatprep.subr.mxu0 %v4555_v51  ;;  %v4358_v50 = vld [vmem:[#allocation10 + $0x950] sm:$0xff]  ;;  %v4392_v51 = vld [vmem:[#allocation10 + $0xa60] sm:$0xff] }
 0x466   : > { %5467 = vmatpush2.msra.mxu1 %v4520_v54  ;;  %5321 = vmatpush2.msra.mxu0 %v4554_v55 }
 0x467   : > { %5468 = vmatprep.subr.mxu1 %v4503_v16  ;;  %5322 = vmatprep.subr.mxu0 %v4537_v58  ;;  %v4702_v16 = vld [vmem:[#allocation10 + $0x1410] sm:$0xff] }
 0x468   : > { %5469 = vmatpush2.msra.mxu1 %v4502_v60  ;;  %5323 = vmatpush2.msra.mxu0 %v4536_v61  ;;  %v4374_v58 = vld [vmem:[#allocation10 + $0x9d0] sm:$0xff]  ;;  %v4685_v60 = vld [vmem:[#allocation10 + $0x1388] sm:$0xff] }
 0x469   : > { %5470 = vmatprep.subr.mxu1 %v4485_v0  ;;  %5324 = vmatprep.subr.mxu0 %v4519_v18  ;;  %v4357_v61 = vld [vmem:[#allocation10 + $0x948] sm:$0xff]  ;;  %v4684_v0 = vld [vmem:[#allocation10 + $0x1380] sm:$0xff] }
 0x46a   : > { %5471 = vmatpush2.msra.mxu1 %v4484_v2  ;;  %5325 = vmatpush2.msra.mxu0 %v4518_v3  ;;  %v4356_v18 = vld [vmem:[#allocation10 + $0x940] sm:$0xff]  ;;  %v4701_v2 = vld [vmem:[#allocation10 + $0x1408] sm:$0xff]  ;;  %v4666_v3 = vld [vmem:[#allocation10 + $0x12f0] sm:$0xff] }
 0x46b   : > { %5472 = vmatprep.subr.mxu1 %v4467_v5  ;;  %5326 = vmatprep.subr.mxu0 %v4501_v6  ;;  %v4649_v5 = vld [vmem:[#allocation10 + $0x1268] sm:$0xff]  ;;  %v4683_v6 = vld [vmem:[#allocation10 + $0x1378] sm:$0xff] }
 0x46c   : > { %5473 = vmatpush2.msra.mxu1 %v4466_v8  ;;  %5327 = vmatpush2.msra.mxu0 %v4500_v9  ;;  %v4682_v8 = vld [vmem:[#allocation10 + $0x1370] sm:$0xff]  ;;  %v4345_v9 = vld [vmem:[#allocation10 + $0x8e8] sm:$0xff] }
 0x46d   : > { %5474 = vmatprep.subr.mxu1 %v4449_v12  ;;  %5328 = vmatprep.subr.mxu0 %v4483_v13  ;;  %v3943_v25 = vpop.f32.mrf.mxu0  ;;  %v4665_v12 = vld [vmem:[#allocation10 + $0x12e8] sm:$0xff]  ;;  %v4344_v13 = vld [vmem:[#allocation10 + $0x8e0] sm:$0xff] }
 0x46e   : > { %5475 = vmatpush2.msra.mxu1 %v4448_v15  ;;  %5329 = vmatpush2.msra.mxu0 %v4482_v17  ;;  %v3948_v27 = vadd.f32 %v3943_v25, %v3864_v14  ;;  %v4664_v14 = vld [vmem:[#allocation10 + $0x12e0] sm:$0xff]  ;;  %v4647_v15 = vld [vmem:[#allocation10 + $0x1258] sm:$0xff]  ;;  %v4326_v17 = vld [vmem:[#allocation10 + $0x850] sm:$0xff] }
 0x46f   : > { %5476 = vmatprep.subr.mxu1 %v4431_v48  ;;  %5330 = vmatprep.subr.mxu0 %v4465_v21  ;;  %v3945_v31 = vpop.f32.mrf.mxu0  ;;  %v4343_v48 = vld [vmem:[#allocation10 + $0x8d8] sm:$0xff]  ;;  %v4308_v21 = vld [vmem:[#allocation10 + $0x7c0] sm:$0xff]  ;;  %v4290_v25 = vld [vmem:[#allocation10 + $0x730] sm:$0xff] }
 0x470   : > { %5477 = vmatpush2.msra.mxu1 %v4430_v23  ;;  %5331 = vmatpush2.msra.mxu0 %v4464_v56  ;;  %v3949_v35 = vadd.f32 %v3945_v31, %v3865_v22  ;;  %v4032_v36 = vadd.f32 %v4027_v19, %v3948_v27  ;;  %v4646_v19 = vld [vmem:[#allocation10 + $0x1250] sm:$0xff]  ;;  %v4291_v23 = vld [vmem:[#allocation10 + $0x738] sm:$0xff]  ;;  %v4325_v56 = vld [vmem:[#allocation10 + $0x848] sm:$0xff] }
 0x471   : > { %5478 = vmatprep.subr.mxu1 %v4413_v26  ;;  %5332 = vmatprep.subr.mxu0 %v4447_v10  ;;  %v4342_v22 = vld [vmem:[#allocation10 + $0x8d0] sm:$0xff]  ;;  %v4324_v26 = vld [vmem:[#allocation10 + $0x840] sm:$0xff]  ;;  %v4273_v10 = vld [vmem:[#allocation10 + $0x6a8] sm:$0xff] }
 0x472   : > { %5479 = vmatpush2.msra.mxu1 %v4412_v29  ;;  %5333 = vmatpush2.msra.mxu0 %v4446_v30  ;;  %v4041_v41 = vmul.f32 %v4039_v20, %v4032_v36  ;;  %v4033_v42 = vadd.f32 %v4029_v32, %v3949_v35  ;;  %v4307_v27 = vld [vmem:[#allocation10 + $0x7b8] sm:$0xff]  ;;  %v4272_v29 = vld [vmem:[#allocation10 + $0x6a0] sm:$0xff]  ;;  %v4306_v30 = vld [vmem:[#allocation10 + $0x7b0] sm:$0xff] }
 0x473   : > { %5480 = vmatprep.subr.mxu1 %v4395_v33  ;;  %5334 = vmatprep.subr.mxu0 %v4429_v34  ;;  %v4255_v31 = vld [vmem:[#allocation10 + $0x618] sm:$0xff]  ;;  %v4289_v32 = vld [vmem:[#allocation10 + $0x728] sm:$0xff]  ;;  %v4254_v33 = vld [vmem:[#allocation10 + $0x610] sm:$0xff] }
 0x474   : > { %5481 = vmatpush2.msra.mxu1 %v4394_v63  ;;  %5335 = vmatpush2.msra.mxu0 %v4428_v37  ;;  %v4042_v47 = vmul.f32 %v4039_v20, %v4033_v42  ;;  %v4050_v49 = vadd.f32 %v4048_v38, %v4041_v41  ;;  %v4309_v20 = vld [vmem:[#allocation10 + $0x7c8] sm:$0xff]  ;;  %v4288_v34 = vld [vmem:[#allocation10 + $0x720] sm:$0xff]  ;;  %v4271_v35 = vld [vmem:[#allocation10 + $0x698] sm:$0xff] }
 0x475   : > { %5482 = vmatprep.subr.mxu1 %v4377_v39  ;;  %5336 = vmatprep.subr.mxu0 %v4411_v40  ;;  %v4236_v36 = vld [vmem:[#allocation10 + $0x580] sm:$0xff]  ;;  %v4270_v63 = vld [vmem:[#allocation10 + $0x690] sm:$0xff]  ;;  %v4219_v37 = vld [vmem:[#allocation10 + $0x4f8] sm:$0xff] }
 0x476   : > { %5483 = vmatpush2.msra.mxu1 %v4376_v43  ;;  %5337 = vmatpush2.msra.mxu0 %v4410_v44  ;;  %v4051_v54 = vadd.f32 %v4048_v38, %v4042_v47  ;;  %v4052_v55 = vmax.f32 %v4050_v49, 0.0  ;;  %v4253_v38 = vld [vmem:[#allocation10 + $0x608] sm:$0xff]  ;;  %v4218_v39 = vld [vmem:[#allocation10 + $0x4f0] sm:$0xff]  ;;  %v4252_v40 = vld [vmem:[#allocation10 + $0x600] sm:$0xff] }
 0x477   : > { %5484 = vmatprep.subr.mxu1 %v4359_v45  ;;  %5338 = vmatprep.subr.mxu0 %v4393_v46  ;;  %v4201_v41 = vld [vmem:[#allocation10 + $0x468] sm:$0xff]  ;;  %v4235_v42 = vld [vmem:[#allocation10 + $0x578] sm:$0xff]  ;;  %v4200_v43 = vld [vmem:[#allocation10 + $0x460] sm:$0xff] }
 0x478   : > { %5485 = vmatpush2.msra.mxu1 %v4358_v50  ;;  %5339 = vmatpush2.msra.mxu0 %v4392_v51  ;;  %v4053_v59 = vmax.f32 %v4051_v54, 0.0  ;;  %6958 = vst [vmem:[%s7709_s23 + $0x10] sm:$0xff] %v4052_v55  ;;  %v4234_v44 = vld [vmem:[#allocation10 + $0x570] sm:$0xff]  ;;  %v4183_v45 = vld [vmem:[#allocation10 + $0x3d8] sm:$0xff]  ;;  %v4217_v46 = vld [vmem:[#allocation10 + $0x4e8] sm:$0xff] }
 0x479   : > { %5486 = vmatprep.mubr.f32.mxu1 %v7803_v53  ;;  %5659 = vmatprep.subr.mxu1 %v4703_v52  ;;  %v4182_v47 = vld [vmem:[#allocation10 + $0x3d0] sm:$0xff]  ;;  %v4216_v49 = vld [vmem:[#allocation10 + $0x4e0] sm:$0xff]  ;;  %v4165_v50 = vld [vmem:[#allocation10 + $0x348] sm:$0xff] }
 0x47a   : > { %5340 = vmatprep.subr.mxu0 %v4375_v57  ;;  %5487 = vmatmul.mubr.f32.vlgmr.msra.gmra.mxu1 %v7827_v62  ;;  %6959 = vst [vmem:[%s7709_s23 + $0x18] sm:$0xff] %v4053_v59  ;;  %v4199_v51 = vld [vmem:[#allocation10 + $0x458] sm:$0xff]  ;;  %v4164_v52 = vld [vmem:[#allocation10 + $0x340] sm:$0xff]  ;;  %v4198_v54 = vld [vmem:[#allocation10 + $0x450] sm:$0xff] }
 0x47b   : > { %5660 = vmatpush1.msra.mxu1 %v4702_v16  ;;  %5341 = vmatpush2.msra.mxu0 %v4374_v58  ;;  %v4147_v55 = vld [vmem:[#allocation10 + $0x2b8] sm:$0xff]  ;;  %v4181_v57 = vld [vmem:[#allocation10 + $0x3c8] sm:$0xff]  ;;  %v4146_v16 = vld [vmem:[#allocation10 + $0x2b0] sm:$0xff] }
 0x47c   : > { %5661 = vmatprep.subr.mxu1 %v4685_v60  ;;  %5342 = vmatprep.subr.mxu0 %v4357_v61  ;;  %v4180_v58 = vld [vmem:[#allocation10 + $0x3c0] sm:$0xff]  ;;  %v4129_v59 = vld [vmem:[#allocation10 + $0x228] sm:$0xff]  ;;  %v4163_v60 = vld [vmem:[#allocation10 + $0x338] sm:$0xff] }
 0x47d   : > { %5662 = vmatpush1.msra.mxu1 %v4684_v0  ;;  %5343 = vmatpush2.msra.mxu0 %v4356_v18  ;;  %v4128_v61 = vld [vmem:[#allocation10 + $0x220] sm:$0xff]  ;;  %v4162_v0 = vld [vmem:[#allocation10 + $0x330] sm:$0xff]  ;;  %v4111_v18 = vld [vmem:[#allocation10 + $0x198] sm:$0xff] }
 0x47e   : > { %5344 = vmatprep.mubr.f32.mxu0 %v7803_v53  ;;  %5663 = vmatprep.subr.mxu1 %v4667_v1  ;;  %v4327_v53 = vld [vmem:[#allocation10 + $0x858] sm:$0xff]  ;;  %v4145_v1 = vld [vmem:[#allocation10 + $0x2a8] sm:$0xff] }
 0x47f   : > { %5345 = vmatmul.mubr.f32.vlgmr.msra.gmra.mxu0 %v7827_v62  ;;  %5517 = vmatprep.subr.mxu0 %v4701_v2  ;;  %v4110_v2 = vld [vmem:[#allocation10 + $0x190] sm:$0xff] }
 0x480   : > { %5664 = vmatpush1.msra.mxu1 %v4666_v3  ;;  %5518 = vmatpush1.msra.mxu0 %v4700_v4  ;;  %v4144_v3 = vld [vmem:[#allocation10 + $0x2a0] sm:$0xff]  ;;  %v4093_v4 = vld [vmem:[#allocation10 + $0x108] sm:$0xff] }
 0x481   : > { %5665 = vmatprep.subr.mxu1 %v4649_v5  ;;  %5519 = vmatprep.subr.mxu0 %v4683_v6  ;;  %v4127_v5 = vld [vmem:[#allocation10 + $0x218] sm:$0xff]  ;;  %v4092_v6 = vld [vmem:[#allocation10 + $0x100] sm:$0xff] }
 0x482   : > { %5666 = vmatpush1.msra.mxu1 %v4648_v7  ;;  %5520 = vmatpush1.msra.mxu0 %v4682_v8  ;;  %v4126_v7 = vld [vmem:[#allocation10 + $0x210] sm:$0xff]  ;;  %v4075_v8 = vld [vmem:[#allocation10 + $0x78] sm:$0xff] }
 0x483   : > { %5699 = vmatprep.mubr.f32.mxu1 %v7315_v24  ;;  %5706 = vmatprep.subr.mxu1 %v4345_v9  ;;  %v4109_v9 = vld [vmem:[#allocation10 + $0x188] sm:$0xff] }
 0x484   : > { %5521 = vmatprep.subr.mxu0 %v4665_v12  ;;  %6966 = vmatmul.mubr.msk.f32.vlgmr.msra.gmra.mxu1 %vm4708_vm5, %v7811_v11  ;;  %v4074_v12 = vld [vmem:[#allocation10 + $0x70] sm:$0xff] }
 0x485   : > { %5707 = vmatpush1.msra.mxu1 %v4344_v13  ;;  %5522 = vmatpush1.msra.mxu0 %v4664_v14  ;;  %v4108_v13 = vld [vmem:[#allocation10 + $0x180] sm:$0xff]  ;;  %v4633_v14 = vld [vmem:[#allocation10 + $0x11e8] sm:$0xff] }
 0x486   : > { %5708 = vmatprep.subr.mxu1 %v4327_v53  ;;  %5523 = vmatprep.subr.mxu0 %v4647_v15  ;;  %v4091_v53 = vld [vmem:[#allocation10 + $0xf8] sm:$0xff]  ;;  %v4632_v15 = vld [vmem:[#allocation10 + $0x11e0] sm:$0xff] }
 0x487   : > { %5709 = vmatpush1.msra.mxu1 %v4326_v17  ;;  %5524 = vmatpush1.msra.mxu0 %v4646_v19  ;;  %v4090_v17 = vld [vmem:[#allocation10 + $0xf0] sm:$0xff]  ;;  %v4615_v19 = vld [vmem:[#allocation10 + $0x1158] sm:$0xff] }
 0x488   : > { %5557 = vmatprep.mubr.f32.mxu0 %v7315_v24  ;;  %5710 = vmatprep.subr.mxu1 %v4309_v20  ;;  %v4073_v20 = vld [vmem:[#allocation10 + $0x68] sm:$0xff] }
 0x489   : > { %6965 = vmatmul.mubr.msk.f32.vlgmr.msra.gmra.mxu0 %vm4708_vm5, %v7811_v11  ;;  %5564 = vmatprep.subr.mxu0 %v4343_v48  ;;  %v4237_v11 = vld [vmem:[#allocation10 + $0x588] sm:$0xff]  ;;  %v4614_v48 = vld [vmem:[#allocation10 + $0x1150] sm:$0xff] }
 0x48a   : > { %5711 = vmatpush1.msra.mxu1 %v4308_v21  ;;  %5565 = vmatpush1.msra.mxu0 %v4342_v22  ;;  %v4072_v21 = vld [vmem:[#allocation10 + $0x60] sm:$0xff]  ;;  %v4597_v22 = vld [vmem:[#allocation10 + $0x10c8] sm:$0xff] }
 0x48b   : > { %5712 = vmatprep.subr.mxu1 %v4291_v23  ;;  %5566 = vmatprep.subr.mxu0 %v4325_v56  ;;  %v4631_v23 = vld [vmem:[#allocation10 + $0x11d8] sm:$0xff]  ;;  %v4596_v56 = vld [vmem:[#allocation10 + $0x10c0] sm:$0xff] }
 0x48c   : > { %5713 = vmatpush1.msra.mxu1 %v4290_v25  ;;  %5567 = vmatpush1.msra.mxu0 %v4324_v26  ;;  %v4630_v25 = vld [vmem:[#allocation10 + $0x11d0] sm:$0xff]  ;;  %v4579_v26 = vld [vmem:[#allocation10 + $0x1038] sm:$0xff] }
 0x48d   : > { %5714 = vmatprep.subr.mxu1 %v4273_v10  ;;  %5568 = vmatprep.subr.mxu0 %v4307_v27  ;;  %v4613_v10 = vld [vmem:[#allocation10 + $0x1148] sm:$0xff]  ;;  %v4578_v27 = vld [vmem:[#allocation10 + $0x1030] sm:$0xff] }
 0x48e   : > { %5715 = vmatpush1.msra.mxu1 %v4272_v29  ;;  %5569 = vmatpush1.msra.mxu0 %v4306_v30  ;;  %v4612_v29 = vld [vmem:[#allocation10 + $0x1140] sm:$0xff]  ;;  %v4561_v30 = vld [vmem:[#allocation10 + $0xfa8] sm:$0xff] }
 0x48f   : > { %5716 = vmatprep.subr.mxu1 %v4255_v31  ;;  %5570 = vmatprep.subr.mxu0 %v4289_v32  ;;  %v4595_v31 = vld [vmem:[#allocation10 + $0x10b8] sm:$0xff]  ;;  %v4560_v32 = vld [vmem:[#allocation10 + $0xfa0] sm:$0xff] }
 0x490   : > { %5717 = vmatpush1.msra.mxu1 %v4254_v33  ;;  %5571 = vmatpush1.msra.mxu0 %v4288_v34  ;;  %v4594_v33 = vld [vmem:[#allocation10 + $0x10b0] sm:$0xff]  ;;  %v4543_v34 = vld [vmem:[#allocation10 + $0xf18] sm:$0xff] }
 0x491   : > { %5718 = vmatprep.subr.mxu1 %v4237_v11  ;;  %5572 = vmatprep.subr.mxu0 %v4271_v35  ;;  %v4577_v11 = vld [vmem:[#allocation10 + $0x1028] sm:$0xff]  ;;  %v4542_v35 = vld [vmem:[#allocation10 + $0xf10] sm:$0xff] }
 0x492   : > { %5719 = vmatpush1.msra.mxu1 %v4236_v36  ;;  %5573 = vmatpush1.msra.mxu0 %v4270_v63  ;;  %v4576_v36 = vld [vmem:[#allocation10 + $0x1020] sm:$0xff]  ;;  %v4525_v63 = vld [vmem:[#allocation10 + $0xe88] sm:$0xff] }
 0x493   : > { %5720 = vmatprep.subr.mxu1 %v4219_v37  ;;  %5574 = vmatprep.subr.mxu0 %v4253_v38  ;;  %v4559_v37 = vld [vmem:[#allocation10 + $0xf98] sm:$0xff]  ;;  %v4524_v38 = vld [vmem:[#allocation10 + $0xe80] sm:$0xff] }
 0x494   : > { %5721 = vmatpush1.msra.mxu1 %v4218_v39  ;;  %5575 = vmatpush1.msra.mxu0 %v4252_v40  ;;  %v4558_v39 = vld [vmem:[#allocation10 + $0xf90] sm:$0xff]  ;;  %v4507_v40 = vld [vmem:[#allocation10 + $0xdf8] sm:$0xff] }
 0x495   : > { %5722 = vmatprep.subr.mxu1 %v4201_v41  ;;  %5576 = vmatprep.subr.mxu0 %v4235_v42  ;;  %v4541_v41 = vld [vmem:[#allocation10 + $0xf08] sm:$0xff]  ;;  %v4506_v42 = vld [vmem:[#allocation10 + $0xdf0] sm:$0xff] }
 0x496   : > { %5723 = vmatpush1.msra.mxu1 %v4200_v43  ;;  %5577 = vmatpush1.msra.mxu0 %v4234_v44  ;;  %v4540_v43 = vld [vmem:[#allocation10 + $0xf00] sm:$0xff]  ;;  %v4489_v44 = vld [vmem:[#allocation10 + $0xd68] sm:$0xff] }
 0x497   : > { %5724 = vmatprep.subr.mxu1 %v4183_v45  ;;  %5578 = vmatprep.subr.mxu0 %v4217_v46  ;;  %v4523_v45 = vld [vmem:[#allocation10 + $0xe78] sm:$0xff]  ;;  %v4488_v46 = vld [vmem:[#allocation10 + $0xd60] sm:$0xff] }
 0x498   : > { %5725 = vmatpush1.msra.mxu1 %v4182_v47  ;;  %5579 = vmatpush1.msra.mxu0 %v4216_v49  ;;  %v4522_v47 = vld [vmem:[#allocation10 + $0xe70] sm:$0xff]  ;;  %v4471_v49 = vld [vmem:[#allocation10 + $0xcd8] sm:$0xff] }
 0x499   : > { %5726 = vmatprep.subr.mxu1 %v4165_v50  ;;  %5580 = vmatprep.subr.mxu0 %v4199_v51  ;;  %v4505_v50 = vld [vmem:[#allocation10 + $0xde8] sm:$0xff]  ;;  %v4470_v51 = vld [vmem:[#allocation10 + $0xcd0] sm:$0xff] }
 0x49a   : > { %5727 = vmatpush1.msra.mxu1 %v4164_v52  ;;  %5581 = vmatpush1.msra.mxu0 %v4198_v54  ;;  %v4504_v52 = vld [vmem:[#allocation10 + $0xde0] sm:$0xff]  ;;  %v4453_v54 = vld [vmem:[#allocation10 + $0xc48] sm:$0xff] }
 0x49b   : > { %5728 = vmatprep.subr.mxu1 %v4147_v55  ;;  %5582 = vmatprep.subr.mxu0 %v4181_v57  ;;  %v4487_v55 = vld [vmem:[#allocation10 + $0xd58] sm:$0xff]  ;;  %v7839_v57 = vpop.f32.mrf.mxu1 }
 0x49c   : > { %5729 = vmatpush1.msra.mxu1 %v4146_v16  ;;  %5583 = vmatpush1.msra.mxu0 %v4180_v58  ;;  %v4452_v16 = vld [vmem:[#allocation10 + $0xc40] sm:$0xff]  ;;  %v4486_v58 = vld [vmem:[#allocation10 + $0xd50] sm:$0xff] }
 0x49d   : > { %5730 = vmatprep.subr.mxu1 %v4129_v59  ;;  %5584 = vmatprep.subr.mxu0 %v4163_v60  ;;  %v4435_v59 = vld [vmem:[#allocation10 + $0xbb8] sm:$0xff]  ;;  %v4469_v60 = vld [vmem:[#allocation10 + $0xcc8] sm:$0xff] }
 0x49e   : > { %5731 = vmatpush1.msra.mxu1 %v4128_v61  ;;  %5585 = vmatpush1.msra.mxu0 %v4162_v0  ;;  %v4434_v61 = vld [vmem:[#allocation10 + $0xbb0] sm:$0xff]  ;;  %v4468_v0 = vld [vmem:[#allocation10 + $0xcc0] sm:$0xff] }
 0x49f   : > { %5732 = vmatprep.subr.mxu1 %v4111_v18  ;;  %5586 = vmatprep.subr.mxu0 %v4145_v1  ;;  %v4417_v18 = vld [vmem:[#allocation10 + $0xb28] sm:$0xff]  ;;  %v4451_v1 = vld [vmem:[#allocation10 + $0xc38] sm:$0xff] }
 0x4a0   : > { %5733 = vmatpush1.msra.mxu1 %v4110_v2  ;;  %5587 = vmatpush1.msra.mxu0 %v4144_v3  ;;  %v7841_v2 = vpop.f32.mrf.mxu1  ;;  %v4416_v3 = vld [vmem:[#allocation10 + $0xb20] sm:$0xff] }
 0x4a1   : > { %5734 = vmatprep.subr.mxu1 %v4093_v4  ;;  %5588 = vmatprep.subr.mxu0 %v4127_v5  ;;  %v4450_v4 = vld [vmem:[#allocation10 + $0xc30] sm:$0xff]  ;;  %v4399_v5 = vld [vmem:[#allocation10 + $0xa98] sm:$0xff] }
 0x4a2   : > { %5735 = vmatpush1.msra.mxu1 %v4092_v6  ;;  %5589 = vmatpush1.msra.mxu0 %v4126_v7  ;;  %v4433_v6 = vld [vmem:[#allocation10 + $0xba8] sm:$0xff]  ;;  %v4398_v7 = vld [vmem:[#allocation10 + $0xa90] sm:$0xff] }
 0x4a3   : > { %5736 = vmatprep.subr.mxu1 %v4075_v8  ;;  %5590 = vmatprep.subr.mxu0 %v4109_v9  ;;  %v4432_v8 = vld [vmem:[#allocation10 + $0xba0] sm:$0xff]  ;;  %v4920_v9 = vpop.f32.mrf.mxu1 }
 0x4a4   : > { %5737 = vmatpush1.msra.mxu1 %v4074_v12  ;;  %5591 = vmatpush1.msra.mxu0 %v4108_v13  ;;  %v4381_v12 = vld [vmem:[#allocation10 + $0xa08] sm:$0xff]  ;;  %v4415_v13 = vld [vmem:[#allocation10 + $0xb18] sm:$0xff] }
 0x4a5   : > { %5738 = vmatprep.subr.mxu1 %v4633_v14  ;;  %5592 = vmatprep.subr.mxu0 %v4091_v53  ;;  %v4380_v14 = vld [vmem:[#allocation10 + $0xa00] sm:$0xff]  ;;  %v4414_v53 = vld [vmem:[#allocation10 + $0xb10] sm:$0xff] }
 0x4a6   : > { %5739 = vmatpush2.msra.mxu1 %v4632_v15  ;;  %5593 = vmatpush1.msra.mxu0 %v4090_v17  ;;  %v4363_v15 = vld [vmem:[#allocation10 + $0x978] sm:$0xff]  ;;  %v4397_v17 = vld [vmem:[#allocation10 + $0xa88] sm:$0xff] }
 0x4a7   : > { %5740 = vmatprep.subr.mxu1 %v4615_v19  ;;  %5594 = vmatprep.subr.mxu0 %v4073_v20  ;;  %v4362_v19 = vld [vmem:[#allocation10 + $0x970] sm:$0xff]  ;;  %v4396_v20 = vld [vmem:[#allocation10 + $0xa80] sm:$0xff] }
 0x4a8   : > { %5741 = vmatpush2.msra.mxu1 %v4614_v48  ;;  %5595 = vmatpush1.msra.mxu0 %v4072_v21  ;;  %v4922_v48 = vpop.f32.mrf.mxu1  ;;  %v4707_v21 = vld [vmem:[#allocation10 + $0x1438] sm:$0xff] }
 0x4a9   : > { %5742 = vmatprep.subr.mxu1 %v4597_v22  ;;  %5596 = vmatprep.subr.mxu0 %v4631_v23  ;;  %v4379_v22 = vld [vmem:[#allocation10 + $0x9f8] sm:$0xff]  ;;  %v4706_v23 = vld [vmem:[#allocation10 + $0x1430] sm:$0xff] }
 0x4aa   : > { %5743 = vmatpush2.msra.mxu1 %v4596_v56  ;;  %5597 = vmatpush2.msra.mxu0 %v4630_v25  ;;  %v4378_v56 = vld [vmem:[#allocation10 + $0x9f0] sm:$0xff] }
 0x4ab   : > { %5744 = vmatprep.subr.mxu1 %v4579_v26  ;;  %5598 = vmatprep.subr.mxu0 %v4613_v10  ;;  %v7844_v25 = vld [vmem:[%s7556_s30 + $0x8] sm:$0xff]  ;;  %v4689_v26 = vld [vmem:[#allocation10 + $0x13a8] sm:$0xff]  ;;  %v4991_v10 = vpop.f32.mrf.mxu1 }
 0x4ac   : > { %5745 = vmatpush2.msra.mxu1 %v4578_v27  ;;  %5599 = vmatpush2.msra.mxu0 %v4612_v29  ;;  %v4361_v27 = vld [vmem:[#allocation10 + $0x968] sm:$0xff]  ;;  %v4688_v29 = vld [vmem:[#allocation10 + $0x13a0] sm:$0xff] }
 0x4ad   : > { %5746 = vmatprep.subr.mxu1 %v4561_v30  ;;  %5600 = vmatprep.subr.mxu0 %v4595_v31  ;;  %v4360_v30 = vld [vmem:[#allocation10 + $0x960] sm:$0xff]  ;;  %v4671_v31 = vld [vmem:[#allocation10 + $0x1318] sm:$0xff] }
 0x4ae   : > { %5747 = vmatpush2.msra.mxu1 %v4560_v32  ;;  %5601 = vmatpush2.msra.mxu0 %v4594_v33  ;;  %v4705_v32 = vld [vmem:[#allocation10 + $0x1428] sm:$0xff] }
 0x4af   : > { %5748 = vmatprep.subr.mxu1 %v4543_v34  ;;  %5602 = vmatprep.subr.mxu0 %v4577_v11  ;;  %v4993_v34 = vpop.f32.mrf.mxu1  ;;  %v4670_v11 = vld [vmem:[#allocation10 + $0x1310] sm:$0xff] }
 0x4b0   : > { %5749 = vmatpush2.msra.mxu1 %v4542_v35  ;;  %5603 = vmatpush2.msra.mxu0 %v4576_v36  ;;  %v4704_v35 = vld [vmem:[#allocation10 + $0x1420] sm:$0xff]  ;;  %v4653_v36 = vld [vmem:[#allocation10 + $0x1288] sm:$0xff] }
 0x4b1   : > { %5750 = vmatprep.subr.mxu1 %v4525_v63  ;;  %5604 = vmatprep.subr.mxu0 %v4559_v37  ;;  %v4778_v33 = vpop.f32.mrf.mxu0  ;;  %v4687_v63 = vld [vmem:[#allocation10 + $0x1398] sm:$0xff]  ;;  %v4652_v37 = vld [vmem:[#allocation10 + $0x1280] sm:$0xff] }
 0x4b2   : > { %5751 = vmatpush2.msra.mxu1 %v4524_v38  ;;  %5605 = vmatpush2.msra.mxu0 %v4558_v39  ;;  %v4994_v38 = vadd.f32 %v4993_v34, %v4922_v48  ;;  %v4686_v39 = vld [vmem:[#allocation10 + $0x1390] sm:$0xff]  ;;  %v4095_v48 = vld [vmem:[#allocation10 + $0x118] sm:$0xff] }
 0x4b3   : > { %5752 = vmatprep.subr.mxu1 %v4507_v40  ;;  %5606 = vmatprep.subr.mxu0 %v4541_v41  ;;  %v4780_v40 = vpop.f32.mrf.mxu0  ;;  %v4992_v41 = vadd.f32 %v4991_v10, %v4920_v9  ;;  %v4184_v9 = vld [vmem:[#allocation10 + $0x3e0] sm:$0xff] }
 0x4b4   : > { %5753 = vmatpush2.msra.mxu1 %v4506_v42  ;;  %5607 = vmatpush2.msra.mxu0 %v4540_v43  ;;  %v4669_v42 = vld [vmem:[#allocation10 + $0x1308] sm:$0xff]  ;;  %v4668_v43 = vld [vmem:[#allocation10 + $0x1300] sm:$0xff] }
 0x4b5   : > { %5754 = vmatprep.subr.mxu1 %v4489_v44  ;;  %5608 = vmatprep.subr.mxu0 %v4523_v45  ;;  %v7095_v44 = vld [vmem:[%s7556_s30 + $0x10] sm:$0xff] }
 0x4b6   : > { %5755 = vmatpush2.msra.mxu1 %v4488_v46  ;;  %5609 = vmatpush2.msra.mxu0 %v4522_v47  ;;  %v4651_v45 = vld [vmem:[#allocation10 + $0x1278] sm:$0xff]  ;;  %v4852_v46 = vadd.f32 %v7841_v2, %v4780_v40  ;;  %v4650_v47 = vld [vmem:[#allocation10 + $0x1270] sm:$0xff]  ;;  %v4545_v40 = vld [vmem:[#allocation10 + $0xf28] sm:$0xff] }
 0x4b7   : > { %5756 = vmatprep.subr.mxu1 %v4471_v49  ;;  %5610 = vmatprep.subr.mxu0 %v4505_v50  ;;  %v6969_v49 = vld [vmem:[%s7969_s8 + $0x8] sm:$0xff]  ;;  %v4850_v50 = vadd.f32 %v7839_v57, %v4778_v33  ;;  %v4311_v57 = vld [vmem:[#allocation10 + $0x7d8] sm:$0xff] }
 0x4b8   : > { %5757 = vmatpush2.msra.mxu1 %v4470_v51  ;;  %5611 = vmatpush2.msra.mxu0 %v4504_v52  ;;  %v4347_v51 = vld [vmem:[#allocation10 + $0x8f8] sm:$0xff]  ;;  %v4346_v52 = vld [vmem:[#allocation10 + $0x8f0] sm:$0xff] }
 0x4b9   : > { %5758 = vmatprep.subr.mxu1 %v4453_v54  ;;  %5612 = vmatprep.subr.mxu0 %v4487_v55  ;;  %v4329_v54 = vld [vmem:[#allocation10 + $0x868] sm:$0xff]  ;;  %v5990_v55 = vld [vmem:[%s7969_s8] sm:$0xff]  ;;  %v4239_v2 = vld [vmem:[#allocation10 + $0x598] sm:$0xff] }
 0x4ba   : > { %5759 = vmatpush2.msra.mxu1 %v4452_v16  ;;  %5613 = vmatpush2.msra.mxu0 %v4486_v58  ;;  %v4328_v16 = vld [vmem:[#allocation10 + $0x860] sm:$0xff]  ;;  %v4310_v58 = vld [vmem:[#allocation10 + $0x7d0] sm:$0xff]  ;;  %v4599_v33 = vld [vmem:[#allocation10 + $0x10d8] sm:$0xff] }
 0x4bb   : > { %5760 = vmatprep.subr.mxu1 %v4435_v59  ;;  %5614 = vmatprep.subr.mxu0 %v4469_v60  ;;  %v4293_v59 = vld [vmem:[#allocation10 + $0x748] sm:$0xff]  ;;  %v4292_v60 = vld [vmem:[#allocation10 + $0x740] sm:$0xff] }
 0x4bc   : > { %5761 = vmatpush2.msra.mxu1 %v4434_v61  ;;  %5615 = vmatpush2.msra.mxu0 %v4468_v0  ;;  %v4275_v61 = vld [vmem:[#allocation10 + $0x6b8] sm:$0xff]  ;;  %v4274_v0 = vld [vmem:[#allocation10 + $0x6b0] sm:$0xff] }
 0x4bd   : > { %5762 = vmatprep.subr.mxu1 %v4417_v18  ;;  %5616 = vmatprep.subr.mxu0 %v4451_v1  ;;  %v4257_v18 = vld [vmem:[#allocation10 + $0x628] sm:$0xff]  ;;  %v4256_v1 = vld [vmem:[#allocation10 + $0x620] sm:$0xff] }
 0x4be   : > { %5763 = vmatpush2.msra.mxu1 %v4416_v3  ;;  %5617 = vmatpush2.msra.mxu0 %v4450_v4  ;;  %v4238_v3 = vld [vmem:[#allocation10 + $0x590] sm:$0xff]  ;;  %v4221_v4 = vld [vmem:[#allocation10 + $0x508] sm:$0xff] }
 0x4bf   : > { %5764 = vmatprep.subr.mxu1 %v4399_v5  ;;  %5618 = vmatprep.subr.mxu0 %v4433_v6  ;;  %v4220_v5 = vld [vmem:[#allocation10 + $0x500] sm:$0xff]  ;;  %v4203_v6 = vld [vmem:[#allocation10 + $0x478] sm:$0xff] }
 0x4c0   : > { %5765 = vmatpush2.msra.mxu1 %v4398_v7  ;;  %5619 = vmatpush2.msra.mxu0 %v4432_v8  ;;  %v4202_v7 = vld [vmem:[#allocation10 + $0x470] sm:$0xff]  ;;  %v4185_v8 = vld [vmem:[#allocation10 + $0x3e8] sm:$0xff] }
 0x4c1   : > { %5766 = vmatprep.subr.mxu1 %v4381_v12  ;;  %5620 = vmatprep.subr.mxu0 %v4415_v13  ;;  %v4167_v12 = vld [vmem:[#allocation10 + $0x358] sm:$0xff]  ;;  %v4166_v13 = vld [vmem:[#allocation10 + $0x350] sm:$0xff] }
 0x4c2   : > { %5767 = vmatpush2.msra.mxu1 %v4380_v14  ;;  %5621 = vmatpush2.msra.mxu0 %v4414_v53  ;;  %v4149_v14 = vld [vmem:[#allocation10 + $0x2c8] sm:$0xff]  ;;  %v4148_v53 = vld [vmem:[#allocation10 + $0x2c0] sm:$0xff] }
 0x4c3   : > { %5768 = vmatprep.subr.mxu1 %v4363_v15  ;;  %5622 = vmatprep.subr.mxu0 %v4397_v17  ;;  %v4131_v15 = vld [vmem:[#allocation10 + $0x238] sm:$0xff]  ;;  %v4130_v17 = vld [vmem:[#allocation10 + $0x230] sm:$0xff] }
 0x4c4   : > { %5769 = vmatpush2.msra.mxu1 %v4362_v19  ;;  %5623 = vmatpush2.msra.mxu0 %v4396_v20  ;;  %v4113_v19 = vld [vmem:[#allocation10 + $0x1a8] sm:$0xff]  ;;  %v4112_v20 = vld [vmem:[#allocation10 + $0x1a0] sm:$0xff] }
 0x4c5   : > { %5770 = vmatprep.mubr.f32.mxu1 %v7844_v25  ;;  %5943 = vmatprep.subr.mxu1 %v4707_v21  ;;  %v5133_v21 = vpop.f32.mrf.mxu1 }
 0x4c6   : > { %5624 = vmatprep.subr.mxu0 %v4379_v22  ;;  %5771 = vmatmul.mubr.f32.vlgmr.msra.gmra.mxu1 %v7827_v62  ;;  %v4094_v22 = vld [vmem:[#allocation10 + $0x110] sm:$0xff] }
 0x4c7   : > { %5944 = vmatpush1.msra.mxu1 %v4706_v23  ;;  %5625 = vmatpush2.msra.mxu0 %v4378_v56  ;;  %v4077_v23 = vld [vmem:[#allocation10 + $0x88] sm:$0xff]  ;;  %v4076_v56 = vld [vmem:[#allocation10 + $0x80] sm:$0xff]  ;;  %v5135_v10 = vpop.f32.mrf.mxu1 }
 0x4c8   : > { %5945 = vmatprep.subr.mxu1 %v4689_v26  ;;  %5626 = vmatprep.subr.mxu0 %v4361_v27  ;;  %v4634_v27 = vld [vmem:[#allocation10 + $0x11f0] sm:$0xff] }
 0x4c9   : > { %5946 = vmatpush1.msra.mxu1 %v4688_v29  ;;  %5627 = vmatpush2.msra.mxu0 %v4360_v30  ;;  %v4617_v29 = vld [vmem:[#allocation10 + $0x1168] sm:$0xff] }
 0x4ca   : > { %5628 = vmatprep.mubr.f32.mxu0 %v7844_v25  ;;  %5947 = vmatprep.subr.mxu1 %v4671_v31  ;;  %v4616_v31 = vld [vmem:[#allocation10 + $0x1160] sm:$0xff] }
 0x4cb   : > { %5629 = vmatmul.mubr.f32.vlgmr.msra.gmra.mxu0 %v7827_v62  ;;  %5801 = vmatprep.subr.mxu0 %v4705_v32 }
 0x4cc   : > { %5948 = vmatpush1.msra.mxu1 %v4670_v11  ;;  %5802 = vmatpush1.msra.mxu0 %v4704_v35  ;;  %v6972_v11 = vld [vmem:[%s7969_s8 + $0x10] sm:$0xff] }
 0x4cd   : > { %5949 = vmatprep.subr.mxu1 %v4653_v36  ;;  %5803 = vmatprep.subr.mxu0 %v4687_v63  ;;  %v4598_v35 = vld [vmem:[#allocation10 + $0x10d0] sm:$0xff]  ;;  %v4581_v36 = vld [vmem:[#allocation10 + $0x1048] sm:$0xff] }
 0x4ce   : > { %5950 = vmatpush1.msra.mxu1 %v4652_v37  ;;  %5983 = vmatprep.mubr.f32.mxu1 %v7315_v24  ;;  %v4580_v37 = vld [vmem:[#allocation10 + $0x1040] sm:$0xff] }
 0x4cf   : > { %5804 = vmatpush1.msra.mxu0 %v4686_v39  ;;  %6968 = vmatmul.mubr.msk.f32.vlgmr.msra.gmra.mxu1 %vm4708_vm5, %v7095_v44  ;;  %v4562_v39 = vld [vmem:[#allocation10 + $0xfb0] sm:$0xff] }
 0x4d0   : > { %6027 = vmatprep.subr.mxu1 %v4994_v38  ;;  %5805 = vmatprep.subr.mxu0 %v4669_v42  ;;  %v4563_v38 = vld [vmem:[#allocation10 + $0xfb8] sm:$0xff] }
 0x4d1   : > { %6028 = vmatpush1.msra.mxu1 %v4992_v41  ;;  %5806 = vmatpush1.msra.mxu0 %v4668_v43  ;;  %v4544_v43 = vld [vmem:[#allocation10 + $0xf20] sm:$0xff] }
 0x4d2   : > { %6101 = vmatprep.subr.mxu1 %v4852_v46  ;;  %5807 = vmatprep.subr.mxu0 %v4651_v45  ;;  %v4526_v46 = vld [vmem:[#allocation10 + $0xe90] sm:$0xff] }
 0x4d3   : > { %6061 = vmatprep.mubr.f32.mxu1 %v7315_v24  ;;  %5808 = vmatpush1.msra.mxu0 %v4650_v47 }
 0x4d4   : > { %5841 = vmatprep.mubr.f32.mxu0 %v7315_v24  ;;  %6970 = vmatmul.mubr.msk.f32.vlgmr.msra.gmra.mxu1 %vm5993_vm6, %v6969_v49  ;;  %v4509_v49 = vld [vmem:[#allocation10 + $0xe08] sm:$0xff] }
 0x4d5   : > { %6102 = vmatpush1.msra.mxu1 %v4850_v50  ;;  %6967 = vmatmul.mubr.msk.f32.vlgmr.msra.gmra.mxu0 %vm4708_vm5, %v7095_v44  ;;  %v4527_v44 = vld [vmem:[#allocation10 + $0xe98] sm:$0xff] }
 0x4d6   : > { %5848 = vmatprep.subr.mxu0 %v4347_v51  ;;  %6135 = vmatprep.mubr.f32.mxu1 %v7315_v24  ;;  %v6974_v51 = vld [vmem:[%s7969_s8 + $0x18] sm:$0xff] }
 0x4d7   : > { %5849 = vmatpush1.msra.mxu0 %v4346_v52  ;;  %5912 = vmatprep.mubr.f32.mxu0 %v7844_v25  ;;  %v4635_v25 = vld [vmem:[#allocation10 + $0x11f8] sm:$0xff]  ;;  %v4508_v52 = vld [vmem:[#allocation10 + $0xe00] sm:$0xff] }
 0x4d8   : > { %5850 = vmatprep.subr.mxu0 %v4329_v54  ;;  %6971 = vmatmul.mubr.msk.f32.vlgmr.msra.gmra.mxu1 %vm5993_vm6, %v5990_v55  ;;  %v4491_v54 = vld [vmem:[#allocation10 + $0xd78] sm:$0xff]  ;;  %v4490_v55 = vld [vmem:[#allocation10 + $0xd70] sm:$0xff] }
 0x4d9   : > { %5851 = vmatpush1.msra.mxu0 %v4328_v16  ;;  %6211 = vmatprep.mubr.f32.mxu1 %v7315_v24  ;;  %v4473_v16 = vld [vmem:[#allocation10 + $0xce8] sm:$0xff] }
 0x4da   : > { %5852 = vmatprep.subr.mxu0 %v4311_v57  ;;  %v4472_v57 = vld [vmem:[#allocation10 + $0xce0] sm:$0xff] }
 0x4db   : > { %5853 = vmatpush1.msra.mxu0 %v4310_v58  ;;  %v4455_v58 = vld [vmem:[#allocation10 + $0xc58] sm:$0xff] }
 0x4dc   : > { %5854 = vmatprep.subr.mxu0 %v4293_v59  ;;  %v4454_v59 = vld [vmem:[#allocation10 + $0xc50] sm:$0xff] }
 0x4dd   : > { %5855 = vmatpush1.msra.mxu0 %v4292_v60  ;;  %v4437_v60 = vld [vmem:[#allocation10 + $0xbc8] sm:$0xff] }
 0x4de   : > { %5856 = vmatprep.subr.mxu0 %v4275_v61  ;;  %v4436_v61 = vld [vmem:[#allocation10 + $0xbc0] sm:$0xff] }
 0x4df   : > { %5857 = vmatpush1.msra.mxu0 %v4274_v0  ;;  %v4419_v0 = vld [vmem:[#allocation10 + $0xb38] sm:$0xff] }
 0x4e0   : > { %5858 = vmatprep.subr.mxu0 %v4257_v18  ;;  %v4418_v18 = vld [vmem:[#allocation10 + $0xb30] sm:$0xff] }
 0x4e1   : > { %5859 = vmatpush1.msra.mxu0 %v4256_v1  ;;  %v4401_v1 = vld [vmem:[#allocation10 + $0xaa8] sm:$0xff] }
 0x4e2   : > { %5860 = vmatprep.subr.mxu0 %v4239_v2  ;;  %v4400_v2 = vld [vmem:[#allocation10 + $0xaa0] sm:$0xff] }
 0x4e3   : > { %5861 = vmatpush1.msra.mxu0 %v4238_v3  ;;  %v4383_v3 = vld [vmem:[#allocation10 + $0xa18] sm:$0xff] }
 0x4e4   : > { %5862 = vmatprep.subr.mxu0 %v4221_v4  ;;  %v4382_v4 = vld [vmem:[#allocation10 + $0xa10] sm:$0xff] }
 0x4e5   : > { %5863 = vmatpush1.msra.mxu0 %v4220_v5  ;;  %v4365_v5 = vld [vmem:[#allocation10 + $0x988] sm:$0xff] }
 0x4e6   : > { %5864 = vmatprep.subr.mxu0 %v4203_v6  ;;  %v4364_v6 = vld [vmem:[#allocation10 + $0x980] sm:$0xff] }
 0x4e7   : > { %5865 = vmatpush1.msra.mxu0 %v4202_v7 }
 0x4e8   : > { %5866 = vmatprep.subr.mxu0 %v4185_v8 }
 0x4e9   : > { %5867 = vmatpush1.msra.mxu0 %v4184_v9 }
 0x4ea   : > { %5868 = vmatprep.subr.mxu0 %v4167_v12 }
 0x4eb   : > { %5869 = vmatpush1.msra.mxu0 %v4166_v13 }
 0x4ec   : > { %5870 = vmatprep.subr.mxu0 %v4149_v14 }
 0x4ed   : > { %5871 = vmatpush1.msra.mxu0 %v4148_v53  ;;  %v6976_v53 = vld [vmem:[%s7969_s8 + $0x20] sm:$0xff] }
 0x4ee   : > { %5872 = vmatprep.subr.mxu0 %v4131_v15  ;;  %v5204_v63 = vpop.f32.mrf.mxu1 }
 0x4ef   : > { %5873 = vmatpush1.msra.mxu0 %v4130_v17 }
 0x4f0   : > { %5874 = vmatprep.subr.mxu0 %v4113_v19  ;;  %v5206_v42 = vpop.f32.mrf.mxu1 }
 0x4f1   : > { %5875 = vmatpush1.msra.mxu0 %v4112_v20 }
 0x4f2   : > { %5876 = vmatprep.subr.mxu0 %v4095_v48 }
 0x4f3   : > { %5877 = vmatpush1.msra.mxu0 %v4094_v22  ;;  %v5062_v26 = vpop.f32.mrf.mxu0  ;;  %v6987_v22 = vld [vmem:[%s7971_s10 + $0x10] sm:$0xff] }
 0x4f4   : > { %5878 = vmatprep.subr.mxu0 %v4077_v23  ;;  %v5134_v34 = vadd.f32 %v5133_v21, %v5062_v26  ;;  %v6978_v21 = vld [vmem:[%s7969_s8 + $0x28] sm:$0xff]  ;;  %6701 = vperm.xlu1 %7088, %v6987_v22  }
 0x4f5   : > { %5879 = vmatpush1.msra.mxu0 %v4076_v56  ;;  %v5064_v30 = vpop.f32.mrf.mxu0 }
 0x4f6   : > { %5880 = vmatprep.subr.mxu0 %v4635_v25  ;;  %v5136_v32 = vadd.f32 %v5135_v10, %v5064_v30 }
 0x4f7   : > { %5881 = vmatpush2.msra.mxu0 %v4634_v27 }
 0x4f8   : > { %5882 = vmatprep.subr.mxu0 %v4617_v29  ;;  %6177 = vmatprep.subr.mxu1 %v5136_v32  ;;  %v5417_v7 = vpop.f32.mrf.mxu1  ;;  %v6980_v29 = vld [vmem:[%s7969_s8 + $0x30] sm:$0xff] }
 0x4f9   : > { %5883 = vmatpush2.msra.mxu0 %v4616_v31  ;;  %6178 = vmatpush1.msra.mxu1 %v5134_v34 }
 0x4fa   : > { %5884 = vmatprep.subr.mxu0 %v4599_v33  ;;  %6973 = vmatmul.mubr.msk.f32.vlgmr.msra.gmra.mxu1 %vm5993_vm6, %v6972_v11  ;;  %v5419_v9 = vpop.f32.mrf.mxu1 }
 0x4fb   : > { %5885 = vmatpush2.msra.mxu0 %v4598_v35  ;;  %6289 = vmatprep.mubr.f32.mxu1 %v7315_v24  ;;  %v6982_v35 = vld [vmem:[%s7969_s8 + $0x38] sm:$0xff] }
 0x4fc   : > { %5886 = vmatprep.subr.mxu0 %v4581_v36 }
 0x4fd   : > { %5887 = vmatpush2.msra.mxu0 %v4580_v37  ;;  %v5275_v41 = vpop.f32.mrf.mxu0 }
 0x4fe   : > { %5888 = vmatprep.subr.mxu0 %v4563_v38  ;;  %v5276_v50 = vadd.f32 %v5275_v41, %v5204_v63  ;;  %v6984_v41 = vld [vmem:[%s7969_s8 + $0x40] sm:$0xff] }
 0x4ff   : > { %5889 = vmatpush2.msra.mxu0 %v4562_v39  ;;  %v5277_v45 = vpop.f32.mrf.mxu0 }
 0x500   : > { %5890 = vmatprep.subr.mxu0 %v4545_v40  ;;  %v5278_v47 = vadd.f32 %v5277_v45, %v5206_v42 }
 0x501   : > { %5891 = vmatpush2.msra.mxu0 %v4544_v43 }
 0x502   : > { %5892 = vmatprep.subr.mxu0 %v4527_v44  ;;  %6255 = vmatprep.subr.mxu1 %v5278_v47 }
 0x503   : > { %5893 = vmatpush2.msra.mxu0 %v4526_v46  ;;  %6256 = vmatpush1.msra.mxu1 %v5276_v50 }
 0x504   : > { %5894 = vmatprep.subr.mxu0 %v4509_v49  ;;  %6975 = vmatmul.mubr.msk.f32.vlgmr.msra.gmra.mxu1 %vm5993_vm6, %v6974_v51 }
 0x505   : > { %5895 = vmatpush2.msra.mxu0 %v4508_v52  ;;  %6367 = vmatprep.mubr.f32.mxu1 %v7315_v24 }
 0x506   : > { %5896 = vmatprep.subr.mxu0 %v4491_v54 }
 0x507   : > { %5897 = vmatpush2.msra.mxu0 %v4490_v55 }
 0x508   : > { %5898 = vmatprep.subr.mxu0 %v4473_v16 }
 0x509   : > { %5899 = vmatpush2.msra.mxu0 %v4472_v57 }
 0x50a   : > { %5900 = vmatprep.subr.mxu0 %v4455_v58 }
 0x50b   : > { %5901 = vmatpush2.msra.mxu0 %v4454_v59 }
 0x50c   : > { %5902 = vmatprep.subr.mxu0 %v4437_v60 }
 0x50d   : > { %5903 = vmatpush2.msra.mxu0 %v4436_v61 }
 0x50e   : > { %5904 = vmatprep.subr.mxu0 %v4419_v0 }
 0x50f   : > { %5905 = vmatpush2.msra.mxu0 %v4418_v18 }
 0x510   : > { %5906 = vmatprep.subr.mxu0 %v4401_v1 }
 0x511   : > { %5907 = vmatpush2.msra.mxu0 %v4400_v2 }
 0x512   : > { %5908 = vmatprep.subr.mxu0 %v4383_v3 }
 0x513   : > { %5909 = vmatpush2.msra.mxu0 %v4382_v4 }
 0x514   : > { %5910 = vmatprep.subr.mxu0 %v4365_v5 }
 0x515   : > { %5911 = vmatpush2.msra.mxu0 %v4364_v6 }
 0x516   : > { %5913 = vmatmul.mubr.f32.vlgmr.msra.gmra.mxu0 %v7827_v62 }
 0x53a   : > { %v5488_v15 = vpop.f32.mrf.mxu1 }
 0x53c   : > { %v5490_v19 = vpop.f32.mrf.mxu1 }
 0x53f   : > { %v5346_v8 = vpop.f32.mrf.mxu0 }
 0x540   : > { %v5418_v14 = vadd.f32 %v5417_v7, %v5346_v8 }
 0x541   : > { %v5348_v12 = vpop.f32.mrf.mxu0 }
 0x542   : > { %v5420_v13 = vadd.f32 %v5419_v9, %v5348_v12 }
 0x544   : > { %6333 = vmatprep.subr.mxu1 %v5420_v13  ;;  %v5701_v23 = vpop.f32.mrf.mxu1 }
 0x545   : > { %6334 = vmatpush1.msra.mxu1 %v5418_v14 }
 0x546   : > { %6977 = vmatmul.mubr.msk.f32.vlgmr.msra.gmra.mxu1 %vm5993_vm6, %v6976_v53  ;;  %v5703_v25 = vpop.f32.mrf.mxu1 }
 0x547   : > { %6445 = vmatprep.mubr.f32.mxu1 %v7315_v24 }
 0x549   : > { %v5559_v17 = vpop.f32.mrf.mxu0 }
 0x54a   : > { %v5560_v48 = vadd.f32 %v5559_v17, %v5488_v15 }
 0x54b   : > { %v5561_v62 = vpop.f32.mrf.mxu0 }
 0x54c   : > { %v5562_v20 = vadd.f32 %v5561_v62, %v5490_v19 }
 0x54e   : > { %6411 = vmatprep.subr.mxu1 %v5562_v20 }
 0x54f   : > { %6412 = vmatpush1.msra.mxu1 %v5560_v48 }
 0x550   : > { %6979 = vmatmul.mubr.msk.f32.vlgmr.msra.gmra.mxu1 %vm5993_vm6, %v6978_v21 }
 0x551   : > { %6523 = vmatprep.mubr.f32.mxu1 %v7315_v24 }
 0x56f   : > { %v6702_v17 = vpop.permute.xlu1 %6701 }
 0x586   : > { %v5772_v30 = vpop.f32.mrf.mxu1 }
 0x588   : > { %v5774_v32 = vpop.f32.mrf.mxu1 }
 0x58b   : > { %v5630_v56 = vpop.f32.mrf.mxu0 }
 0x58c   : > { %v5702_v27 = vadd.f32 %v5701_v23, %v5630_v56 }
 0x58d   : > { %v5632_v26 = vpop.f32.mrf.mxu0 }
 0x58e   : > { %v5704_v10 = vadd.f32 %v5703_v25, %v5632_v26 }
 0x58f   : > { %v5985_v36 = vpop.f32.mrf.mxu1 }
 0x590   : > { %6489 = vmatprep.subr.mxu1 %v5704_v10 }
 0x591   : > { %6490 = vmatpush1.msra.mxu1 %v5702_v27  ;;  %v5987_v37 = vpop.f32.mrf.mxu1 }
 0x592   : > { %6981 = vmatmul.mubr.msk.f32.vlgmr.msra.gmra.mxu1 %vm5993_vm6, %v6980_v29 }
 0x593   : > { %6601 = vmatprep.mubr.f32.mxu1 %v7315_v24 }
 0x594   : > { %v6063_v42 = vpop.f32.mrf.mxu1 }
 0x595   : > { %v5843_v31 = vpop.f32.mrf.mxu0 }
 0x596   : > { %v5844_v11 = vadd.f32 %v5843_v31, %v5772_v30  ;;  %v6065_v43 = vpop.f32.mrf.mxu1 }
 0x597   : > { %v5845_v33 = vpop.f32.mrf.mxu0 }
 0x598   : > { %v5846_v34 = vadd.f32 %v5845_v33, %v5774_v32  ;;  %v6137_v44 = vpop.f32.mrf.mxu1 }
 0x599   : > { %v6138_v52 = vadd.f32 %v6137_v44, %v6063_v42 }
 0x59a   : > { %6567 = vmatprep.subr.mxu1 %v5846_v34  ;;  %v6139_v45 = vpop.f32.mrf.mxu1 }
 0x59b   : > { %6568 = vmatpush1.msra.mxu1 %v5844_v11  ;;  %v6140_v54 = vadd.f32 %v6139_v45, %v6065_v43 }
 0x59c   : > { %6983 = vmatmul.mubr.msk.f32.vlgmr.msra.gmra.mxu1 %vm5993_vm6, %v6982_v35 }
 0x59d   : > { %6679 = vmatprep.mubr.f32.mxu1 %v7315_v24 }
 0x5ba   : > { %v6213_v46 = vpop.f32.mrf.mxu1 }
 0x5bb   : > { %v6218_v16 = vadd.f32 %v6213_v46, %v6138_v52 }
 0x5bc   : > { %v6215_v24 = vpop.f32.mrf.mxu1 }
 0x5bd   : > { %v6219_v57 = vadd.f32 %v6215_v24, %v6140_v54 }
 0x5c4   : > { %v6291_v47 = vpop.f32.mrf.mxu1 }
 0x5c5   : > { %v6296_v59 = vadd.f32 %v6291_v47, %v6218_v16 }
 0x5c6   : > { %v6293_v49 = vpop.f32.mrf.mxu1 }
 0x5c7   : > { %v6297_v60 = vadd.f32 %v6293_v49, %v6219_v57 }
 0x5d6   : > { %v5914_v63 = vpop.f32.mrf.mxu0 }
 0x5d7   : > { %v5986_v40 = vadd.f32 %v5985_v36, %v5914_v63 }
 0x5d8   : > { %v5916_v38 = vpop.f32.mrf.mxu0 }
 0x5d9   : > { %v5988_v39 = vadd.f32 %v5987_v37, %v5916_v38 }
 0x5db   : > { %6645 = vmatprep.subr.mxu1 %v5988_v39 }
 0x5dc   : > { %6646 = vmatpush1.msra.mxu1 %v5986_v40 }
 0x5dd   : > { %6985 = vmatmul.mubr.msk.f32.vlgmr.msra.gmra.mxu1 %vm5993_vm6, %v6984_v41 }
 0x606   : > { %v6369_v50 = vpop.f32.mrf.mxu1 }
 0x607   : > { %v6374_v0 = vadd.f32 %v6369_v50, %v6296_v59 }
 0x608   : > { %v6371_v51 = vpop.f32.mrf.mxu1 }
 0x609   : > { %v6375_v18 = vadd.f32 %v6371_v51, %v6297_v60 }
 0x610   : > { %v6447_v55 = vpop.f32.mrf.mxu1 }
 0x611   : > { %v6452_v2 = vadd.f32 %v6447_v55, %v6374_v0 }
 0x612   : > { %v6449_v58 = vpop.f32.mrf.mxu1 }
 0x613   : > { %v6453_v3 = vadd.f32 %v6449_v58, %v6375_v18 }
 0x652   : > { %v6525_v61 = vpop.f32.mrf.mxu1 }
 0x653   : > { %v6530_v5 = vadd.f32 %v6525_v61, %v6452_v2 }
 0x654   : > { %v6527_v1 = vpop.f32.mrf.mxu1 }
 0x655   : > { %v6531_v6 = vadd.f32 %v6527_v1, %v6453_v3 }
 0x65c   : > { %v6603_v4 = vpop.f32.mrf.mxu1 }
 0x65d   : > { %v6608_v8 = vadd.f32 %v6603_v4, %v6530_v5 }
 0x65e   : > { %v6605_v7 = vpop.f32.mrf.mxu1 }
 0x65f   : > { %v6609_v12 = vadd.f32 %v6605_v7, %v6531_v6 }
 0x69d   : > { %v6681_v9 = vpop.f32.mrf.mxu1 }
 0x69e   : > { %v6686_v13 = vadd.f32 %v6681_v9, %v6608_v8 }
 0x69f   : > { %v6683_v14 = vpop.f32.mrf.mxu1 }
 0x6a0   : > { %v6695_v53 = vmul.f32 %v7706_v28, %v6686_v13  ;;  %v6687_v15 = vadd.f32 %v6683_v14, %v6609_v12 }
 0x6a2   : > { %v6704_v19 = vadd.f32 %v6702_v17, %v6695_v53  ;;  %v6696_v62 = vmul.f32 %v7706_v28, %v6687_v15 }
 0x6a4   : > { %v6706_v20 = vmax.f32 %v6704_v19, 0.0  ;;  %v6705_v48 = vadd.f32 %v6702_v17, %v6696_v62 }
 0x6a6   : > { %6988 = vst [vmem:[%s7709_s23 + $0x20] sm:$0xff] %v6706_v20  ;;  %v6707_v21 = vmax.f32 %v6705_v48, 0.0 }
 0x6a8   : > { %6989 = vst [vmem:[%s7709_s23 + $0x28] sm:$0xff] %v6707_v21 }
 0x6a9   : > { %7243 = shalt.err (!%p7240_p13)
}
 0x6aa   : > { %s7244_s23 = scalar_lea.hbm %s7916_s28, 768  ;;  %s7248_s5 = scalar_lea.hbm %s7972_s11, 1536 }
 0x6ab   : > { %p7245_p1 = scmp.ne.s32.totalorder %s7916_s28, %s7244_s23  ;;  %p7249_p4 = scmp.lt.s32.totalorder %s7916_s28, %s7972_s11 }
 0x6ac   : > { %p7250_p6 = scmp.lt.s32.totalorder %s7248_s5, %s7244_s23 }
 0x6ad   : > { %p7246_p11 = pnand %p7245_p1, %p8005_p5 }
 0x6ae   : > { %p7251_p12 = por %p7250_p6, %p7249_p4 }
 0x6af   : > { %p7247_p2 = pneg %p7246_p11 }
 0x6b1   : > { %p7252_p0 = pnand %p7251_p12, %p7247_p2 }
 0x6b3   : > { %7255 = shalt.err (!%p7252_p0)
}
 0x6b4   : > { %s7318_s3 = smov 256   ;;  %s7319_s19 = smov 16  }
 0x6b5   : > { %7015 = dma.vmem_to_hbm [thread:$0]  (%p8005_p5), %s7911_s25, 768, %s7916_s28, %s6712_s15, %s7318_s3, %s7318_s3, %s7319_s19  }
 0x6b6 PF: > { %s6740_s13 = sand.u32 1, %s7294_s17   ;;  %p8006_p3 = scmp.ne.s32.totalorder %s7986_s24, 0 }
 0x6b7   : > { %p8007_p7 = scmp.ge.s32.totalorder %s7306_s20, 2  ;;  %s6741_s26 = scalar_lea.sflag [#allocation4], %s6740_s13 }
 0x6b9   : > { %p7035_p9 = pnand %p8007_p7, %p8006_p3 }
 0x6bb   : > { %p7036_p8 = pneg %p7035_p9 }
 0x6bd   : > { %7289 = dma.done.wait (%p7036_p8), %s6741_s26, 768  }
 0x6be   : > { %7291 = vsyncadd (%p7036_p8), %s6741_s26, 4294966528  ;;  %s8008_s20 = sld [smem:[#allocation18_spill]]  ;;  %s8011_s17 = smov %s7298_s18 }
 0x6bf   : > { %s8009_s21 = sld [smem:[#allocation17_spill]] }
 0x6c0   : > { %s8010_s19 = sld [smem:[#allocation19_spill]] }
 0x6c4   : > { %p28_p10 = scmp.ge.s32.totalorder %s8008_s20, 4  }
 0x6c5   : > { %s8012_s18 = smov %s8009_s21 }
 0x6c6   :  { %30 = sbr.rel (!%p28_p10) target bundleno = 13 (0xd), region = 167 }
 0x6cb   :  { %6746 = vsyncpa [#allocation3], 1 }
 0x6cc   :  { %6748 = vsyncpa [#allocation3 + $0x1], 1 }
 0x6cd   :  { %6749 = vsyncpa [#allocation6], 1 }
 0x6ce   :  { %6751 = vsyncpa [#allocation6 + $0x1], 1 }
 0x6cf   :  { %6752 = vsyncpa [#allocation9], 1 }
 0x6d0   :  { %6753 = vsyncpa [#allocation4], 1 }
 0x6d1   :  { %6755 = vsyncpa [#allocation4 + $0x1], 1 }

</bundles_post_ra>
